<compile_context>
chip_gen: v7x
topology: tpu7x:2x2x1
jax: 0.10.0
libtpu: 0.0.40
codegen_flags: <defaults>
</compile_context>

<pallas_src>
import jax
import jax.numpy as jnp
import numpy as np
from jax.experimental import pallas as pl
from jax.experimental.pallas import tpu as pltpu


TB = 8      # images per grid step; each image owns a 32-row band of the slab.


# ----------------------------------------------------------------------------
# Fused kernel: conv1+pool1+conv2+pool2+flatten+fc1+fc2+fc3 for TB images.
# ----------------------------------------------------------------------------
def _shift_up(a, s):
    """out[r, :] = a[r + s, :]; rows shifted past the end become zeros (they
    only ever land in garbage rows that no valid output reads)."""
    if s == 0:
        return a
    tail = jnp.zeros((s, a.shape[1]), a.dtype)
    return jnp.concatenate([a[s:, :], tail], axis=0)


def _widen(a, shifts):
    """Row-only im2col: lane-concatenate row-shifted copies of `a`."""
    return jnp.concatenate([_shift_up(a, s) for s in shifts], axis=1)


def _lenet_kernel(x_ref, band1_ref, cb1_ref, band2_ref, cb2_ref,
                  w1_ref, fb1_ref, w2_ref, fb2_ref, w3_ref, fb3_ref, o_ref):
    f32 = jnp.float32
    bf16 = jnp.bfloat16
    x = x_ref[...]                                        # (TB*32, 32) f32

    # conv1 (5x5, pad 2) as ONE banded matmul (K = 5 kernel rows x 32 cols).
    # Output cols: dw*84 + oc*14 + ow' (even/odd output columns split so the
    # width pooling below is a plain lane-half add).
    x5 = _widen(x, (0, 1, 2, 3, 4)).astype(bf16)          # (M, 160)
    r1 = jnp.dot(x5, band1_ref[...], preferred_element_type=f32)
    r1 = jnp.maximum(r1 + cb1_ref[...], 0.0)              # (M, 168)

    # pool1 (2x2 avg): width pairs = lane halves, height pairs = shifted add.
    # The x0.25 scale is folded into band2.
    z1 = r1[:, 0:84] + r1[:, 84:168]                      # (M, 84)
    q1 = z1 + _shift_up(z1, 1)                            # valid @ rows b*32+2*oh'

    # conv2 (5x5, valid) on the stride-2 valid rows, again one banded matmul.
    q5 = _widen(q1, (0, 2, 4, 6, 8)).astype(bf16)         # (M, 420)
    r2 = jnp.dot(q5, band2_ref[...], preferred_element_type=f32)
    r2 = jnp.maximum(r2 + cb2_ref[...], 0.0)              # (M, 160)

    # pool2 + flatten: width halves, height shifted add, then gather the five
    # pooled rows of every image into one 400-lane feature row (row b*32).
    # The x0.25 and the PyTorch NCHW flatten order are folded into w1.
    z2 = r2[:, 0:80] + r2[:, 80:160]                      # (M, 80)
    q2 = z2 + _shift_up(z2, 2)                            # valid @ rows b*32+4*oh2'
    feat = _widen(q2, (0, 4, 8, 12, 16)).astype(bf16)     # (M, 400)

    # Fused FC stack; hidden/output dims are zero-padded to 128 lanes so every
    # store is an unmasked, lane-dense vst.  Rows other than b*32 carry garbage
    # and are discarded by the wrapper.
    h1 = jnp.maximum(
        jnp.dot(feat, w1_ref[...], preferred_element_type=f32) + fb1_ref[...],
        0.0)                                              # (M, 128)
    h2 = jnp.maximum(
        jnp.dot(h1.astype(bf16), w2_ref[...], preferred_element_type=f32)
        + fb2_ref[...], 0.0)                              # (M, 128)
    o_ref[...] = (jnp.dot(h2.astype(bf16), w3_ref[...],
                          preferred_element_type=f32) + fb3_ref[...])


# ----------------------------------------------------------------------------
# One-time host-side weight preparation (layout plumbing, scale folding).
# ----------------------------------------------------------------------------
def prepare_params(p):
    c1w = np.asarray(p["c1w"], np.float32)
    c1b = np.asarray(p["c1b"], np.float32)
    c2w = np.asarray(p["c2w"], np.float32)
    c2b = np.asarray(p["c2b"], np.float32)
    f1w = np.asarray(p["f1w"], np.float32)
    f1b = np.asarray(p["f1b"], np.float32)
    f2w = np.asarray(p["f2w"], np.float32)
    f2b = np.asarray(p["f2b"], np.float32)
    f3w = np.asarray(p["f3w"], np.float32)
    f3b = np.asarray(p["f3b"], np.float32)

    # conv1 band: row = ki*32 + padded input col, col = dw*84 + oc*14 + ow'.
    band1 = np.zeros((160, 168), np.float32)
    for ki in range(5):
        for oc in range(6):
            for dw in range(2):
                for owp in range(14):
                    col = dw * 84 + oc * 14 + owp
                    ow = 2 * owp + dw
                    for kj in range(5):
                        band1[ki * 32 + ow + kj, col] = c1w[oc, 0, ki, kj]

    # conv2 band (pool1 x0.25 folded in):
    # row = ki*84 + ci*14 + pooled col, col = dw*80 + oc*5 + ow'.
    band2 = np.zeros((420, 160), np.float32)
    for ki in range(5):
        for ci in range(6):
            for oc in range(16):
                for dw in range(2):
                    for owp in range(5):
                        col = dw * 80 + oc * 5 + owp
                        ow = 2 * owp + dw
                        for kj in range(5):
                            band2[ki * 84 + ci * 14 + ow + kj, col] = (
                                0.25 * c2w[oc, ci, ki, kj])

    # FC1: fold pool2 x0.25 + the NCHW flatten permutation; pad 120 -> 128.
    # Kernel feature index = j*80 + oc*5 + ow'  (j = pooled output row).
    w1 = np.zeros((400, 128), np.float32)
    for j in range(5):
        for oc in range(16):
            for owp in range(5):
                w1[j * 80 + oc * 5 + owp, :120] = (
                    0.25 * f1w[oc * 25 + j * 5 + owp, :])
    fb1 = np.zeros((1, 128), np.float32)
    fb1[0, :120] = f1b

    w2 = np.zeros((128, 128), np.float32)
    w2[:120, :84] = f2w
    fb2 = np.zeros((1, 128), np.float32)
    fb2[0, :84] = f2b

    w3 = np.zeros((128, 128), np.float32)
    w3[:84, :10] = f3w
    fb3 = np.zeros((1, 128), np.float32)
    fb3[0, :10] = f3b

    bf = jnp.bfloat16
    return {
        "band1": jnp.asarray(band1, bf),
        "cb1": jnp.asarray(np.tile(np.repeat(c1b, 14), 2).reshape(1, 168)),
        "band2": jnp.asarray(band2, bf),
        "cb2": jnp.asarray(np.tile(np.repeat(c2b, 5), 2).reshape(1, 160)),
        "w1": jnp.asarray(w1, bf), "fb1": jnp.asarray(fb1),
        "w2": jnp.asarray(w2, bf), "fb2": jnp.asarray(fb2),
        "w3": jnp.asarray(w3, bf), "fb3": jnp.asarray(fb3),
    }


# ----------------------------------------------------------------------------
# Forward pass: a single pallas_call, grid over batch tiles.
# ----------------------------------------------------------------------------
def lenet_forward(x, kp):
    n = x.shape[0]
    steps = (n + TB - 1) // TB
    npad = steps * TB
    # 2-pixel spatial zero padding + batch padding to a multiple of TB; each
    # image then occupies exactly one 32-row band of a (npad*32, 32) slab.
    xp = jnp.pad(x[:, 0], ((0, npad - n), (2, 2), (2, 2)))     # (npad, 32, 32)
    x2d = xp.reshape(npad * 32, 32)

    out = pl.pallas_call(
        _lenet_kernel,
        grid=(steps,),
        in_specs=[
            pl.BlockSpec((TB * 32, 32), lambda i: (i, 0)),      # images
            pl.BlockSpec((160, 168), lambda i: (0, 0)),         # band1
            pl.BlockSpec((1, 168), lambda i: (0, 0)),           # conv1 bias
            pl.BlockSpec((420, 160), lambda i: (0, 0)),         # band2
            pl.BlockSpec((1, 160), lambda i: (0, 0)),           # conv2 bias
            pl.BlockSpec((400, 128), lambda i: (0, 0)),         # fc1 w
            pl.BlockSpec((1, 128), lambda i: (0, 0)),           # fc1 b
            pl.BlockSpec((128, 128), lambda i: (0, 0)),         # fc2 w
            pl.BlockSpec((1, 128), lambda i: (0, 0)),           # fc2 b
            pl.BlockSpec((128, 128), lambda i: (0, 0)),         # fc3 w
            pl.BlockSpec((1, 128), lambda i: (0, 0)),           # fc3 b
        ],
        out_specs=pl.BlockSpec((TB * 32, 128), lambda i: (i, 0)),
        out_shape=jax.ShapeDtypeStruct((npad * 32, 128), jnp.float32),
        compiler_params=pltpu.CompilerParams(
            dimension_semantics=("parallel",)),
    )(x2d, kp["band1"], kp["cb1"], kp["band2"], kp["cb2"],
      kp["w1"], kp["fb1"], kp["w2"], kp["fb2"], kp["w3"], kp["fb3"])

    # Row b*32 of each image's band holds its logits; lanes 10.. are zero pad.
    return out.reshape(npad, 32, 128)[:n, 0, :10]


# ----------------------------------------------------------------------------
# PyTorch-style parameters + pure-JAX (f32) reference.
# ----------------------------------------------------------------------------
def init_params(key):
    ks = jax.random.split(key, 10)

    def u(k, shape, fan_in):
        bound = 1.0 / (fan_in ** 0.5)
        return jax.random.uniform(k, shape, jnp.float32, -bound, bound)

    return {
        "c1w": u(ks[0], (6, 1, 5, 5), 25),   "c1b": u(ks[1], (6,), 25),
        "c2w": u(ks[2], (16, 6, 5, 5), 150), "c2b": u(ks[3], (16,), 150),
        "f1w": u(ks[4], (400, 120), 400),    "f1b": u(ks[5], (120,), 400),
        "f2w": u(ks[6], (120, 84), 120),     "f2b": u(ks[7], (84,), 120),
        "f3w": u(ks[8], (84, 10), 84),       "f3b": u(ks[9], (10,), 84),
    }


def lenet_reference(x, p):
    def conv(x, w, b, pad):
        y = jax.lax.conv_general_dilated(
            x, w, window_strides=(1, 1), padding=[(pad, pad), (pad, pad)],
            dimension_numbers=("NCHW", "OIHW", "NCHW"))
        return jnp.maximum(y + b[None, :, None, None], 0.0)

    def pool(x):
        n, c, h, w = x.shape
        return x.reshape(n, c, h // 2, 2, w // 2, 2).mean(axis=(3, 5))

    x = pool(conv(x, p["c1w"], p["c1b"], 2))
    x = pool(conv(x, p["c2w"], p["c2b"], 0))
    x = x.reshape(x.shape[0], -1)
    x = jnp.maximum(x @ p["f1w"] + p["f1b"], 0.0)
    x = jnp.maximum(x @ p["f2w"] + p["f2b"], 0.0)
    return x @ p["f3w"] + p["f3b"]


if __name__ == "__main__":
    key = jax.random.PRNGKey(0)
    kx, kparams_key = jax.random.split(key)
    # Linear(400, 120) pins the spatial size to 28x28 (LeNet on MNIST); batch=2.
    x = jax.random.normal(kx, (2, 1, 28, 28), jnp.float32)
    params = init_params(kparams_key)
    kparams = prepare_params(params)

    fwd = jax.jit(lenet_forward)
    logits = jax.block_until_ready(fwd(x, kparams))
    assert logits.shape == (2, 10) and logits.dtype == jnp.float32

    ref = jax.block_until_ready(lenet_reference(x, params))
    err = float(jnp.max(jnp.abs(logits - ref)))
    # bf16 MXU operands (f32 accumulate) -> slightly looser tolerance than f32.
    assert jnp.allclose(logits, ref, atol=2e-2, rtol=2e-2), err

    print("KERNEL_OK")
</pallas_src>

<mosaic_0001>
module attributes {stable_mosaic.version = 11 : i64} {
  func.func @_lenet_kernel(%arg0: i32, %arg1: memref<256x32xf32, #tpu.memory_space<vmem>>, %arg2: memref<160x168xbf16, #tpu.memory_space<vmem>>, %arg3: memref<1x168xf32, #tpu.memory_space<vmem>>, %arg4: memref<420x160xbf16, #tpu.memory_space<vmem>>, %arg5: memref<1x160xf32, #tpu.memory_space<vmem>>, %arg6: memref<400x128xbf16, #tpu.memory_space<vmem>>, %arg7: memref<1x128xf32, #tpu.memory_space<vmem>>, %arg8: memref<128x128xbf16, #tpu.memory_space<vmem>>, %arg9: memref<1x128xf32, #tpu.memory_space<vmem>>, %arg10: memref<128x128xbf16, #tpu.memory_space<vmem>>, %arg11: memref<1x128xf32, #tpu.memory_space<vmem>>, %arg12: memref<256x128xf32, #tpu.memory_space<vmem>>) attributes {dimension_semantics = [#tpu.dimension_semantics<parallel>], iteration_bounds = array<i64: 1>, scalar_prefetch = 0 : i64, scratch_operands = 0 : i64, tpu.core_type = #tpu.core_type<tc>, window_params = [{transform_indices = @transform_0, window_bounds = array<i64: 256, 32>}, {pipeline_mode = #tpu.pipeline_mode<synchronous>, transform_indices = @transform_1, window_bounds = array<i64: 160, 168>}, {pipeline_mode = #tpu.pipeline_mode<synchronous>, transform_indices = @transform_2, window_bounds = array<i64: 1, 168>}, {pipeline_mode = #tpu.pipeline_mode<synchronous>, transform_indices = @transform_3, window_bounds = array<i64: 420, 160>}, {pipeline_mode = #tpu.pipeline_mode<synchronous>, transform_indices = @transform_4, window_bounds = array<i64: 1, 160>}, {pipeline_mode = #tpu.pipeline_mode<synchronous>, transform_indices = @transform_5, window_bounds = array<i64: 400, 128>}, {pipeline_mode = #tpu.pipeline_mode<synchronous>, transform_indices = @transform_6, window_bounds = array<i64: 1, 128>}, {pipeline_mode = #tpu.pipeline_mode<synchronous>, transform_indices = @transform_7, window_bounds = array<i64: 128, 128>}, {pipeline_mode = #tpu.pipeline_mode<synchronous>, transform_indices = @transform_8, window_bounds = array<i64: 1, 128>}, {pipeline_mode = #tpu.pipeline_mode<synchronous>, transform_indices = @transform_9, window_bounds = array<i64: 128, 128>}, {pipeline_mode = #tpu.pipeline_mode<synchronous>, transform_indices = @transform_10, window_bounds = array<i64: 1, 128>}, {transform_indices = @transform_11, window_bounds = array<i64: 256, 128>}]} {
    %c0 = arith.constant 0 : index
    %c0_0 = arith.constant 0 : index
    %0 = vector.load %arg1[%c0, %c0_0] : memref<256x32xf32, #tpu.memory_space<vmem>>, vector<256x32xf32>
    %cst = arith.constant 0.000000e+00 : f32
    %1 = vector.broadcast %cst : f32 to vector<1x32xf32>
    %2 = vector.extract_strided_slice %0 {offsets = [1, 0], sizes = [255, 32], strides = [1, 1]} : vector<256x32xf32> to vector<255x32xf32>
    %3 = tpu.concatenate %2, %1 in 0 : vector<255x32xf32>, vector<1x32xf32> -> vector<256x32xf32>
    %cst_1 = arith.constant 0.000000e+00 : f32
    %4 = vector.broadcast %cst_1 : f32 to vector<2x32xf32>
    %5 = vector.extract_strided_slice %0 {offsets = [2, 0], sizes = [254, 32], strides = [1, 1]} : vector<256x32xf32> to vector<254x32xf32>
    %6 = tpu.concatenate %5, %4 in 0 : vector<254x32xf32>, vector<2x32xf32> -> vector<256x32xf32>
    %cst_2 = arith.constant 0.000000e+00 : f32
    %7 = vector.broadcast %cst_2 : f32 to vector<3x32xf32>
    %8 = vector.extract_strided_slice %0 {offsets = [3, 0], sizes = [253, 32], strides = [1, 1]} : vector<256x32xf32> to vector<253x32xf32>
    %9 = tpu.concatenate %8, %7 in 0 : vector<253x32xf32>, vector<3x32xf32> -> vector<256x32xf32>
    %cst_3 = arith.constant 0.000000e+00 : f32
    %10 = vector.broadcast %cst_3 : f32 to vector<4x32xf32>
    %11 = vector.extract_strided_slice %0 {offsets = [4, 0], sizes = [252, 32], strides = [1, 1]} : vector<256x32xf32> to vector<252x32xf32>
    %12 = tpu.concatenate %11, %10 in 0 : vector<252x32xf32>, vector<4x32xf32> -> vector<256x32xf32>
    %13 = tpu.concatenate %0, %3, %6, %9, %12 in 1 : vector<256x32xf32>, vector<256x32xf32>, vector<256x32xf32>, vector<256x32xf32>, vector<256x32xf32> -> vector<256x160xf32>
    %14 = arith.truncf %13 : vector<256x160xf32> to vector<256x160xbf16>
    %c0_4 = arith.constant 0 : index
    %c0_5 = arith.constant 0 : index
    %15 = vector.load %arg2[%c0_4, %c0_5] : memref<160x168xbf16, #tpu.memory_space<vmem>>, vector<160x168xbf16>
    %cst_6 = arith.constant dense<0.000000e+00> : vector<256x168xf32>
    %16 = tpu.matmul %14, %15, %cst_6 {dimension_numbers = #tpu.dot_dimension_numbers<[1], [0], [0], [1], [0, 0, 1, 1], [], []>} : vector<256x160xbf16>, vector<160x168xbf16>, vector<256x168xf32> -> vector<256x168xf32>
    %c0_7 = arith.constant 0 : index
    %c0_8 = arith.constant 0 : index
    %17 = vector.load %arg3[%c0_7, %c0_8] : memref<1x168xf32, #tpu.memory_space<vmem>>, vector<1x168xf32>
    %18 = vector.broadcast %17 : vector<1x168xf32> to vector<256x168xf32>
    %19 = arith.addf %16, %18 : vector<256x168xf32>
    %cst_9 = arith.constant 0.000000e+00 : f32
    %20 = vector.broadcast %cst_9 : f32 to vector<256x168xf32>
    %21 = arith.maximumf %19, %20 : vector<256x168xf32>
    %22 = vector.extract_strided_slice %21 {offsets = [0, 0], sizes = [256, 84], strides = [1, 1]} : vector<256x168xf32> to vector<256x84xf32>
    %23 = vector.extract_strided_slice %21 {offsets = [0, 84], sizes = [256, 84], strides = [1, 1]} : vector<256x168xf32> to vector<256x84xf32>
    %24 = arith.addf %22, %23 : vector<256x84xf32>
    %cst_10 = arith.constant 0.000000e+00 : f32
    %25 = vector.broadcast %cst_10 : f32 to vector<1x84xf32>
    %26 = vector.extract_strided_slice %24 {offsets = [1, 0], sizes = [255, 84], strides = [1, 1]} : vector<256x84xf32> to vector<255x84xf32>
    %27 = tpu.concatenate %26, %25 in 0 : vector<255x84xf32>, vector<1x84xf32> -> vector<256x84xf32>
    %28 = arith.addf %24, %27 : vector<256x84xf32>
    %cst_11 = arith.constant 0.000000e+00 : f32
    %29 = vector.broadcast %cst_11 : f32 to vector<2x84xf32>
    %30 = vector.extract_strided_slice %28 {offsets = [2, 0], sizes = [254, 84], strides = [1, 1]} : vector<256x84xf32> to vector<254x84xf32>
    %31 = tpu.concatenate %30, %29 in 0 : vector<254x84xf32>, vector<2x84xf32> -> vector<256x84xf32>
    %cst_12 = arith.constant 0.000000e+00 : f32
    %32 = vector.broadcast %cst_12 : f32 to vector<4x84xf32>
    %33 = vector.extract_strided_slice %28 {offsets = [4, 0], sizes = [252, 84], strides = [1, 1]} : vector<256x84xf32> to vector<252x84xf32>
    %34 = tpu.concatenate %33, %32 in 0 : vector<252x84xf32>, vector<4x84xf32> -> vector<256x84xf32>
    %cst_13 = arith.constant 0.000000e+00 : f32
    %35 = vector.broadcast %cst_13 : f32 to vector<6x84xf32>
    %36 = vector.extract_strided_slice %28 {offsets = [6, 0], sizes = [250, 84], strides = [1, 1]} : vector<256x84xf32> to vector<250x84xf32>
    %37 = tpu.concatenate %36, %35 in 0 : vector<250x84xf32>, vector<6x84xf32> -> vector<256x84xf32>
    %cst_14 = arith.constant 0.000000e+00 : f32
    %38 = vector.broadcast %cst_14 : f32 to vector<8x84xf32>
    %39 = vector.extract_strided_slice %28 {offsets = [8, 0], sizes = [248, 84], strides = [1, 1]} : vector<256x84xf32> to vector<248x84xf32>
    %40 = tpu.concatenate %39, %38 in 0 : vector<248x84xf32>, vector<8x84xf32> -> vector<256x84xf32>
    %41 = tpu.concatenate %28, %31, %34, %37, %40 in 1 : vector<256x84xf32>, vector<256x84xf32>, vector<256x84xf32>, vector<256x84xf32>, vector<256x84xf32> -> vector<256x420xf32>
    %42 = arith.truncf %41 : vector<256x420xf32> to vector<256x420xbf16>
    %c0_15 = arith.constant 0 : index
    %c0_16 = arith.constant 0 : index
    %43 = vector.load %arg4[%c0_15, %c0_16] : memref<420x160xbf16, #tpu.memory_space<vmem>>, vector<420x160xbf16>
    %cst_17 = arith.constant dense<0.000000e+00> : vector<256x160xf32>
    %44 = tpu.matmul %42, %43, %cst_17 {dimension_numbers = #tpu.dot_dimension_numbers<[1], [0], [0], [1], [0, 0, 1, 1], [], []>} : vector<256x420xbf16>, vector<420x160xbf16>, vector<256x160xf32> -> vector<256x160xf32>
    %c0_18 = arith.constant 0 : index
    %c0_19 = arith.constant 0 : index
    %45 = vector.load %arg5[%c0_18, %c0_19] : memref<1x160xf32, #tpu.memory_space<vmem>>, vector<1x160xf32>
    %46 = vector.broadcast %45 : vector<1x160xf32> to vector<256x160xf32>
    %47 = arith.addf %44, %46 : vector<256x160xf32>
    %cst_20 = arith.constant 0.000000e+00 : f32
    %48 = vector.broadcast %cst_20 : f32 to vector<256x160xf32>
    %49 = arith.maximumf %47, %48 : vector<256x160xf32>
    %50 = vector.extract_strided_slice %49 {offsets = [0, 0], sizes = [256, 80], strides = [1, 1]} : vector<256x160xf32> to vector<256x80xf32>
    %51 = vector.extract_strided_slice %49 {offsets = [0, 80], sizes = [256, 80], strides = [1, 1]} : vector<256x160xf32> to vector<256x80xf32>
    %52 = arith.addf %50, %51 : vector<256x80xf32>
    %cst_21 = arith.constant 0.000000e+00 : f32
    %53 = vector.broadcast %cst_21 : f32 to vector<2x80xf32>
    %54 = vector.extract_strided_slice %52 {offsets = [2, 0], sizes = [254, 80], strides = [1, 1]} : vector<256x80xf32> to vector<254x80xf32>
    %55 = tpu.concatenate %54, %53 in 0 : vector<254x80xf32>, vector<2x80xf32> -> vector<256x80xf32>
    %56 = arith.addf %52, %55 : vector<256x80xf32>
    %cst_22 = arith.constant 0.000000e+00 : f32
    %57 = vector.broadcast %cst_22 : f32 to vector<4x80xf32>
    %58 = vector.extract_strided_slice %56 {offsets = [4, 0], sizes = [252, 80], strides = [1, 1]} : vector<256x80xf32> to vector<252x80xf32>
    %59 = tpu.concatenate %58, %57 in 0 : vector<252x80xf32>, vector<4x80xf32> -> vector<256x80xf32>
    %cst_23 = arith.constant 0.000000e+00 : f32
    %60 = vector.broadcast %cst_23 : f32 to vector<8x80xf32>
    %61 = vector.extract_strided_slice %56 {offsets = [8, 0], sizes = [248, 80], strides = [1, 1]} : vector<256x80xf32> to vector<248x80xf32>
    %62 = tpu.concatenate %61, %60 in 0 : vector<248x80xf32>, vector<8x80xf32> -> vector<256x80xf32>
    %cst_24 = arith.constant 0.000000e+00 : f32
    %63 = vector.broadcast %cst_24 : f32 to vector<12x80xf32>
    %64 = vector.extract_strided_slice %56 {offsets = [12, 0], sizes = [244, 80], strides = [1, 1]} : vector<256x80xf32> to vector<244x80xf32>
    %65 = tpu.concatenate %64, %63 in 0 : vector<244x80xf32>, vector<12x80xf32> -> vector<256x80xf32>
    %cst_25 = arith.constant 0.000000e+00 : f32
    %66 = vector.broadcast %cst_25 : f32 to vector<16x80xf32>
    %67 = vector.extract_strided_slice %56 {offsets = [16, 0], sizes = [240, 80], strides = [1, 1]} : vector<256x80xf32> to vector<240x80xf32>
    %68 = tpu.concatenate %67, %66 in 0 : vector<240x80xf32>, vector<16x80xf32> -> vector<256x80xf32>
    %69 = tpu.concatenate %56, %59, %62, %65, %68 in 1 : vector<256x80xf32>, vector<256x80xf32>, vector<256x80xf32>, vector<256x80xf32>, vector<256x80xf32> -> vector<256x400xf32>
    %70 = arith.truncf %69 : vector<256x400xf32> to vector<256x400xbf16>
    %c0_26 = arith.constant 0 : index
    %c0_27 = arith.constant 0 : index
    %71 = vector.load %arg6[%c0_26, %c0_27] : memref<400x128xbf16, #tpu.memory_space<vmem>>, vector<400x128xbf16>
    %cst_28 = arith.constant dense<0.000000e+00> : vector<256x128xf32>
    %72 = tpu.matmul %70, %71, %cst_28 {dimension_numbers = #tpu.dot_dimension_numbers<[1], [0], [0], [1], [0, 0, 1, 1], [], []>} : vector<256x400xbf16>, vector<400x128xbf16>, vector<256x128xf32> -> vector<256x128xf32>
    %c0_29 = arith.constant 0 : index
    %c0_30 = arith.constant 0 : index
    %73 = vector.load %arg7[%c0_29, %c0_30] : memref<1x128xf32, #tpu.memory_space<vmem>>, vector<1x128xf32>
    %74 = vector.broadcast %73 : vector<1x128xf32> to vector<256x128xf32>
    %75 = arith.addf %72, %74 : vector<256x128xf32>
    %cst_31 = arith.constant 0.000000e+00 : f32
    %76 = vector.broadcast %cst_31 : f32 to vector<256x128xf32>
    %77 = arith.maximumf %75, %76 : vector<256x128xf32>
    %78 = arith.truncf %77 : vector<256x128xf32> to vector<256x128xbf16>
    %c0_32 = arith.constant 0 : index
    %c0_33 = arith.constant 0 : index
    %79 = vector.load %arg8[%c0_32, %c0_33] : memref<128x128xbf16, #tpu.memory_space<vmem>>, vector<128x128xbf16>
    %cst_34 = arith.constant dense<0.000000e+00> : vector<256x128xf32>
    %80 = tpu.matmul %78, %79, %cst_34 {dimension_numbers = #tpu.dot_dimension_numbers<[1], [0], [0], [1], [0, 0, 1, 1], [], []>} : vector<256x128xbf16>, vector<128x128xbf16>, vector<256x128xf32> -> vector<256x128xf32>
    %c0_35 = arith.constant 0 : index
    %c0_36 = arith.constant 0 : index
    %81 = vector.load %arg9[%c0_35, %c0_36] : memref<1x128xf32, #tpu.memory_space<vmem>>, vector<1x128xf32>
    %82 = vector.broadcast %81 : vector<1x128xf32> to vector<256x128xf32>
    %83 = arith.addf %80, %82 : vector<256x128xf32>
    %cst_37 = arith.constant 0.000000e+00 : f32
    %84 = vector.broadcast %cst_37 : f32 to vector<256x128xf32>
    %85 = arith.maximumf %83, %84 : vector<256x128xf32>
    %86 = arith.truncf %85 : vector<256x128xf32> to vector<256x128xbf16>
    %c0_38 = arith.constant 0 : index
    %c0_39 = arith.constant 0 : index
    %87 = vector.load %arg10[%c0_38, %c0_39] : memref<128x128xbf16, #tpu.memory_space<vmem>>, vector<128x128xbf16>
    %cst_40 = arith.constant dense<0.000000e+00> : vector<256x128xf32>
    %88 = tpu.matmul %86, %87, %cst_40 {dimension_numbers = #tpu.dot_dimension_numbers<[1], [0], [0], [1], [0, 0, 1, 1], [], []>} : vector<256x128xbf16>, vector<128x128xbf16>, vector<256x128xf32> -> vector<256x128xf32>
    %c0_41 = arith.constant 0 : index
    %c0_42 = arith.constant 0 : index
    %89 = vector.load %arg11[%c0_41, %c0_42] : memref<1x128xf32, #tpu.memory_space<vmem>>, vector<1x128xf32>
    %90 = vector.broadcast %89 : vector<1x128xf32> to vector<256x128xf32>
    %91 = arith.addf %88, %90 : vector<256x128xf32>
    %c0_43 = arith.constant 0 : index
    %c0_44 = arith.constant 0 : index
    %92 = vector.load %arg12[%c0_43, %c0_44] : memref<256x128xf32, #tpu.memory_space<vmem>>, vector<256x128xf32>
    tpu.vector_store %arg12[%c0_43, %c0_44], %91 {strides = array<i32>} : memref<256x128xf32, #tpu.memory_space<vmem>>, vector<256x128xf32>,
    return
  }
  func.func @transform_0(%arg0: i32) -> (i32, i32) {
    %c0_i32 = arith.constant 0 : i32
    %c0_i32_0 = arith.constant 0 : i32
    return %arg0, %c0_i32 : i32, i32
  }
  func.func @transform_1(%arg0: i32) -> (i32, i32) {
    %c0_i32 = arith.constant 0 : i32
    %c0_i32_0 = arith.constant 0 : i32
    %c0_i32_1 = arith.constant 0 : i32
    return %c0_i32, %c0_i32_0 : i32, i32
  }
  func.func @transform_2(%arg0: i32) -> (i32, i32) {
    %c0_i32 = arith.constant 0 : i32
    %c0_i32_0 = arith.constant 0 : i32
    %c0_i32_1 = arith.constant 0 : i32
    return %c0_i32, %c0_i32_0 : i32, i32
  }
  func.func @transform_3(%arg0: i32) -> (i32, i32) {
    %c0_i32 = arith.constant 0 : i32
    %c0_i32_0 = arith.constant 0 : i32
    %c0_i32_1 = arith.constant 0 : i32
    return %c0_i32, %c0_i32_0 : i32, i32
  }
  func.func @transform_4(%arg0: i32) -> (i32, i32) {
    %c0_i32 = arith.constant 0 : i32
    %c0_i32_0 = arith.constant 0 : i32
    %c0_i32_1 = arith.constant 0 : i32
    return %c0_i32, %c0_i32_0 : i32, i32
  }
  func.func @transform_5(%arg0: i32) -> (i32, i32) {
    %c0_i32 = arith.constant 0 : i32
    %c0_i32_0 = arith.constant 0 : i32
    %c0_i32_1 = arith.constant 0 : i32
    return %c0_i32, %c0_i32_0 : i32, i32
  }
  func.func @transform_6(%arg0: i32) -> (i32, i32) {
    %c0_i32 = arith.constant 0 : i32
    %c0_i32_0 = arith.constant 0 : i32
    %c0_i32_1 = arith.constant 0 : i32
    return %c0_i32, %c0_i32_0 : i32, i32
  }
  func.func @transform_7(%arg0: i32) -> (i32, i32) {
    %c0_i32 = arith.constant 0 : i32
    %c0_i32_0 = arith.constant 0 : i32
    %c0_i32_1 = arith.constant 0 : i32
    return %c0_i32, %c0_i32_0 : i32, i32
  }
  func.func @transform_8(%arg0: i32) -> (i32, i32) {
    %c0_i32 = arith.constant 0 : i32
    %c0_i32_0 = arith.constant 0 : i32
    %c0_i32_1 = arith.constant 0 : i32
    return %c0_i32, %c0_i32_0 : i32, i32
  }
  func.func @transform_9(%arg0: i32) -> (i32, i32) {
    %c0_i32 = arith.constant 0 : i32
    %c0_i32_0 = arith.constant 0 : i32
    %c0_i32_1 = arith.constant 0 : i32
    return %c0_i32, %c0_i32_0 : i32, i32
  }
  func.func @transform_10(%arg0: i32) -> (i32, i32) {
    %c0_i32 = arith.constant 0 : i32
    %c0_i32_0 = arith.constant 0 : i32
    %c0_i32_1 = arith.constant 0 : i32
    return %c0_i32, %c0_i32_0 : i32, i32
  }
  func.func @transform_11(%arg0: i32) -> (i32, i32) {
    %c0_i32 = arith.constant 0 : i32
    %c0_i32_0 = arith.constant 0 : i32
    return %arg0, %c0_i32 : i32, i32
  }
}

</mosaic_0001>

<bundles_post_ra>
// kernel: lenet_forward.1
= control target key start
LH: loop header
LB: loop body
LE: loop exit
PB: predicated region body
PF: predicated region fallthrough
CT: control target
= control target key end

     0   :  { %vm103_vm0 = vcmask 1046528   ;;  %vm235_vm1 = vcmask 1044480   ;;  %vm169_vm2 = vcmask 1045504   ;;  %s7253_s12 = smov 32   ;;  %s7254_s13 = smov 96   ;;  %vm301_vm3 = vcmask 1043456   ;;  %s11100_s0 = inlined_call_operand.vmem [shape: f32[256,32], index: 0, kind: input, shape index: {}]   ;;  %s11101_s1 = inlined_call_operand.vmem [shape: bf16[160,168], index: 1, kind: input, shape index: {}]   ;;  %s11102_s2 = inlined_call_operand.vmem [shape: f32[1,168], index: 2, kind: input, shape index: {}]   ;;  %s11103_s3 = inlined_call_operand.vmem [shape: bf16[420,160], index: 3, kind: input, shape index: {}]   ;;  %s11104_s4 = inlined_call_operand.vmem [shape: f32[1,160], index: 4, kind: input, shape index: {}]   ;;  %s11105_s5 = inlined_call_operand.vmem [shape: bf16[400,128], index: 5, kind: input, shape index: {}]   ;;  %s11106_s7 = inlined_call_operand.vmem [shape: bf16[128,128], index: 7, kind: input, shape index: {}]   ;;  %s11107_s6 = inlined_call_operand.vmem [shape: f32[1,128], index: 6, kind: input, shape index: {}]   ;;  %s11108_s9 = inlined_call_operand.vmem [shape: bf16[128,128], index: 9, kind: input, shape index: {}]   ;;  %s11109_s8 = inlined_call_operand.vmem [shape: f32[1,128], index: 8, kind: input, shape index: {}]   ;;  %s11110_s10 = inlined_call_operand.vmem [shape: f32[1,128], index: 10, kind: input, shape index: {}]   ;;  %s11111_s11 = inlined_call_operand.vmem [shape: f32[256,128], index: 11, kind: output, shape index: {}]  }
   0x1   :  { %v7328_v0 = vld [vmem:[%s11100_s0] sm:$0xff]  ;;  %v7333_v1 = vld [vmem:[%s11100_s0 + $0x8] sm:$0xff]  ;;  %v7338_v2 = vld [vmem:[%s11100_s0 + $0x10] sm:$0xff]  ;;  %s7255_s22 = smov 64   ;;  %vm689_vm4 = vcmask 261120   ;;  %vm722_vm5 = vcmask 523264  }
   0x2   :  { %v104_v3 = vrot.slane %v7328_v0, 1  ;;  %v105_v4 = vrot.slane %v7333_v1, 1  ;;  %v107_v5 = vrot.slane %v7338_v2, 1  ;;  %v236_v6 = vrot.slane %v7328_v0, 3  ;;  %v7347_v7 = vld [vmem:[%s11100_s0 + $0x18] sm:$0xff]  ;;  %v7356_v12 = vld [vmem:[%s11100_s0 + $0x20] sm:$0xff] }
   0x3   :  { %v237_v8 = vrot.slane %v7333_v1, 3  ;;  %v239_v9 = vrot.slane %v7338_v2, 3  ;;  %v170_v10 = vrot.slane %v7328_v0, 2  ;;  %v171_v11 = vrot.slane %v7333_v1, 2  ;;  %v7368_v21 = vld [vmem:[%s11100_s0 + $0x28] sm:$0xff]  ;;  %v7373_v22 = vld [vmem:[%s11100_s0 + $0x30] sm:$0xff] }
   0x4   :  { %v106_v13 = vsel %vm103_vm0, %v104_v3, %v105_v4  ;;  %v108_v14 = vsel %vm103_vm0, %v105_v4, %v107_v5  ;;  %v173_v15 = vrot.slane %v7338_v2, 2  ;;  %v109_v16 = vrot.slane %v7347_v7, 1  ;;  %v7390_v35 = vld [vmem:[%s11100_s0 + $0x38] sm:$0xff]  ;;  %v7398_v40 = vld [vmem:[%s11100_s0 + $0x40] sm:$0xff]  ;;  %v7436_v3 = vld [vmem:[%s11100_s0 + $0x48] sm:$0xff]  ;;  %s7257_s30 = smov 40  }
   0x5   :  { %v6227_v17 = vpack.i.bf16 %v108_v14, %v106_v13  ;;  %v238_v18 = vsel %vm235_vm1, %v236_v6, %v237_v8  ;;  %v240_v19 = vsel %vm235_vm1, %v237_v8, %v239_v9  ;;  %v172_v20 = vsel %vm169_vm2, %v170_v10, %v171_v11  ;;  %v7102_v43 = vld [vmem:[%s11101_s1 + $0x4] ss:$8 sps:$4 sm:$0xff]   ;;  %v7104_v44 = vld [vmem:[%s11101_s1] ss:$8 sps:$4 sm:$0xff]   ;;  %v7105_v49 = vld [vmem:[%s11101_s1 + $0x14] ss:$8 sps:$4 sm:$0xff]  }
   0x6   :  { %v6237_v23 = vpack.i.bf16 %v240_v19, %v238_v18  ;;  %v174_v24 = vsel %vm169_vm2, %v171_v11, %v173_v15  ;;  %v110_v25 = vsel %vm103_vm0, %v107_v5, %v109_v16  ;;  %v111_v26 = vrot.slane %v7356_v12, 1  ;;  %1000 = vmatprep.subr.bf16.mxu0 %v7102_v43  ;;  %v7107_v57 = vld [vmem:[%s11101_s1 + $0x10] ss:$8 sps:$4 sm:$0xff]   ;;  %v7108_v59 = vld [vmem:[%s11101_s1 + $0x24] ss:$8 sps:$4 sm:$0xff]   ;;  %s7258_s14 = smov 84  }
   0x7   :  { %6228 = vrot.lane.b32.xlu0 %v6227_v17, %s7253_s12  ;;  %v6232_v27 = vpack.i.bf16 %v174_v24, %v172_v20  ;;  %v175_v28 = vrot.slane %v7347_v7, 2  ;;  %v177_v29 = vrot.slane %v7356_v12, 2  ;;  %v241_v30 = vrot.slane %v7347_v7, 3  ;;  %1001 = vmatpush1.bf16.msra.mxu0 %v7104_v44  ;;  %v7442_v5 = vld [vmem:[%s11100_s0 + $0x50] sm:$0xff]  ;;  %v7110_v11 = vld [vmem:[%s11101_s1 + $0x20] ss:$8 sps:$4 sm:$0xff]  }
   0x8   :  { %6238 = vrot.lane.b32.xlu1 %v6237_v23, %s7254_s13  ;;  %v112_v31 = vsel %vm103_vm0, %v109_v16, %v111_v26  ;;  %v243_v32 = vrot.slane %v7356_v12, 3  ;;  %v113_v33 = vrot.slane %v7368_v21, 1  ;;  %v115_v34 = vrot.slane %v7373_v22, 1  ;;  %1002 = vmatprep.subr.bf16.mxu0 %v7105_v49  ;;  %v7111_v14 = vld [vmem:[%s11101_s1 + $0x34] ss:$8 sps:$4 sm:$0xff]   ;;  %s7259_s15 = smov 124  }
   0x9   :  { %v6242_v36 = vpack.i.bf16 %v112_v31, %v110_v25  ;;  %v176_v37 = vsel %vm169_vm2, %v173_v15, %v175_v28  ;;  %v178_v38 = vsel %vm169_vm2, %v175_v28, %v177_v29  ;;  %v242_v39 = vsel %vm235_vm1, %v239_v9, %v241_v30  ;;  %v7113_v28 = vld [vmem:[%s11101_s1 + $0x30] ss:$8 sps:$4 sm:$0xff]   ;;  %v7117_v44 = vld [vmem:[%s11101_s1 + $0x54] ss:$8 sps:$4 sm:$0xff]   ;;  %s7263_s17 = smov 112  }
   0xa   :  { %v6247_v41 = vpack.i.bf16 %v178_v38, %v176_v37  ;;  %v244_v42 = vsel %vm235_vm1, %v241_v30, %v243_v32  ;;  %v114_v45 = vsel %vm103_vm0, %v111_v26, %v113_v33  ;;  %v116_v46 = vsel %vm103_vm0, %v113_v33, %v115_v34  ;;  %v7467_v26 = vld [vmem:[%s11100_s0 + $0x58] sm:$0xff]  ;;  %v7114_v30 = vld [vmem:[%s11101_s1 + $0x44] ss:$8 sps:$4 sm:$0xff]  }
   0xb   :  { %6233 = vrot.lane.b32.xlu0 %v6232_v27, %s7255_s22  ;;  %v179_v47 = vrot.slane %v7368_v21, 2  ;;  %v181_v48 = vrot.slane %v7373_v22, 2  ;;  %v6252_v50 = vpack.i.bf16 %v244_v42, %v242_v39  ;;  %v245_v51 = vrot.slane %v7368_v21, 3  ;;  %1003 = vmatpush1.bf16.msra.mxu0 %v7107_v57  ;;  %v7472_v27 = vld [vmem:[%s11100_s0 + $0x60] sm:$0xff] }
   0xc   :  { %6243 = vrot.lane.b32.xlu1 %v6242_v36, %s7253_s12  ;;  %v247_v52 = vrot.slane %v7373_v22, 3  ;;  %v117_v55 = vrot.slane %v7390_v35, 1  ;;  %v119_v56 = vrot.slane %v7398_v40, 1  ;;  %v6257_v58 = vpack.i.bf16 %v116_v46, %v114_v45  ;;  %1004 = vmatprep.subr.bf16.mxu0 %v7108_v59  ;;  %v7116_v42 = vld [vmem:[%s11101_s1 + $0x40] ss:$8 sps:$4 sm:$0xff]  }
   0xd   :  { %v180_v53 = vsel %vm169_vm2, %v177_v29, %v179_v47  ;;  %v182_v54 = vsel %vm169_vm2, %v179_v47, %v181_v48  ;;  %v246_v60 = vsel %vm235_vm1, %v243_v32, %v245_v51  ;;  %v183_v62 = vrot.slane %v7390_v35, 2 }
   0xe   :  { %v248_v61 = vsel %vm235_vm1, %v245_v51, %v247_v52  ;;  %v185_v63 = vrot.slane %v7398_v40, 2  ;;  %v6262_v4 = vpack.i.bf16 %v182_v54, %v180_v53  ;;  %v118_v6 = vsel %vm103_vm0, %v115_v34, %v117_v55  ;;  %v7510_v51 = vld [vmem:[%s11100_s0 + $0x70] sm:$0xff] }
   0xf   :  { %6248 = vrot.lane.b32.xlu0 %v6247_v41, %s7255_s22  ;;  %v120_v8 = vsel %vm103_vm0, %v117_v55, %v119_v56  ;;  %v249_v9 = vrot.slane %v7390_v35, 3  ;;  %v251_v10 = vrot.slane %v7398_v40, 3  ;;  %v6267_v13 = vpack.i.bf16 %v248_v61, %v246_v60  ;;  %1005 = vmatpush1.bf16.msra.mxu0 %v7110_v11 }
  0x10   :  { %6253 = vrot.lane.b32.xlu1 %v6252_v50, %s7254_s13  ;;  %v184_v15 = vsel %vm169_vm2, %v181_v48, %v183_v62  ;;  %v186_v16 = vsel %vm169_vm2, %v183_v62, %v185_v63  ;;  %v121_v17 = vrot.slane %v7436_v3, 1  ;;  %v123_v18 = vrot.slane %v7442_v5, 1  ;;  %1006 = vmatprep.subr.bf16.mxu0 %v7111_v14  ;;  %v7505_v50 = vld [vmem:[%s11100_s0 + $0x68] sm:$0xff]  ;;  %v7543_v14 = vld [vmem:[%s11100_s0 + $0x80] sm:$0xff] }
  0x11   :  { %v6272_v19 = vpack.i.bf16 %v120_v8, %v118_v6  ;;  %v250_v20 = vsel %vm235_vm1, %v247_v52, %v249_v9  ;;  %v252_v23 = vsel %vm235_vm1, %v249_v9, %v251_v10  ;;  %v187_v24 = vrot.slane %v7436_v3, 2 }
  0x12   :  { %v189_v25 = vrot.slane %v7442_v5, 2  ;;  %v6277_v29 = vpack.i.bf16 %v186_v16, %v184_v15  ;;  %v122_v31 = vsel %vm103_vm0, %v119_v56, %v121_v17  ;;  %v124_v32 = vsel %vm103_vm0, %v121_v17, %v123_v18  ;;  %v7119_v56 = vld [vmem:[%s11101_s1 + $0x50] ss:$8 sps:$4 sm:$0xff]   ;;  %v7123_v15 = vld [vmem:[%s11101_s1 + $0x74] ss:$8 sps:$4 sm:$0xff]  }
  0x13   :  { %6258 = vrot.lane.b32.xlu0 %v6257_v58, %s7253_s12  ;;  %v253_v33 = vrot.slane %v7436_v3, 3  ;;  %v255_v34 = vrot.slane %v7442_v5, 3  ;;  %v6282_v36 = vpack.i.bf16 %v252_v23, %v250_v20  ;;  %v188_v37 = vsel %vm169_vm2, %v185_v63, %v187_v24  ;;  %1007 = vmatpush1.bf16.msra.mxu0 %v7113_v28  ;;  %v7120_v58 = vld [vmem:[%s11101_s1 + $0x64] ss:$8 sps:$4 sm:$0xff]  }
  0x14   :  { %6263 = vrot.lane.b32.xlu1 %v6262_v4, %s7255_s22  ;;  %v190_v38 = vsel %vm169_vm2, %v187_v24, %v189_v25  ;;  %v125_v39 = vrot.slane %v7467_v26, 1  ;;  %v127_v41 = vrot.slane %v7472_v27, 1  ;;  %v6287_v43 = vpack.i.bf16 %v124_v32, %v122_v31  ;;  %1008 = vmatprep.subr.bf16.mxu0 %v7114_v30  ;;  %v7126_v31 = vld [vmem:[%s11101_s1 + $0x84] ss:$8 sps:$4 sm:$0xff]  }
  0x15   :  { %v254_v45 = vsel %vm235_vm1, %v251_v10, %v253_v33  ;;  %v256_v46 = vsel %vm235_vm1, %v253_v33, %v255_v34  ;;  %v191_v47 = vrot.slane %v7467_v26, 2  ;;  %v193_v48 = vrot.slane %v7472_v27, 2  ;;  %v7122_v10 = vld [vmem:[%s11101_s1 + $0x60] ss:$8 sps:$4 sm:$0xff]  }
  0x16   :  { %v6292_v49 = vpack.i.bf16 %v190_v38, %v188_v37  ;;  %v126_v52 = vsel %vm103_vm0, %v123_v18, %v125_v39  ;;  %v128_v53 = vsel %vm103_vm0, %v125_v39, %v127_v41  ;;  %v257_v54 = vrot.slane %v7467_v26, 3  ;;  %v7573_v38 = vld [vmem:[%s11100_s0 + $0x88] sm:$0xff]  ;;  %v7578_v39 = vld [vmem:[%s11100_s0 + $0x90] sm:$0xff] }
  0x17   :  { %6268 = vrot.lane.b32.xlu0 %v6267_v13, %s7254_s13  ;;  %v259_v55 = vrot.slane %v7472_v27, 3  ;;  %1009 = vmatpush1.bf16.msra.mxu0 %v7116_v42  ;;  %v6297_v57 = vpack.i.bf16 %v256_v46, %v254_v45  ;;  %v192_v59 = vsel %vm169_vm2, %v189_v25, %v191_v47  ;;  %v194_v60 = vsel %vm169_vm2, %v191_v47, %v193_v48  ;;  %v7538_v13 = vld [vmem:[%s11100_s0 + $0x78] sm:$0xff]  ;;  %v7128_v45 = vld [vmem:[%s11101_s1 + $0x80] ss:$8 sps:$4 sm:$0xff]  }
  0x18   :  { %6273 = vrot.lane.b32.xlu1 %v6272_v19, %s7253_s12  ;;  %1010 = vmatprep.subr.bf16.mxu0 %v7117_v44  ;;  %v129_v61 = vrot.slane %v7505_v50, 1  ;;  %v131_v62 = vrot.slane %v7510_v51, 1  ;;  %v6302_v63 = vpack.i.bf16 %v128_v53, %v126_v52  ;;  %v258_v4 = vsel %vm235_vm1, %v255_v34, %v257_v54  ;;  %v7129_v47 = vld [vmem:[%s11101_s1 + $0x94] ss:$8 sps:$4 sm:$0xff]  }
  0x19   :  { %v260_v6 = vsel %vm235_vm1, %v257_v54, %v259_v55  ;;  %v195_v8 = vrot.slane %v7505_v50, 2  ;;  %v197_v9 = vrot.slane %v7510_v51, 2  ;;  %v6307_v11 = vpack.i.bf16 %v194_v60, %v192_v59  ;;  %v7131_v59 = vld [vmem:[%s11101_s1 + $0x90] ss:$8 sps:$4 sm:$0xff]  }
  0x1a   :  { %v130_v16 = vsel %vm103_vm0, %v127_v41, %v129_v61  ;;  %v132_v17 = vsel %vm103_vm0, %v129_v61, %v131_v62  ;;  %v261_v18 = vrot.slane %v7505_v50, 3  ;;  %v263_v19 = vrot.slane %v7510_v51, 3  ;;  %v7606_v61 = vld [vmem:[%s11100_s0 + $0x98] sm:$0xff] }
  0x1b   :  { %6278 = vrot.lane.b32.xlu0 %v6277_v29, %s7255_s22  ;;  %1011 = vmatpush1.bf16.msra.mxu0 %v7119_v56  ;;  %v6312_v20 = vpack.i.bf16 %v260_v6, %v258_v4  ;;  %v196_v23 = vsel %vm169_vm2, %v193_v48, %v195_v8  ;;  %v198_v24 = vsel %vm169_vm2, %v195_v8, %v197_v9  ;;  %v133_v25 = vrot.slane %v7538_v13, 1  ;;  %v7125_v29 = vld [vmem:[%s11101_s1 + $0x70] ss:$8 sps:$4 sm:$0xff]  }
  0x1c   :  { %6283 = vrot.lane.b32.xlu1 %v6282_v36, %s7254_s13  ;;  %1012 = vmatprep.subr.bf16.mxu0 %v7120_v58  ;;  %v135_v28 = vrot.slane %v7543_v14, 1  ;;  %v6317_v30 = vpack.i.bf16 %v132_v17, %v130_v16  ;;  %v262_v32 = vsel %vm235_vm1, %v259_v55, %v261_v18  ;;  %v264_v33 = vsel %vm235_vm1, %v261_v18, %v263_v19 }
  0x1d   :  { %v199_v34 = vrot.slane %v7538_v13, 2  ;;  %v201_v36 = vrot.slane %v7543_v14, 2  ;;  %v6322_v37 = vpack.i.bf16 %v198_v24, %v196_v23  ;;  %v134_v41 = vsel %vm103_vm0, %v131_v62, %v133_v25  ;;  %v7611_v62 = vld [vmem:[%s11100_s0 + $0xa0] sm:$0xff] }
  0x1e   :  { %v136_v42 = vsel %vm103_vm0, %v133_v25, %v135_v28  ;;  %v267_v44 = vrot.slane %v7543_v14, 3  ;;  %v6327_v46 = vpack.i.bf16 %v264_v33, %v262_v32  ;;  %v137_v52 = vrot.slane %v7573_v38, 1 }
  0x1f   :  { %6288 = vrot.lane.b32.xlu0 %v6287_v43, %s7253_s12  ;;  %1013 = vmatpush1.bf16.msra.mxu0 %v7122_v10  ;;  %v265_v43 = vrot.slane %v7538_v13, 3  ;;  %v200_v48 = vsel %vm169_vm2, %v197_v9, %v199_v34  ;;  %v139_v53 = vrot.slane %v7578_v39, 1  ;;  %v6332_v54 = vpack.i.bf16 %v136_v42, %v134_v41 }
  0x20   :  { %6293 = vrot.lane.b32.xlu1 %v6292_v49, %s7255_s22  ;;  %1014 = vmatprep.subr.bf16.mxu0 %v7123_v15  ;;  %v202_v49 = vsel %vm169_vm2, %v199_v34, %v201_v36  ;;  %v205_v58 = vrot.slane %v7578_v39, 2  ;;  %v269_v6 = vrot.slane %v7573_v38, 3  ;;  %v271_v8 = vrot.slane %v7578_v39, 3 }
  0x21   :  { %v266_v55 = vsel %vm235_vm1, %v263_v19, %v265_v43  ;;  %v268_v56 = vsel %vm235_vm1, %v265_v43, %v267_v44  ;;  %v6337_v60 = vpack.i.bf16 %v202_v49, %v200_v48  ;;  %v140_v4 = vsel %vm103_vm0, %v137_v52, %v139_v53 }
  0x22   :  { %v6342_v9 = vpack.i.bf16 %v268_v56, %v266_v55  ;;  %v141_v15 = vrot.slane %v7606_v61, 1  ;;  %v143_v16 = vrot.slane %v7611_v62, 1  ;;  %v270_v18 = vsel %vm235_vm1, %v267_v44, %v269_v6 }
  0x23   :  { %6298 = vrot.lane.b32.xlu0 %v6297_v57, %s7254_s13  ;;  %1015 = vmatpush1.bf16.msra.mxu0 %v7125_v29  ;;  %v203_v57 = vrot.slane %v7573_v38, 2  ;;  %v272_v19 = vsel %vm235_vm1, %v269_v6, %v271_v8  ;;  %v209_v23 = vrot.slane %v7611_v62, 2  ;;  %v273_v25 = vrot.slane %v7606_v61, 3  ;;  %v7634_v29 = vld [vmem:[%s11100_s0 + $0xa8] sm:$0xff] }
  0x24   :  { %6303 = vrot.lane.b32.xlu1 %v6302_v63, %s7253_s12  ;;  %1016 = vmatprep.subr.bf16.mxu0 %v7126_v31  ;;  %v138_v63 = vsel %vm103_vm0, %v135_v28, %v137_v52  ;;  %v275_v28 = vrot.slane %v7611_v62, 3  ;;  %v142_v31 = vsel %vm103_vm0, %v139_v53, %v141_v15  ;;  %v144_v32 = vsel %vm103_vm0, %v141_v15, %v143_v16  ;;  %v7663_v53 = vld [vmem:[%s11100_s0 + $0xc0] sm:$0xff] }
  0x25   :  { %v204_v10 = vsel %vm169_vm2, %v201_v36, %v203_v57  ;;  %v6347_v17 = vpack.i.bf16 %v140_v4, %v138_v63  ;;  %v6357_v33 = vpack.i.bf16 %v272_v19, %v270_v18  ;;  %v6362_v42 = vpack.i.bf16 %v144_v32, %v142_v31  ;;  %v7694_v31 = vld [vmem:[%s11100_s0 + $0xc8] sm:$0xff] }
  0x26   :  { %v274_v43 = vsel %vm235_vm1, %v271_v8, %v273_v25  ;;  %v276_v44 = vsel %vm235_vm1, %v273_v25, %v275_v28  ;;  %v302_v48 = vrot.slane %v7328_v0, 4  ;;  %v303_v49 = vrot.slane %v7333_v1, 4 }
  0x27   :  { %6308 = vrot.lane.b32.xlu0 %v6307_v11, %s7255_s22  ;;  %1017 = vmatpush1.bf16.msra.mxu0 %v7128_v45  ;;  %v206_v11 = vsel %vm169_vm2, %v203_v57, %v205_v58  ;;  %v211_v45 = vrot.slane %v7634_v29, 2  ;;  %v6372_v55 = vpack.i.bf16 %v276_v44, %v274_v43  ;;  %v217_v19 = vrot.slane %v7663_v53, 2 }
  0x28   :  { %6313 = vrot.lane.b32.xlu1 %v6312_v20, %s7254_s13  ;;  %1018 = vmatprep.subr.bf16.mxu0 %v7129_v47  ;;  %v207_v20 = vrot.slane %v7606_v61, 2  ;;  %v6352_v24 = vpack.i.bf16 %v206_v11, %v204_v10  ;;  %v7656_v47 = vld [vmem:[%s11100_s0 + $0xb8] sm:$0xff]  ;;  %v283_v25 = vrot.slane %v7663_v53, 3  ;;  %v219_v44 = vrot.slane %v7694_v31, 2 }
  0x29   :  { %v149_v63 = vrot.slane %v7656_v47, 1  ;;  %v212_v6 = vsel %vm169_vm2, %v209_v23, %v211_v45  ;;  %v215_v15 = vrot.slane %v7656_v47, 2  ;;  %vm755_vm6 = vcmask 785408  }
  0x2a   :  { %v208_v34 = vsel %vm169_vm2, %v205_v58, %v207_v20  ;;  %v210_v36 = vsel %vm169_vm2, %v207_v20, %v209_v23  ;;  %v304_v58 = vsel %vm301_vm3, %v302_v48, %v303_v49  ;;  %v7719_v48 = vld [vmem:[%s11100_s0 + $0xe0] sm:$0xff]  ;;  %vm1449_vm7 = vcmask 359424  }
  0x2b   :  { %6318 = vrot.lane.b32.xlu0 %v6317_v30, %s7253_s12  ;;  %1019 = vmatpush1.bf16.msra.mxu0 %v7131_v59  ;;  %v7639_v30 = vld [vmem:[%s11100_s0 + $0xb0] sm:$0xff]  ;;  %v6367_v52 = vpack.i.bf16 %v210_v36, %v208_v34  ;;  %v277_v59 = vrot.slane %v7634_v29, 3  ;;  %v218_v36 = vsel %vm169_vm2, %v215_v15, %v217_v19  ;;  %vm1868_vm8 = vcmask 1041408  }
  0x2c   :  { %6323 = vrot.lane.b32.xlu1 %v6322_v37, %s7255_s22  ;;  %v145_v37 = vrot.slane %v7634_v29, 1  ;;  %v147_v41 = vrot.slane %v7639_v30, 1  ;;  %vm2355_vm9 = vcmask 326656   ;;  %vm2322_vm10 = vcmask 687104  }
  0x2d   :  { %vm2388_vm11 = vcmask 1014784   ;;  %vm2848_vm12 = vcmask 293888   ;;  %vm2421_vm13 = vcmask 654336   ;;  %vm3545_vm14 = vcmask 392192  }
  0x2e   :  { %v146_v56 = vsel %vm103_vm0, %v143_v16, %v145_v37  ;;  %v148_v57 = vsel %vm103_vm0, %v145_v37, %v147_v41  ;;  %v150_v20 = vsel %vm103_vm0, %v147_v41, %v149_v63  ;;  %v153_v37 = vrot.slane %v7694_v31, 1 }
  0x2f   :  { %6328 = vrot.lane.b32.xlu0 %v6327_v46, %s7254_s13  ;;  %v213_v46 = vrot.slane %v7639_v30, 2  ;;  %v6377_v11 = vpack.i.bf16 %v148_v57, %v146_v56  ;;  %vm4345_vm15 = vcmask 916480  }
  0x30   :  { %6333 = vrot.lane.b32.xlu1 %v6332_v54, %s7253_s12  ;;  %v305_v54 = vrot.slane %v7338_v2, 4 }
  0x31   :  { %v214_v8 = vsel %vm169_vm2, %v211_v45, %v213_v46 }
  0x32   :  { %v306_v4 = vsel %vm301_vm3, %v303_v49, %v305_v54  ;;  %v6382_v16 = vpack.i.bf16 %v214_v8, %v212_v6 }
  0x33   :  { %6338 = vrot.lane.b32.xlu0 %v6337_v60, %s7255_s22  ;;  %v279_v60 = vrot.slane %v7639_v30, 3  ;;  %v789_v10 = vpack.c.bf16 %v306_v4, %v304_v58  ;;  %v159_v4 = vrot.slane %v7719_v48, 1 }
  0x34   :  { %6343 = vrot.lane.b32.xlu1 %v6342_v9, %s7254_s13  ;;  %v151_v9 = vrot.slane %v7663_v53, 1 }
  0x35   :  { %5668 = vmatprep.mubr.msk.bf16.mxu0 %vm689_vm4, %v789_v10  ;;  %v280_v18 = vsel %vm235_vm1, %v277_v59, %v279_v60 }
  0x36   :  { %v152_v23 = vsel %vm103_vm0, %v149_v63, %v151_v9  ;;  %v154_v56 = vsel %vm103_vm0, %v151_v9, %v153_v37 }
  0x37   :  { %6348 = vrot.lane.b32.xlu0 %v6347_v17, %s7253_s12  ;;  %v278_v17 = vsel %vm235_vm1, %v275_v28, %v277_v59  ;;  %v7699_v28 = vld [vmem:[%s11100_s0 + $0xd0] sm:$0xff]  ;;  %v6392_v34 = vpack.i.bf16 %v152_v23, %v150_v20  ;;  %v220_v59 = vsel %vm169_vm2, %v217_v19, %v219_v44  ;;  %v291_v20 = vrot.slane %v7719_v48, 3 }
  0x38   :  { %6353 = vrot.lane.b32.xlu1 %v6352_v24, %s7255_s22  ;;  %v281_v24 = vrot.slane %v7656_v47, 3  ;;  %v6387_v32 = vpack.i.bf16 %v280_v18, %v278_v17  ;;  %v155_v41 = vrot.slane %v7699_v28, 1  ;;  %v221_v45 = vrot.slane %v7699_v28, 2  ;;  %v7749_v23 = vld [vmem:[%s11100_s0 + $0xf0] sm:$0xff] }
  0x39   :  { %v287_v58 = vrot.slane %v7699_v28, 3 }
  0x3a   :  { %v284_v43 = vsel %vm235_vm1, %v281_v24, %v283_v25  ;;  %v156_v57 = vsel %vm103_vm0, %v153_v37, %v155_v41 }
  0x3b   :  { %6358 = vrot.lane.b32.xlu0 %v6357_v33, %s7254_s13  ;;  %v216_v33 = vsel %vm169_vm2, %v213_v46, %v215_v15  ;;  %v7714_v46 = vld [vmem:[%s11100_s0 + $0xd8] sm:$0xff]  ;;  %v6407_v6 = vpack.i.bf16 %v156_v57, %v154_v56  ;;  %v225_v15 = vrot.slane %v7719_v48, 2  ;;  %v295_v57 = vrot.slane %v7749_v23, 3 }
  0x3c   :  { %6363 = vrot.lane.b32.xlu1 %v6362_v42, %s7253_s12  ;;  %v282_v42 = vsel %vm235_vm1, %v279_v60, %v281_v24  ;;  %v6397_v49 = vpack.i.bf16 %v218_v36, %v216_v33  ;;  %v222_v60 = vsel %vm169_vm2, %v219_v44, %v221_v45  ;;  %v157_v63 = vrot.slane %v7714_v46, 1  ;;  %v7764_v44 = vld [vmem:[%s11100_s0 + $0xf8] sm:$0xff] }
  0x3d   :  { %v6412_v9 = vpack.i.bf16 %v222_v60, %v220_v59  ;;  %v289_v19 = vrot.slane %v7714_v46, 3  ;;  %v163_v36 = vrot.slane %v7749_v23, 1  ;;  %v165_v60 = vrot.slane %v7764_v44, 1 }
  0x3e   :  { %v158_v17 = vsel %vm103_vm0, %v155_v41, %v157_v63  ;;  %v160_v18 = vsel %vm103_vm0, %v157_v63, %v159_v4 }
  0x3f   :  { %6368 = vrot.lane.b32.xlu0 %v6367_v52, %s7255_s22  ;;  %v285_v52 = vrot.slane %v7694_v31, 3  ;;  %v290_v37 = vsel %vm235_vm1, %v287_v58, %v289_v19  ;;  %v292_v41 = vsel %vm235_vm1, %v289_v19, %v291_v20 }
  0x40   :  { %6373 = vrot.lane.b32.xlu1 %v6372_v55, %s7254_s13  ;;  %v6402_v55 = vpack.i.bf16 %v284_v43, %v282_v42  ;;  %v229_v43 = vrot.slane %v7749_v23, 2 }
  0x41   :  { %v286_v8 = vsel %vm235_vm1, %v283_v25, %v285_v52  ;;  %v288_v10 = vsel %vm235_vm1, %v285_v52, %v287_v58  ;;  %v6432_v52 = vpack.i.bf16 %v292_v41, %v290_v37  ;;  %v309_v37 = vrot.slane %v7356_v12, 4 }
  0x42   :  { %v6417_v24 = vpack.i.bf16 %v288_v10, %v286_v8  ;;  %v166_v10 = vsel %vm103_vm0, %v163_v36, %v165_v60 }
  0x43   :  { %6378 = vrot.lane.b32.xlu0 %v6377_v11, %s7253_s12  ;;  %v223_v11 = vrot.slane %v7714_v46, 2 }
  0x44   :  { %6383 = vrot.lane.b32.xlu1 %v6382_v16, %s7255_s22  ;;  %v7740_v16 = vld [vmem:[%s11100_s0 + $0xe8] sm:$0xff] }
  0x45   :  { %v161_v25 = vrot.slane %v7740_v16, 1  ;;  %v224_v33 = vsel %vm169_vm2, %v221_v45, %v223_v11  ;;  %v227_v42 = vrot.slane %v7740_v16, 2  ;;  %v293_v56 = vrot.slane %v7740_v16, 3 }
  0x47   :  { %6388 = vrot.lane.b32.xlu0 %v6387_v32, %s7254_s13  ;;  %v6422_v32 = vpack.i.bf16 %v160_v18, %v158_v17  ;;  %v228_v58 = vsel %vm169_vm2, %v225_v15, %v227_v42  ;;  %v230_v59 = vsel %vm169_vm2, %v227_v42, %v229_v43  ;;  %v296_v8 = vsel %vm235_vm1, %v293_v56, %v295_v57 }
  0x48   :  { %6393 = vrot.lane.b32.xlu1 %v6392_v34, %s7253_s12  ;;  %v226_v34 = vsel %vm169_vm2, %v223_v11, %v225_v15  ;;  %v168_v11 = vsel %vm103_vm0, %v165_v60, 0.0  ;;  %v297_v15 = vrot.slane %v7764_v44, 3 }
  0x49   :  { %v6427_v45 = vpack.i.bf16 %v226_v34, %v224_v33  ;;  %v6452_v18 = vpack.i.bf16 %v168_v11, %v166_v10 }
  0x4b   :  { %6398 = vrot.lane.b32.xlu0 %v6397_v49, %s7255_s22  ;;  %v162_v49 = vsel %vm103_vm0, %v159_v4, %v161_v25  ;;  %v6442_v4 = vpack.i.bf16 %v230_v59, %v228_v58 }
  0x4c   :  { %6403 = vrot.lane.b32.xlu1 %v6402_v55, %s7254_s13  ;;  %v164_v55 = vsel %vm103_vm0, %v161_v25, %v163_v36  ;;  %v300_v25 = vsel %vm235_vm1, %v297_v15, 0.0  ;;  %v307_v36 = vrot.slane %v7347_v7, 4 }
  0x4d   :  { %v6437_v63 = vpack.i.bf16 %v164_v55, %v162_v49 }
  0x4e   :  { %v308_v55 = vsel %vm301_vm3, %v305_v54, %v307_v36  ;;  %v311_v54 = vrot.slane %v7368_v21, 4 }
  0x4f   :  { %6408 = vrot.lane.b32.xlu0 %v6407_v6, %s7253_s12  ;;  %v294_v6 = vsel %vm235_vm1, %v291_v20, %v293_v56  ;;  %v310_v56 = vsel %vm301_vm3, %v307_v36, %v309_v37 }
  0x50   :  { %6413 = vrot.lane.b32.xlu1 %v6412_v9, %s7255_s22  ;;  %v231_v9 = vrot.slane %v7764_v44, 2  ;;  %v6447_v17 = vpack.i.bf16 %v296_v8, %v294_v6  ;;  %v791_v10 = vpack.c.bf16 %v310_v56, %v308_v55 }
  0x52   :  { %v232_v19 = vsel %vm169_vm2, %v229_v43, %v231_v9  ;;  %v234_v20 = vsel %vm169_vm2, %v231_v9, 0.0 }
  0x53   :  { %6418 = vrot.lane.b32.xlu0 %v6417_v24, %s7254_s13  ;;  %v298_v24 = vsel %vm235_vm1, %v295_v57, %v297_v15 }
  0x54   :  { %6423 = vrot.lane.b32.xlu1 %v6422_v32, %s7253_s12  ;;  %v6457_v32 = vpack.i.bf16 %v234_v20, %v232_v19  ;;  %v6462_v33 = vpack.i.bf16 %v300_v25, %v298_v24  ;;  %v313_v25 = vrot.slane %v7373_v22, 4 }
  0x57   :  { %6428 = vrot.lane.b32.xlu0 %v6427_v45, %s7255_s22 }
  0x58   :  { %6433 = vrot.lane.b32.xlu1 %v6432_v52, %s7254_s13 }
  0x5b   :  { %6438 = vrot.lane.b32.xlu0 %v6437_v63, %s7253_s12 }
  0x5c   :  { %6443 = vrot.lane.b32.xlu1 %v6442_v4, %s7255_s22 }
  0x5f   :  { %6448 = vrot.lane.b32.xlu0 %v6447_v17, %s7254_s13 }
  0x60   :  { %6453 = vrot.lane.b32.xlu1 %v6452_v18, %s7253_s12 }
  0x63   :  { %6458 = vrot.lane.b32.xlu0 %v6457_v32, %s7255_s22 }
  0x64   :  { %6463 = vrot.lane.b32.xlu1 %v6462_v33, %s7254_s13 }
  0x79   :  { %v6229_v34 = vpop.permute.xlu0 %6228 }
  0x7a   :  { %v6239_v41 = vpop.permute.xlu1 %6238  ;;  %v6231_v42 = vunpack.i.h.bf16 %v6229_v34  ;;  %v6230_v43 = vunpack.i.l.bf16 %v6229_v34 }
  0x7b   :  { %v6241_v45 = vunpack.i.h.bf16 %v6239_v41  ;;  %v6240_v49 = vunpack.i.l.bf16 %v6239_v41 }
  0x7c   :  { %v691_v60 = vsel %vm689_vm4, %v7333_v1, %v6231_v42  ;;  %v690_v63 = vsel %vm689_vm4, %v7328_v0, %v6230_v43  ;;  %v312_v43 = vsel %vm301_vm3, %v309_v37, %v311_v54  ;;  %v315_v37 = vrot.slane %v7390_v35, 4 }
  0x7d   :  { %v6234_v52 = vpop.permute.xlu0 %6233 }
  0x7e   :  { %v6236_v57 = vunpack.i.h.bf16 %v6234_v52  ;;  %v6235_v58 = vunpack.i.l.bf16 %v6234_v52  ;;  %v6244_v59 = vpop.permute.xlu1 %6243 }
  0x7f   :  { %v6246_v4 = vunpack.i.h.bf16 %v6244_v59  ;;  %v6245_v6 = vunpack.i.l.bf16 %v6244_v59 }
  0x80   :  { %v723_v8 = vsel %vm722_vm5, %v690_v63, %v6235_v58  ;;  %v724_v9 = vsel %vm722_vm5, %v691_v60, %v6236_v57 }
  0x81   :  { %v693_v11 = vsel %vm689_vm4, %v7347_v7, %v6246_v4  ;;  %v692_v15 = vsel %vm689_vm4, %v7338_v2, %v6245_v6  ;;  %v6249_v17 = vpop.permute.xlu0 %6248  ;;  %v756_v1 = vsel %vm755_vm6, %v723_v8, %v6240_v49  ;;  %v757_v0 = vsel %vm755_vm6, %v724_v9, %v6241_v45 }
  0x82   :  { %v6251_v18 = vunpack.i.h.bf16 %v6249_v17  ;;  %v6250_v19 = vunpack.i.l.bf16 %v6249_v17  ;;  %v6254_v20 = vpop.permute.xlu1 %6253  ;;  %v788_v24 = vpack.c.bf16 %v757_v0, %v756_v1  ;;  %v314_v45 = vsel %vm301_vm3, %v311_v54, %v313_v25 }
  0x83   :  { %v6256_v32 = vunpack.i.h.bf16 %v6254_v20  ;;  %v6255_v33 = vunpack.i.l.bf16 %v6254_v20  ;;  %v793_v60 = vpack.c.bf16 %v314_v45, %v312_v43  ;;  %v317_v6 = vrot.slane %v7398_v40, 4 }
  0x84   :  { %1033 = vmatmul.mubr.bf16.vlgmr.msra.gmra.mrb[0].mxu0 %v788_v24  ;;  %v725_v34 = vsel %vm722_vm5, %v692_v15, %v6250_v19  ;;  %v726_v7 = vsel %vm722_vm5, %v693_v11, %v6251_v18 }
  0x85   :  { %v6259_v36 = vpop.permute.xlu0 %6258  ;;  %5669 = vmatprep.mubr.msk.bf16.mxu0 %vm689_vm4, %v791_v10  ;;  %v758_v49 = vsel %vm755_vm6, %v725_v34, %v6255_v33  ;;  %v759_v52 = vsel %vm755_vm6, %v726_v7, %v6256_v32  ;;  %v318_v17 = vsel %vm301_vm3, %v315_v37, %v317_v6 }
  0x86   :  { %v6261_v2 = vunpack.i.h.bf16 %v6259_v36  ;;  %v6260_v41 = vunpack.i.l.bf16 %v6259_v36  ;;  %v6264_v42 = vpop.permute.xlu1 %6263  ;;  %v790_v63 = vpack.c.bf16 %v759_v52, %v758_v49  ;;  %v321_v36 = vrot.slane %v7442_v5, 4 }
  0x87   :  { %v6266_v55 = vunpack.i.h.bf16 %v6264_v42  ;;  %v6265_v56 = vunpack.i.l.bf16 %v6264_v42 }
  0x88   :  { %v695_v57 = vsel %vm689_vm4, %v7368_v21, %v6261_v2  ;;  %v694_v58 = vsel %vm689_vm4, %v7356_v12, %v6260_v41  ;;  %v316_v12 = vsel %vm301_vm3, %v313_v25, %v315_v37  ;;  %v319_v25 = vrot.slane %v7436_v3, 4 }
  0x89   :  { %v6269_v59 = vpop.permute.xlu0 %6268  ;;  %v727_v10 = vsel %vm722_vm5, %v694_v58, %v6265_v56  ;;  %v728_v54 = vsel %vm722_vm5, %v695_v57, %v6266_v55  ;;  %v795_v34 = vpack.c.bf16 %v318_v17, %v316_v12 }
  0x8a   :  { %v6274_v4 = vpop.permute.xlu1 %6273  ;;  %v6271_v8 = vunpack.i.h.bf16 %v6269_v59  ;;  %v6270_v9 = vunpack.i.l.bf16 %v6269_v59  ;;  %v320_v52 = vsel %vm301_vm3, %v317_v6, %v319_v25  ;;  %v322_v55 = vsel %vm301_vm3, %v319_v25, %v321_v36 }
  0x8b   :  { %v6276_v11 = vunpack.i.h.bf16 %v6274_v4  ;;  %v6275_v21 = vunpack.i.l.bf16 %v6274_v4  ;;  %v797_v4 = vpack.c.bf16 %v322_v55, %v320_v52  ;;  %v323_v6 = vrot.slane %v7467_v26, 4 }
  0x8c   :  { %1043 = vmatmul.mubr.bf16.gmra.mrb[4].mxu0 %v790_v63  ;;  %v760_v1 = vsel %vm755_vm6, %v727_v10, %v6270_v9  ;;  %v761_v0 = vsel %vm755_vm6, %v728_v54, %v6271_v8  ;;  %v325_v10 = vrot.slane %v7472_v27, 4  ;;  %v327_v25 = vrot.slane %v7505_v50, 4 }
  0x8d   :  { %v6279_v15 = vpop.permute.xlu0 %6278  ;;  %5670 = vmatprep.mubr.msk.bf16.mxu0 %vm689_vm4, %v793_v60  ;;  %v697_v24 = vsel %vm689_vm4, %v7390_v35, %v6276_v11  ;;  %v696_v32 = vsel %vm689_vm4, %v7373_v22, %v6275_v21  ;;  %v792_v7 = vpack.c.bf16 %v761_v0, %v760_v1 }
  0x8e   :  { %v6281_v18 = vunpack.i.h.bf16 %v6279_v15  ;;  %v6280_v19 = vunpack.i.l.bf16 %v6279_v15  ;;  %v6284_v20 = vpop.permute.xlu1 %6283  ;;  %v326_v17 = vsel %vm301_vm3, %v323_v6, %v325_v10 }
  0x8f   :  { %v6286_v2 = vunpack.i.h.bf16 %v6284_v20  ;;  %v6285_v41 = vunpack.i.l.bf16 %v6284_v20 }
  0x90   :  { %v729_v43 = vsel %vm722_vm5, %v696_v32, %v6280_v19  ;;  %v730_v45 = vsel %vm722_vm5, %v697_v24, %v6281_v18 }
  0x91   :  { %v6289_v33 = vpop.permute.xlu0 %6288  ;;  %v762_v56 = vsel %vm755_vm6, %v729_v43, %v6285_v41  ;;  %v763_v57 = vsel %vm755_vm6, %v730_v45, %v6286_v2 }
  0x92   :  { %v6294_v42 = vpop.permute.xlu1 %6293  ;;  %v6291_v49 = vunpack.i.h.bf16 %v6289_v33  ;;  %v6290_v35 = vunpack.i.l.bf16 %v6289_v33  ;;  %v794_v37 = vpack.c.bf16 %v763_v57, %v762_v56 }
  0x93   :  { %v6296_v58 = vunpack.i.h.bf16 %v6294_v42  ;;  %v6295_v59 = vunpack.i.l.bf16 %v6294_v42 }
  0x94   :  { %1053 = vmatmul.mubr.bf16.gmra.mrb[8].mxu0 %v792_v7  ;;  %v699_v60 = vsel %vm689_vm4, %v7436_v3, %v6291_v49  ;;  %v698_v63 = vsel %vm689_vm4, %v7398_v40, %v6290_v35  ;;  %v324_v40 = vsel %vm301_vm3, %v321_v36, %v323_v6  ;;  %v329_v36 = vrot.slane %v7510_v51, 4 }
  0x95   :  { %5671 = vmatprep.mubr.msk.bf16.mxu0 %vm689_vm4, %v795_v34  ;;  %v6299_v22 = vpop.permute.xlu0 %6298  ;;  %v731_v21 = vsel %vm722_vm5, %v698_v63, %v6295_v59  ;;  %v732_v15 = vsel %vm722_vm5, %v699_v60, %v6296_v58  ;;  %v799_v34 = vpack.c.bf16 %v326_v17, %v324_v40 }
  0x96   :  { %v6304_v8 = vpop.permute.xlu1 %6303  ;;  %v6301_v54 = vunpack.i.h.bf16 %v6299_v22  ;;  %v6300_v11 = vunpack.i.l.bf16 %v6299_v22  ;;  %v330_v22 = vsel %vm301_vm3, %v327_v25, %v329_v36 }
  0x97   :  { %v6306_v12 = vunpack.i.h.bf16 %v6304_v8  ;;  %v6305_v3 = vunpack.i.l.bf16 %v6304_v8  ;;  %v331_v8 = vrot.slane %v7538_v13, 4 }
  0x98   :  { %v764_v1 = vsel %vm755_vm6, %v731_v21, %v6300_v11  ;;  %v765_v0 = vsel %vm755_vm6, %v732_v15, %v6301_v54 }
  0x99   :  { %v6309_v9 = vpop.permute.xlu0 %6308  ;;  %v701_v32 = vsel %vm689_vm4, %v7467_v26, %v6306_v12  ;;  %v700_v33 = vsel %vm689_vm4, %v7442_v5, %v6305_v3  ;;  %v796_v7 = vpack.c.bf16 %v765_v0, %v764_v1  ;;  %v328_v5 = vsel %vm301_vm3, %v325_v10, %v327_v25 }
  0x9a   :  { %v6311_v18 = vunpack.i.h.bf16 %v6309_v9  ;;  %v6310_v19 = vunpack.i.l.bf16 %v6309_v9  ;;  %v6314_v20 = vpop.permute.xlu1 %6313  ;;  %v801_v63 = vpack.c.bf16 %v330_v22, %v328_v5  ;;  %v333_v9 = vrot.slane %v7543_v14, 4 }
  0x9b   :  { %v6316_v2 = vunpack.i.h.bf16 %v6314_v20  ;;  %v6315_v41 = vunpack.i.l.bf16 %v6314_v20  ;;  %v332_v3 = vsel %vm301_vm3, %v329_v36, %v331_v8 }
  0x9c   :  { %1063 = vmatmul.mubr.bf16.gmra.mrb[12].mxu0 %v794_v37  ;;  %v733_v43 = vsel %vm722_vm5, %v700_v33, %v6310_v19  ;;  %v734_v45 = vsel %vm722_vm5, %v701_v32, %v6311_v18  ;;  %v334_v40 = vsel %vm301_vm3, %v331_v8, %v333_v9  ;;  %v335_v33 = vrot.slane %v7573_v38, 4 }
  0x9d   :  { %5672 = vmatprep.mubr.msk.bf16.mxu0 %vm689_vm4, %v797_v4  ;;  %v6319_v24 = vpop.permute.xlu0 %6318  ;;  %v766_v52 = vsel %vm755_vm6, %v733_v43, %v6315_v41  ;;  %v767_v55 = vsel %vm755_vm6, %v734_v45, %v6316_v2  ;;  %v803_v32 = vpack.c.bf16 %v334_v40, %v332_v3 }
  0x9e   :  { %v6324_v42 = vpop.permute.xlu1 %6323  ;;  %v6321_v49 = vunpack.i.h.bf16 %v6319_v24  ;;  %v6320_v35 = vunpack.i.l.bf16 %v6319_v24  ;;  %v798_v4 = vpack.c.bf16 %v767_v55, %v766_v52 }
  0x9f   :  { %v6326_v56 = vunpack.i.h.bf16 %v6324_v42  ;;  %v6325_v57 = vunpack.i.l.bf16 %v6324_v42 }
  0xa0   :  { %v703_v59 = vsel %vm689_vm4, %v7505_v50, %v6321_v49  ;;  %v702_v60 = vsel %vm689_vm4, %v7472_v27, %v6320_v35  ;;  %v336_v35 = vsel %vm301_vm3, %v333_v9, %v335_v33 }
  0xa1   :  { %v6329_v26 = vpop.permute.xlu0 %6328  ;;  %v735_v21 = vsel %vm722_vm5, %v702_v60, %v6325_v57  ;;  %v736_v15 = vsel %vm722_vm5, %v703_v59, %v6326_v56 }
  0xa2   :  { %v6334_v58 = vpop.permute.xlu1 %6333  ;;  %v6331_v6 = vunpack.i.h.bf16 %v6329_v26  ;;  %v6330_v10 = vunpack.i.l.bf16 %v6329_v26 }
  0xa3   :  { %v6336_v54 = vunpack.i.h.bf16 %v6334_v58  ;;  %v6335_v11 = vunpack.i.l.bf16 %v6334_v58 }
  0xa4   :  { %1073 = vmatmul.mubr.bf16.gmra.mrb[16].mxu0 %v796_v7  ;;  %v768_v0 = vsel %vm755_vm6, %v735_v21, %v6330_v10  ;;  %v769_v18 = vsel %vm755_vm6, %v736_v15, %v6331_v6 }
  0xa5   :  { %5673 = vmatprep.mubr.msk.bf16.mxu0 %vm689_vm4, %v799_v34  ;;  %v6339_v37 = vpop.permute.xlu0 %6338  ;;  %v705_v17 = vsel %vm689_vm4, %v7538_v13, %v6336_v54  ;;  %v704_v1 = vsel %vm689_vm4, %v7510_v51, %v6335_v11  ;;  %v800_v34 = vpack.c.bf16 %v769_v18, %v768_v0  ;;  %v337_v13 = vrot.slane %v7578_v39, 4 }
  0xa6   :  { %v6341_v50 = vunpack.i.h.bf16 %v6339_v37  ;;  %v6340_v27 = vunpack.i.l.bf16 %v6339_v37  ;;  %v6344_v12 = vpop.permute.xlu1 %6343  ;;  %v341_v37 = vrot.slane %v7611_v62, 4 }
  0xa7   :  { %v6346_v20 = vunpack.i.h.bf16 %v6344_v12  ;;  %v6345_v24 = vunpack.i.l.bf16 %v6344_v12  ;;  %v338_v26 = vsel %vm301_vm3, %v335_v33, %v337_v13 }
  0xa8   :  { %v737_v7 = vsel %vm722_vm5, %v704_v1, %v6340_v27  ;;  %v738_v25 = vsel %vm722_vm5, %v705_v17, %v6341_v50  ;;  %v805_v58 = vpack.c.bf16 %v338_v26, %v336_v35 }
  0xa9   :  { %v6349_v19 = vpop.permute.xlu0 %6348  ;;  %v770_v41 = vsel %vm755_vm6, %v737_v7, %v6345_v24  ;;  %v771_v42 = vsel %vm755_vm6, %v738_v25, %v6346_v20  ;;  %v345_v20 = vrot.slane %v7639_v30, 4 }
  0xaa   :  { %v6354_v36 = vpop.permute.xlu1 %6353  ;;  %v6351_v2 = vunpack.i.h.bf16 %v6349_v19  ;;  %v6350_v51 = vunpack.i.l.bf16 %v6349_v19  ;;  %v802_v52 = vpack.c.bf16 %v771_v42, %v770_v41  ;;  %v343_v19 = vrot.slane %v7634_v29, 4 }
  0xab   :  { %v6356_v43 = vunpack.i.h.bf16 %v6354_v36  ;;  %v6355_v45 = vunpack.i.l.bf16 %v6354_v36 }
  0xac   :  { %1083 = vmatmul.mubr.bf16.gmra.mrb[20].mxu0 %v798_v4  ;;  %v707_v5 = vsel %vm689_vm4, %v7573_v38, %v6351_v2  ;;  %v706_v22 = vsel %vm689_vm4, %v7543_v14, %v6350_v51  ;;  %v339_v4 = vrot.slane %v7606_v61, 4  ;;  %v344_v25 = vsel %vm301_vm3, %v341_v37, %v343_v19 }
  0xad   :  { %5674 = vmatprep.mubr.msk.bf16.mxu0 %vm689_vm4, %v801_v63  ;;  %v6359_v49 = vpop.permute.xlu0 %6358  ;;  %v739_v59 = vsel %vm722_vm5, %v706_v22, %v6355_v45  ;;  %v740_v60 = vsel %vm722_vm5, %v707_v5, %v6356_v43  ;;  %v346_v36 = vsel %vm301_vm3, %v343_v19, %v345_v20  ;;  %v347_v5 = vrot.slane %v7656_v47, 4 }
  0xae   :  { %v6364_v55 = vpop.permute.xlu1 %6363  ;;  %v6361_v56 = vunpack.i.h.bf16 %v6359_v49  ;;  %v6360_v57 = vunpack.i.l.bf16 %v6359_v49  ;;  %v340_v11 = vsel %vm301_vm3, %v337_v13, %v339_v4  ;;  %v342_v21 = vsel %vm301_vm3, %v339_v4, %v341_v37 }
  0xaf   :  { %v6366_v8 = vunpack.i.h.bf16 %v6364_v55  ;;  %v6365_v9 = vunpack.i.l.bf16 %v6364_v55  ;;  %v807_v17 = vpack.c.bf16 %v342_v21, %v340_v11  ;;  %v809_v45 = vpack.c.bf16 %v346_v36, %v344_v25 }
  0xb0   :  { %v772_v14 = vsel %vm755_vm6, %v739_v59, %v6360_v57  ;;  %v773_v38 = vsel %vm755_vm6, %v740_v60, %v6361_v56  ;;  %v349_v22 = vrot.slane %v7663_v53, 4  ;;  %v348_v59 = vsel %vm301_vm3, %v345_v20, %v347_v5 }
  0xb1   :  { %v6369_v63 = vpop.permute.xlu0 %6368  ;;  %v709_v15 = vsel %vm689_vm4, %v7606_v61, %v6366_v8  ;;  %v708_v50 = vsel %vm689_vm4, %v7578_v39, %v6365_v9  ;;  %v804_v27 = vpack.c.bf16 %v773_v38, %v772_v14  ;;  %v351_v11 = vrot.slane %v7694_v31, 4 }
  0xb2   :  { %v6371_v6 = vunpack.i.h.bf16 %v6369_v63  ;;  %v6370_v10 = vunpack.i.l.bf16 %v6369_v63  ;;  %v6374_v54 = vpop.permute.xlu1 %6373  ;;  %v350_v60 = vsel %vm301_vm3, %v347_v5, %v349_v22  ;;  %v353_v21 = vrot.slane %v7699_v28, 4 }
  0xb3   :  { %v6376_v3 = vunpack.i.h.bf16 %v6374_v54  ;;  %v6375_v40 = vunpack.i.l.bf16 %v6374_v54  ;;  %v811_v38 = vpack.c.bf16 %v350_v60, %v348_v59 }
  0xb4   :  { %1093 = vmatmul.mubr.bf16.gmra.mrb[24].mxu0 %v800_v34  ;;  %v741_v1 = vsel %vm722_vm5, %v708_v50, %v6370_v10  ;;  %v742_v0 = vsel %vm722_vm5, %v709_v15, %v6371_v6 }
  0xb5   :  { %5675 = vmatprep.mubr.msk.bf16.mxu0 %vm689_vm4, %v803_v32  ;;  %v6379_v12 = vpop.permute.xlu0 %6378  ;;  %v774_v39 = vsel %vm755_vm6, %v741_v1, %v6375_v40  ;;  %v775_v61 = vsel %vm755_vm6, %v742_v0, %v6376_v3  ;;  %v352_v40 = vsel %vm301_vm3, %v349_v22, %v351_v11 }
  0xb6   :  { %v6384_v18 = vpop.permute.xlu1 %6383  ;;  %v6381_v24 = vunpack.i.h.bf16 %v6379_v12  ;;  %v6380_v32 = vunpack.i.l.bf16 %v6379_v12  ;;  %v806_v51 = vpack.c.bf16 %v775_v61, %v774_v39 }
  0xb7   :  { %v6386_v33 = vunpack.i.h.bf16 %v6384_v18  ;;  %v6385_v34 = vunpack.i.l.bf16 %v6384_v18 }
  0xb8   :  { %v711_v13 = vsel %vm689_vm4, %v7634_v29, %v6381_v24  ;;  %v710_v2 = vsel %vm689_vm4, %v7611_v62, %v6380_v32 }
  0xb9   :  { %v6389_v7 = vpop.permute.xlu0 %6388  ;;  %v743_v49 = vsel %vm722_vm5, %v710_v2, %v6385_v34  ;;  %v744_v35 = vsel %vm722_vm5, %v711_v13, %v6386_v33  ;;  %v355_v34 = vrot.slane %v7714_v46, 4 }
  0xba   :  { %v6394_v41 = vpop.permute.xlu1 %6393  ;;  %v6391_v42 = vunpack.i.h.bf16 %v6389_v7  ;;  %v6390_v43 = vunpack.i.l.bf16 %v6389_v7  ;;  %v357_v7 = vrot.slane %v7719_v48, 4 }
  0xbb   :  { %v6395_v55 = vunpack.i.l.bf16 %v6394_v41 }
  0xbc   :  { %1103 = vmatmul.mubr.bf16.gmra.mrb[28].mxu0 %v802_v52  ;;  %v6396_v52 = vunpack.i.h.bf16 %v6394_v41  ;;  %v776_v62 = vsel %vm755_vm6, %v743_v49, %v6390_v43  ;;  %v777_v29 = vsel %vm755_vm6, %v744_v35, %v6391_v42  ;;  %v356_v41 = vsel %vm301_vm3, %v353_v21, %v355_v34 }
  0xbd   :  { %5676 = vmatprep.mubr.msk.bf16.mxu0 %vm689_vm4, %v805_v58  ;;  %v6399_v26 = vpop.permute.xlu0 %6398  ;;  %v712_v4 = vsel %vm689_vm4, %v7639_v30, %v6395_v55  ;;  %v808_v37 = vpack.c.bf16 %v777_v29, %v776_v62  ;;  %v358_v42 = vsel %vm301_vm3, %v355_v34, %v357_v7  ;;  %v359_v62 = vrot.slane %v7740_v16, 4 }
  0xbe   :  { %v6401_v56 = vunpack.i.h.bf16 %v6399_v26  ;;  %v6400_v57 = vunpack.i.l.bf16 %v6399_v26  ;;  %v6404_v58 = vpop.permute.xlu1 %6403  ;;  %v713_v63 = vsel %vm689_vm4, %v7656_v47, %v6396_v52  ;;  %v815_v22 = vpack.c.bf16 %v358_v42, %v356_v41 }
  0xbf   :  { %v6406_v9 = vunpack.i.h.bf16 %v6404_v58  ;;  %v6405_v14 = vunpack.i.l.bf16 %v6404_v58  ;;  %v361_v29 = vrot.slane %v7749_v23, 4 }
  0xc0   :  { %v745_v6 = vsel %vm722_vm5, %v712_v4, %v6400_v57  ;;  %v746_v10 = vsel %vm722_vm5, %v713_v63, %v6401_v56  ;;  %v360_v4 = vsel %vm301_vm3, %v357_v7, %v359_v62 }
  0xc1   :  { %v6409_v8 = vpop.permute.xlu0 %6408  ;;  %v778_v30 = vsel %vm755_vm6, %v745_v6, %v6405_v14  ;;  %v779_v47 = vsel %vm755_vm6, %v746_v10, %v6406_v9 }
  0xc2   :  { %v6414_v54 = vpop.permute.xlu1 %6413  ;;  %v6411_v15 = vunpack.i.h.bf16 %v6409_v8  ;;  %v6410_v50 = vunpack.i.l.bf16 %v6409_v8  ;;  %v810_v18 = vpack.c.bf16 %v779_v47, %v778_v30 }
  0xc3   :  { %v6415_v12 = vunpack.i.l.bf16 %v6414_v54 }
  0xc4   :  { %1113 = vmatmul.mubr.bf16.gmra.mrb[32].mxu0 %v804_v27  ;;  %v6416_v27 = vunpack.i.h.bf16 %v6414_v54  ;;  %v715_v1 = vsel %vm689_vm4, %v7694_v31, %v6411_v15  ;;  %v714_v0 = vsel %vm689_vm4, %v7663_v53, %v6410_v50  ;;  %v363_v15 = vrot.slane %v7764_v44, 4 }
  0xc5   :  { %5677 = vmatprep.mubr.msk.bf16.mxu0 %vm689_vm4, %v807_v17  ;;  %v6419_v3 = vpop.permute.xlu0 %6418  ;;  %v354_v17 = vsel %vm301_vm3, %v351_v11, %v353_v21  ;;  %v747_v39 = vsel %vm722_vm5, %v714_v0, %v6415_v12 }
  0xc6   :  { %v6424_v19 = vpop.permute.xlu1 %6423  ;;  %v6421_v20 = vunpack.i.h.bf16 %v6419_v3  ;;  %v6420_v24 = vunpack.i.l.bf16 %v6419_v3  ;;  %v813_v32 = vpack.c.bf16 %v354_v17, %v352_v40  ;;  %v748_v61 = vsel %vm722_vm5, %v715_v1, %v6416_v27 }
  0xc7   :  { %v6426_v25 = vunpack.i.h.bf16 %v6424_v19  ;;  %v6425_v36 = vunpack.i.l.bf16 %v6424_v19  ;;  %v364_v40 = vsel %vm301_vm3, %v361_v29, %v363_v15  ;;  %v397_v17 = vsel %vm301_vm3, %v363_v15, 0.0 }
  0xc8   :  { %v780_v53 = vsel %vm755_vm6, %v747_v39, %v6420_v24  ;;  %v781_v31 = vsel %vm755_vm6, %v748_v61, %v6421_v20  ;;  %v819_v24 = vpack.c.bf16 %v397_v17, %v364_v40 }
  0xc9   :  { %v6429_v33 = vpop.permute.xlu0 %6428  ;;  %v717_v43 = vsel %vm689_vm4, %v7714_v46, %v6426_v25  ;;  %v812_v49 = vpack.c.bf16 %v781_v31, %v780_v53  ;;  %v840_v25 = vld [vmem:[%s11102_s2] sm:$0x3]  ;;  %s7256_s2 = smov 44  }
  0xca   :  { %v6431_v13 = vunpack.i.h.bf16 %v6429_v33  ;;  %v6430_v2 = vunpack.i.l.bf16 %v6429_v33 }
  0xcc   :  { %1123 = vmatmul.mubr.bf16.gmra.mrb[36].mxu0 %v806_v51  ;;  %v6434_v51 = vpop.permute.xlu1 %6433  ;;  %v750_v55 = vsel %vm722_vm5, %v717_v43, %v6431_v13 }
  0xcd   :  { %5678 = vmatprep.mubr.msk.bf16.mxu0 %vm689_vm4, %v809_v45  ;;  %v716_v45 = vsel %vm689_vm4, %v7699_v28, %v6425_v36  ;;  %v6439_v35 = vpop.permute.xlu0 %6438  ;;  %v6436_v26 = vunpack.i.h.bf16 %v6434_v51  ;;  %v6435_v5 = vunpack.i.l.bf16 %v6434_v51 }
  0xce   :  { %v749_v52 = vsel %vm722_vm5, %v716_v45, %v6430_v2  ;;  %v6441_v56 = vunpack.i.h.bf16 %v6439_v35  ;;  %v6440_v57 = vunpack.i.l.bf16 %v6439_v35 }
  0xcf   :  { %v782_v28 = vsel %vm755_vm6, %v749_v52, %v6435_v5  ;;  %v783_v46 = vsel %vm755_vm6, %v750_v55, %v6436_v26 }
  0xd0   :  { %v6444_v58 = vpop.permute.xlu1 %6443  ;;  %v719_v8 = vsel %vm689_vm4, %v7740_v16, %v6441_v56  ;;  %v718_v9 = vsel %vm689_vm4, %v7719_v48, %v6440_v57  ;;  %v814_v14 = vpack.c.bf16 %v783_v46, %v782_v28 }
  0xd1   :  { %v6446_v59 = vunpack.i.h.bf16 %v6444_v58  ;;  %v6445_v60 = vunpack.i.l.bf16 %v6444_v58  ;;  %v6449_v63 = vpop.permute.xlu0 %6448 }
  0xd2   :  { %v6451_v6 = vunpack.i.h.bf16 %v6449_v63  ;;  %v6450_v10 = vunpack.i.l.bf16 %v6449_v63 }
  0xd3   :  { %v751_v11 = vsel %vm722_vm5, %v718_v9, %v6445_v60  ;;  %v752_v21 = vsel %vm722_vm5, %v719_v8, %v6446_v59 }
  0xd4   :  { %1133 = vmatmul.mubr.bf16.gmra.mrb[40].mxu0 %v808_v37  ;;  %v362_v37 = vsel %vm301_vm3, %v359_v62, %v361_v29  ;;  %v784_v16 = vsel %vm755_vm6, %v751_v11, %v6450_v10  ;;  %v785_v48 = vsel %vm755_vm6, %v752_v21, %v6451_v6 }
  0xd5   :  { %5679 = vmatprep.mubr.msk.bf16.mxu0 %vm689_vm4, %v811_v38  ;;  %v6454_v38 = vpop.permute.xlu1 %6453  ;;  %v817_v54 = vpack.c.bf16 %v362_v37, %v360_v4  ;;  %v6459_v47 = vpop.permute.xlu0 %6458 }
  0xd6   :  { %v6456_v50 = vunpack.i.h.bf16 %v6454_v38  ;;  %v6455_v30 = vunpack.i.l.bf16 %v6454_v38  ;;  %v6461_v27 = vunpack.i.h.bf16 %v6459_v47  ;;  %v6460_v12 = vunpack.i.l.bf16 %v6459_v47 }
  0xd8   :  { %v721_v1 = vsel %vm689_vm4, %v7764_v44, %v6456_v50  ;;  %v720_v0 = vsel %vm689_vm4, %v7749_v23, %v6455_v30  ;;  %v842_v44 = vlaneseq }
  0xd9   :  { %v6464_v3 = vpop.permute.xlu1 %6463  ;;  %v754_v39 = vsel %vm722_vm5, %v721_v1, %v6461_v27 }
  0xda   :  { %v6466_v19 = vunpack.i.h.bf16 %v6464_v3  ;;  %v6465_v20 = vunpack.i.l.bf16 %v6464_v3  ;;  %v7997_v7 = vshrl.u32 %v842_v44, 7 }
  0xdc   :  { %1143 = vmatmul.mubr.bf16.gmra.mrb[44].mxu0 %v810_v18  ;;  %v816_v18 = vpack.c.bf16 %v785_v48, %v784_v16  ;;  %v787_v33 = vsel %vm755_vm6, %v754_v39, %v6466_v19  ;;  %11182 = vst [vmem:[#allocation2_spill] sm:$0xff] %v7997_v7  ;;  %v11113_v23 = vsub.s32 0, %v7997_v7  ;;  %v11112_v36 = vsub.s32 1, %v7997_v7 }
  0xdd   :  { %5680 = vmatprep.mubr.msk.bf16.mxu0 %vm689_vm4, %v813_v32  ;;  %v753_v32 = vsel %vm722_vm5, %v720_v0, %v6460_v12 }
  0xde   :  { %v786_v61 = vsel %vm755_vm6, %v753_v32, %v6465_v20  ;;  %v8006_v53 = vrot.slane %v840_v25, %v11113_v23  ;;  %v8010_v31 = vrot.slane %v840_v25, %v11112_v36 }
  0xdf   :  { %v818_v34 = vpack.c.bf16 %v787_v33, %v786_v61 }
  0xe4   :  { %1153 = vmatmul.mubr.bf16.gmra.mrb[48].mxu0 %v812_v49 }
  0xe5   :  { %5681 = vmatprep.mubr.msk.bf16.mxu0 %vm689_vm4, %v815_v22 }
  0xec   :  { %1163 = vmatmul.mubr.bf16.gmra.mrb[52].mxu0 %v814_v14 }
  0xed   :  { %5682 = vmatprep.mubr.msk.bf16.mxu0 %vm689_vm4, %v817_v54 }
  0xf4   :  { %1173 = vmatmul.mubr.bf16.gmra.mrb[56].mxu0 %v816_v18 }
  0xf5   :  { %5683 = vmatprep.mubr.msk.bf16.mxu0 %vm689_vm4, %v819_v24 }
  0xfc   :  { %1183 = vmatmul.mubr.bf16.gmra.mrb[60].mxu0 %v818_v34 }
 0x157   :  { %v1034_v13 = vpop.f32.mrb[0].mxu0 }
 0x158   :  { %v8013_v2 = vadd.f32 %v1034_v13, %v8006_v53  ;;  %v1036_v51 = vpop.f32.mrb[1].mxu0 }
 0x159   :  { %v1037_v41 = vadd.f32 %v1036_v51, %v8010_v31  ;;  %v1038_v42 = vpop.f32.mrb[2].mxu0 }
 0x15a   :  { %v1193_v43 = vmax.f32 %v8013_v2, 0.0  ;;  %v8018_v45 = vadd.f32 %v1038_v42, %v8006_v53  ;;  %v1040_v49 = vpop.f32.mrb[3].mxu0 }
 0x15b   :  { %v1194_v35 = vmax.f32 %v1037_v41, 0.0  ;;  %v1041_v26 = vadd.f32 %v1040_v49, %v8010_v31 }
 0x15c   :  { %1321 = vrot.lane.b32.xlu0 %v1193_v43, %s7256_s2  ;;  %v1195_v5 = vmax.f32 %v8018_v45, 0.0 }
 0x15d   :  { %1323 = vrot.lane.b32.xlu1 %v1194_v35, %s7256_s2  ;;  %v1196_v22 = vmax.f32 %v1041_v26, 0.0 }
 0x15f   :  { %v1044_v52 = vpop.f32.mrb[4].mxu0 }
 0x160   :  { %v8027_v55 = vadd.f32 %v1044_v52, %v8006_v53  ;;  %v1046_v62 = vpop.f32.mrb[5].mxu0  ;;  %1325 = vrot.lane.b32.xlu0 %v1195_v5, %s7256_s2 }
 0x161   :  { %v1047_v29 = vadd.f32 %v1046_v62, %v8010_v31  ;;  %v1048_v56 = vpop.f32.mrb[6].mxu0  ;;  %1327 = vrot.lane.b32.xlu1 %v1196_v22, %s7256_s2 }
 0x162   :  { %v1197_v57 = vmax.f32 %v8027_v55, 0.0  ;;  %v8036_v58 = vadd.f32 %v1048_v56, %v8006_v53  ;;  %v1050_v28 = vpop.f32.mrb[7].mxu0  ;;  %v7176_v55 = vld [vmem:[%s11103_s3 + $0xe0] ss:$8 sps:$4 sm:$0xff]  }
 0x163   :  { %v1198_v46 = vmax.f32 %v1047_v29, 0.0  ;;  %v1051_v59 = vadd.f32 %v1050_v28, %v8010_v31 }
 0x164   :  { %1329 = vrot.lane.b32.xlu0 %v1197_v57, %s7256_s2  ;;  %v1199_v60 = vmax.f32 %v8036_v58, 0.0  ;;  %v7177_v58 = vld [vmem:[%s11103_s3 + $0xf4] ss:$8 sps:$4 sm:$0xff]  }
 0x165   :  { %1331 = vrot.lane.b32.xlu1 %v1198_v46, %s7256_s2  ;;  %v1200_v63 = vmax.f32 %v1051_v59, 0.0 }
 0x167   :  { %v1054_v4 = vpop.f32.mrb[8].mxu0 }
 0x168   :  { %v8045_v37 = vadd.f32 %v1054_v4, %v8006_v53  ;;  %v1056_v8 = vpop.f32.mrb[9].mxu0  ;;  %1333 = vrot.lane.b32.xlu0 %v1199_v60, %s7256_s2 }
 0x169   :  { %v1057_v9 = vadd.f32 %v1056_v8, %v8010_v31  ;;  %v1058_v14 = vpop.f32.mrb[10].mxu0  ;;  %1335 = vrot.lane.b32.xlu1 %v1200_v63, %s7256_s2 }
 0x16a   :  { %v1201_v38 = vmax.f32 %v8045_v37, 0.0  ;;  %v8054_v6 = vadd.f32 %v1058_v14, %v8006_v53  ;;  %v1060_v10 = vpop.f32.mrb[11].mxu0 }
 0x16b   :  { %v1202_v54 = vmax.f32 %v1057_v9, 0.0  ;;  %v1061_v11 = vadd.f32 %v1060_v10, %v8010_v31 }
 0x16c   :  { %1337 = vrot.lane.b32.xlu0 %v1201_v38, %s7256_s2  ;;  %v1203_v21 = vmax.f32 %v8054_v6, 0.0 }
 0x16d   :  { %1339 = vrot.lane.b32.xlu1 %v1202_v54, %s7256_s2  ;;  %v1204_v15 = vmax.f32 %v1061_v11, 0.0 }
 0x16f   :  { %v1064_v50 = vpop.f32.mrb[12].mxu0 }
 0x170   :  { %v8063_v30 = vadd.f32 %v1064_v50, %v8006_v53  ;;  %v1066_v47 = vpop.f32.mrb[13].mxu0  ;;  %1341 = vrot.lane.b32.xlu0 %v1203_v21, %s7256_s2 }
 0x171   :  { %v1067_v16 = vadd.f32 %v1066_v47, %v8010_v31  ;;  %v1068_v48 = vpop.f32.mrb[14].mxu0  ;;  %1343 = vrot.lane.b32.xlu1 %v1204_v15, %s7256_s2 }
 0x172   :  { %v1205_v27 = vmax.f32 %v8063_v30, 0.0  ;;  %v8072_v12 = vadd.f32 %v1068_v48, %v8006_v53  ;;  %v1070_v3 = vpop.f32.mrb[15].mxu0 }
 0x173   :  { %v1206_v40 = vmax.f32 %v1067_v16, 0.0  ;;  %v1071_v17 = vadd.f32 %v1070_v3, %v8010_v31 }
 0x174   :  { %1345 = vrot.lane.b32.xlu0 %v1205_v27, %s7256_s2  ;;  %v1207_v1 = vmax.f32 %v8072_v12, 0.0 }
 0x175   :  { %1347 = vrot.lane.b32.xlu1 %v1206_v40, %s7256_s2  ;;  %v1208_v0 = vmax.f32 %v1071_v17, 0.0 }
 0x177   :  { %v1074_v18 = vpop.f32.mrb[16].mxu0 }
 0x178   :  { %v8081_v19 = vadd.f32 %v1074_v18, %v8006_v53  ;;  %v1076_v20 = vpop.f32.mrb[17].mxu0  ;;  %1349 = vrot.lane.b32.xlu0 %v1207_v1, %s7256_s2 }
 0x179   :  { %v1077_v24 = vadd.f32 %v1076_v20, %v8010_v31  ;;  %v1078_v32 = vpop.f32.mrb[18].mxu0  ;;  %1351 = vrot.lane.b32.xlu1 %v1208_v0, %s7256_s2 }
 0x17a   :  { %v1209_v39 = vmax.f32 %v8081_v19, 0.0  ;;  %v8090_v61 = vadd.f32 %v1078_v32, %v8006_v53  ;;  %v1080_v33 = vpop.f32.mrb[19].mxu0 }
 0x17b   :  { %v1210_v34 = vmax.f32 %v1077_v24, 0.0  ;;  %v1081_v44 = vadd.f32 %v1080_v33, %v8010_v31 }
 0x17c   :  { %1353 = vrot.lane.b32.xlu0 %v1209_v39, %s7256_s2  ;;  %v11133_v25 = vmax.f32 %v8090_v61, 0.0 }
 0x17d   :  { %1355 = vrot.lane.b32.xlu1 %v1210_v34, %s7256_s2  ;;  %v1212_v13 = vmax.f32 %v1081_v44, 0.0 }
 0x17f   :  { %v1084_v51 = vpop.f32.mrb[20].mxu0 }
 0x180   :  { %v8099_v41 = vadd.f32 %v1084_v51, %v8006_v53  ;;  %v1086_v42 = vpop.f32.mrb[21].mxu0  ;;  %1357 = vrot.lane.b32.xlu0 %v11133_v25, %s7256_s2 }
 0x181   :  { %v1087_v49 = vadd.f32 %v1086_v42, %v8010_v31  ;;  %v1088_v35 = vpop.f32.mrb[22].mxu0  ;;  %1359 = vrot.lane.b32.xlu1 %v1212_v13, %s7256_s2 }
 0x182   :  { %v11132_v26 = vmax.f32 %v8099_v41, 0.0  ;;  %v8108_v22 = vadd.f32 %v1088_v35, %v8006_v53  ;;  %v1090_v52 = vpop.f32.mrb[23].mxu0 }
 0x183   :  { %v1214_v62 = vmax.f32 %v1087_v49, 0.0  ;;  %v1091_v29 = vadd.f32 %v1090_v52, %v8010_v31 }
 0x184   :  { %1361 = vrot.lane.b32.xlu0 %v11132_v26, %s7256_s2  ;;  %v11131_v56 = vmax.f32 %v8108_v22, 0.0 }
 0x185   :  { %1363 = vrot.lane.b32.xlu1 %v1214_v62, %s7256_s2  ;;  %v1216_v28 = vmax.f32 %v1091_v29, 0.0 }
 0x187   :  { %v1094_v46 = vpop.f32.mrb[24].mxu0 }
 0x188   :  { %v8117_v59 = vadd.f32 %v1094_v46, %v8006_v53  ;;  %v1096_v63 = vpop.f32.mrb[25].mxu0  ;;  %1365 = vrot.lane.b32.xlu0 %v11131_v56, %s7256_s2 }
 0x189   :  { %v1097_v4 = vadd.f32 %v1096_v63, %v8010_v31  ;;  %v1098_v8 = vpop.f32.mrb[26].mxu0  ;;  %1367 = vrot.lane.b32.xlu1 %v1216_v28, %s7256_s2 }
 0x18a   :  { %v11130_v9 = vmax.f32 %v8117_v59, 0.0  ;;  %v8126_v14 = vadd.f32 %v1098_v8, %v8006_v53  ;;  %v1100_v10 = vpop.f32.mrb[27].mxu0 }
 0x18b   :  { %v1218_v54 = vmax.f32 %v1097_v4, 0.0  ;;  %v1101_v11 = vadd.f32 %v1100_v10, %v8010_v31 }
 0x18c   :  { %1369 = vrot.lane.b32.xlu0 %v11130_v9, %s7256_s2  ;;  %v11129_v15 = vmax.f32 %v8126_v14, 0.0 }
 0x18d   :  { %1371 = vrot.lane.b32.xlu1 %v1218_v54, %s7256_s2  ;;  %v1220_v50 = vmax.f32 %v1101_v11, 0.0 }
 0x18f   :  { %v1104_v47 = vpop.f32.mrb[28].mxu0 }
 0x190   :  { %v8135_v16 = vadd.f32 %v1104_v47, %v8006_v53  ;;  %v1106_v48 = vpop.f32.mrb[29].mxu0  ;;  %1373 = vrot.lane.b32.xlu0 %v11129_v15, %s7256_s2 }
 0x191   :  { %v1107_v3 = vadd.f32 %v1106_v48, %v8010_v31  ;;  %1375 = vrot.lane.b32.xlu1 %v1220_v50, %s7256_s2  ;;  %v1108_v40 = vpop.f32.mrb[30].mxu0 }
 0x192   :  { %v11128_v17 = vmax.f32 %v8135_v16, 0.0  ;;  %v8144_v0 = vadd.f32 %v1108_v40, %v8006_v53  ;;  %v1110_v18 = vpop.f32.mrb[31].mxu0 }
 0x193   :  { %v1222_v20 = vmax.f32 %v1107_v3, 0.0  ;;  %v1111_v24 = vadd.f32 %v1110_v18, %v8010_v31  ;;  %v7132_v18 = vld [vmem:[%s11103_s3 + $0x4] ss:$8 sps:$4 sm:$0xff]  }
 0x194   :  { %v11127_v32 = vmax.f32 %v8144_v0, 0.0  ;;  %1377 = vrot.lane.b32.xlu0 %v11128_v17, %s7256_s2  ;;  %2903 = vmatprep.subr.bf16.mxu1 %v7132_v18 }
 0x195   :  { %v1224_v33 = vmax.f32 %v1111_v24, 0.0  ;;  %1379 = vrot.lane.b32.xlu1 %v1222_v20, %s7256_s2  ;;  %v7134_v24 = vld [vmem:[%s11103_s3] ss:$8 sps:$4 sm:$0xff]  }
 0x196   :  { %2904 = vmatpush1.bf16.msra.mxu1 %v7134_v24 }
 0x197   :  { %v1114_v34 = vpop.f32.mrb[32].mxu0 }
 0x198   :  { %v8153_v44 = vadd.f32 %v1114_v34, %v8006_v53  ;;  %v1116_v13 = vpop.f32.mrb[33].mxu0  ;;  %1381 = vrot.lane.b32.xlu0 %v11127_v32, %s7256_s2 }
 0x199   :  { %v1117_v51 = vadd.f32 %v1116_v13, %v8010_v31  ;;  %1383 = vrot.lane.b32.xlu1 %v1224_v33, %s7256_s2  ;;  %v1118_v42 = vpop.f32.mrb[34].mxu0 }
 0x19a   :  { %v11126_v49 = vmax.f32 %v8153_v44, 0.0  ;;  %v8162_v35 = vadd.f32 %v1118_v42, %v8006_v53  ;;  %v1120_v52 = vpop.f32.mrb[35].mxu0 }
 0x19b   :  { %v1226_v62 = vmax.f32 %v1117_v51, 0.0  ;;  %v1121_v29 = vadd.f32 %v1120_v52, %v8010_v31  ;;  %v7135_v51 = vld [vmem:[%s11103_s3 + $0x14] ss:$8 sps:$4 sm:$0xff]  }
 0x19c   :  { %v11125_v28 = vmax.f32 %v8162_v35, 0.0  ;;  %1385 = vrot.lane.b32.xlu0 %v11126_v49, %s7256_s2  ;;  %2905 = vmatprep.subr.bf16.mxu1 %v7135_v51 }
 0x19d   :  { %v1228_v46 = vmax.f32 %v1121_v29, 0.0  ;;  %1387 = vrot.lane.b32.xlu1 %v1226_v62, %s7256_s2  ;;  %v7137_v62 = vld [vmem:[%s11103_s3 + $0x10] ss:$8 sps:$4 sm:$0xff]  }
 0x19e   :  { %2906 = vmatpush1.bf16.msra.mxu1 %v7137_v62 }
 0x19f   :  { %v1124_v63 = vpop.f32.mrb[36].mxu0 }
 0x1a0   :  { %v8171_v4 = vadd.f32 %v1124_v63, %v8006_v53  ;;  %v1126_v8 = vpop.f32.mrb[37].mxu0  ;;  %1389 = vrot.lane.b32.xlu0 %v11125_v28, %s7256_s2  ;;  %v7170_v28 = vld [vmem:[%s11103_s3 + $0xc0] ss:$8 sps:$4 sm:$0xff]  }
 0x1a1   :  { %v1127_v10 = vadd.f32 %v1126_v8, %v8010_v31  ;;  %1391 = vrot.lane.b32.xlu1 %v1228_v46, %s7256_s2  ;;  %v1128_v54 = vpop.f32.mrb[38].mxu0 }
 0x1a2   :  { %v11124_v11 = vmax.f32 %v8171_v4, 0.0  ;;  %v8180_v50 = vadd.f32 %v1128_v54, %v8006_v53  ;;  %v1130_v47 = vpop.f32.mrb[39].mxu0  ;;  %v7138_v54 = vld [vmem:[%s11103_s3 + $0x24] ss:$8 sps:$4 sm:$0xff]  }
 0x1a3   :  { %v1230_v48 = vmax.f32 %v1127_v10, 0.0  ;;  %v1131_v3 = vadd.f32 %v1130_v47, %v8010_v31  ;;  %2907 = vmatprep.subr.bf16.mxu1 %v7138_v54  ;;  %v7144_v54 = vld [vmem:[%s11103_s3 + $0x44] ss:$8 sps:$4 sm:$0xff]  }
 0x1a4   :  { %v11123_v40 = vmax.f32 %v8180_v50, 0.0  ;;  %1393 = vrot.lane.b32.xlu0 %v11124_v11, %s7256_s2 }
 0x1a5   :  { %v1232_v20 = vmax.f32 %v1131_v3, 0.0  ;;  %1395 = vrot.lane.b32.xlu1 %v1230_v48, %s7256_s2  ;;  %v7140_v3 = vld [vmem:[%s11103_s3 + $0x20] ss:$8 sps:$4 sm:$0xff]  }
 0x1a6   :  { %2908 = vmatpush1.bf16.msra.mxu1 %v7140_v3 }
 0x1a7   :  { %v1134_v33 = vpop.f32.mrb[40].mxu0 }
 0x1a8   :  { %v8195_v34 = vadd.f32 %v1134_v33, %v8006_v53  ;;  %v1136_v13 = vpop.f32.mrb[41].mxu0  ;;  %1397 = vrot.lane.b32.xlu0 %v11123_v40, %s7256_s2  ;;  %v7141_v33 = vld [vmem:[%s11103_s3 + $0x34] ss:$8 sps:$4 sm:$0xff]  }
 0x1a9   :  { %v1137_v42 = vadd.f32 %v1136_v13, %v8010_v31  ;;  %1399 = vrot.lane.b32.xlu1 %v1232_v20, %s7256_s2  ;;  %v1138_v52 = vpop.f32.mrb[42].mxu0  ;;  %2909 = vmatprep.subr.bf16.mxu1 %v7141_v33 }
 0x1aa   :  { %v11122_v29 = vmax.f32 %v8195_v34, 0.0  ;;  %v8210_v46 = vadd.f32 %v1138_v52, %v8006_v53  ;;  %v1140_v63 = vpop.f32.mrb[43].mxu0 }
 0x1ab   :  { %v1234_v8 = vmax.f32 %v1137_v42, 0.0  ;;  %v1141_v10 = vadd.f32 %v1140_v63, %v8010_v31  ;;  %v7143_v42 = vld [vmem:[%s11103_s3 + $0x30] ss:$8 sps:$4 sm:$0xff]  }
 0x1ac   :  { %v11121_v47 = vmax.f32 %v8210_v46, 0.0  ;;  %2910 = vmatpush1.bf16.msra.mxu1 %v7143_v42 }
 0x1ad   :  { %v1236_v48 = vmax.f32 %v1141_v10, 0.0  ;;  %1401 = vrot.lane.b32.xlu1 %v11122_v29, %s7256_s2  ;;  %1403 = vrot.lane.b32.xlu0 %v1234_v8, %s7256_s2 }
 0x1ae   :  { %2911 = vmatprep.subr.bf16.mxu1 %v7144_v54 }
 0x1af   :  { %v1144_v18 = vpop.f32.mrb[44].mxu0 }
 0x1b0   :  { %v8225_v20 = vadd.f32 %v1144_v18, %v8006_v53  ;;  %v1146_v24 = vpop.f32.mrb[45].mxu0  ;;  %v7146_v18 = vld [vmem:[%s11103_s3 + $0x40] ss:$8 sps:$4 sm:$0xff]  }
 0x1b1   :  { %v1147_v13 = vadd.f32 %v1146_v24, %v8010_v31  ;;  %1405 = vrot.lane.b32.xlu1 %v11121_v47, %s7256_s2  ;;  %1407 = vrot.lane.b32.xlu0 %v1236_v48, %s7256_s2  ;;  %v1148_v51 = vpop.f32.mrb[46].mxu0  ;;  %v7168_v47 = vld [vmem:[%s11103_s3 + $0xc4] ss:$8 sps:$4 sm:$0xff]  }
 0x1b2   :  { %v11117_v52 = vmax.f32 %v8225_v20, 0.0  ;;  %v8240_v62 = vadd.f32 %v1148_v51, %v8006_v53  ;;  %v1150_v63 = vpop.f32.mrb[47].mxu0  ;;  %2912 = vmatpush1.bf16.msra.mxu1 %v7146_v18  ;;  %v7147_v51 = vld [vmem:[%s11103_s3 + $0x54] ss:$8 sps:$4 sm:$0xff]  }
 0x1b3   :  { %v1238_v8 = vmax.f32 %v1147_v13, 0.0  ;;  %v1151_v10 = vadd.f32 %v1150_v63, %v8010_v31  ;;  %2913 = vmatprep.subr.bf16.mxu1 %v7147_v51  ;;  %v7152_v51 = vld [vmem:[%s11103_s3 + $0x60] ss:$8 sps:$4 sm:$0xff]  }
 0x1b4   :  { %v11115_v48 = vmax.f32 %v8240_v62, 0.0 }
 0x1b5   :  { %v1240_v3 = vmax.f32 %v1151_v10, 0.0  ;;  %1411 = vrot.lane.b32.xlu1 %v1238_v8, %s7256_s2  ;;  %1409 = vrot.lane.b32.xlu0 %v11117_v52, %s7256_s2  ;;  %v7149_v8 = vld [vmem:[%s11103_s3 + $0x50] ss:$8 sps:$4 sm:$0xff]  }
 0x1b6   :  { %2914 = vmatpush1.bf16.msra.mxu1 %v7149_v8 }
 0x1b7   :  { %v1154_v24 = vpop.f32.mrb[48].mxu0 }
 0x1b8   :  { %v8255_v33 = vadd.f32 %v1154_v24, %v8006_v53  ;;  %v1156_v13 = vpop.f32.mrb[49].mxu0 }
 0x1b9   :  { %v1157_v42 = vadd.f32 %v1156_v13, %v8010_v31  ;;  %1415 = vrot.lane.b32.xlu1 %v1240_v3, %s7256_s2  ;;  %1413 = vrot.lane.b32.xlu0 %v11115_v48, %s7256_s2  ;;  %v1158_v63 = vpop.f32.mrb[50].mxu0  ;;  %v7150_v3 = vld [vmem:[%s11103_s3 + $0x64] ss:$8 sps:$4 sm:$0xff]  }
 0x1ba   :  { %v11114_v10 = vmax.f32 %v8255_v33, 0.0  ;;  %v8270_v54 = vadd.f32 %v1158_v63, %v8006_v53  ;;  %v1160_v18 = vpop.f32.mrb[51].mxu0  ;;  %2915 = vmatprep.subr.bf16.mxu1 %v7150_v3  ;;  %v7155_v3 = vld [vmem:[%s11103_s3 + $0x70] ss:$8 sps:$4 sm:$0xff]  }
 0x1bb   :  { %v1242_v24 = vmax.f32 %v1157_v42, 0.0  ;;  %v1161_v13 = vadd.f32 %v1160_v18, %v8010_v31  ;;  %2916 = vmatpush1.bf16.msra.mxu1 %v7152_v51  ;;  %v7153_v18 = vld [vmem:[%s11103_s3 + $0x74] ss:$8 sps:$4 sm:$0xff]  }
 0x1bc   :  { %v11116_v36 = vmax.f32 %v8270_v54, 0.0  ;;  %2917 = vmatprep.subr.bf16.mxu1 %v7153_v18  ;;  %v7158_v18 = vld [vmem:[%s11103_s3 + $0x80] ss:$8 sps:$4 sm:$0xff]  }
 0x1bd   :  { %v1244_v23 = vmax.f32 %v1161_v13, 0.0  ;;  %1417 = vrot.lane.b32.xlu1 %v11114_v10, %s7256_s2  ;;  %1419 = vrot.lane.b32.xlu0 %v1242_v24, %s7256_s2 }
 0x1bf   :  { %v1164_v42 = vpop.f32.mrb[52].mxu0  ;;  %2918 = vmatpush1.bf16.msra.mxu1 %v7155_v3  ;;  %v7159_v3 = vld [vmem:[%s11103_s3 + $0x94] ss:$8 sps:$4 sm:$0xff]  }
 0x1c0   :  { %v8285_v63 = vadd.f32 %v1164_v42, %v8006_v53  ;;  %v1166_v8 = vpop.f32.mrb[53].mxu0 }
 0x1c1   :  { %v1167_v13 = vadd.f32 %v1166_v8, %v8010_v31  ;;  %1421 = vrot.lane.b32.xlu1 %v11116_v36, %s7256_s2  ;;  %1423 = vrot.lane.b32.xlu0 %v1244_v23, %s7256_s2  ;;  %v1168_v24 = vpop.f32.mrb[54].mxu0  ;;  %v7156_v23 = vld [vmem:[%s11103_s3 + $0x84] ss:$8 sps:$4 sm:$0xff]  }
 0x1c2   :  { %v11118_v51 = vmax.f32 %v8285_v63, 0.0  ;;  %v8300_v42 = vadd.f32 %v1168_v24, %v8006_v53  ;;  %v1170_v10 = vpop.f32.mrb[55].mxu0  ;;  %2919 = vmatprep.subr.bf16.mxu1 %v7156_v23  ;;  %v7161_v23 = vld [vmem:[%s11103_s3 + $0x90] ss:$8 sps:$4 sm:$0xff]  }
 0x1c3   :  { %v1246_v48 = vmax.f32 %v1167_v13, 0.0  ;;  %v1171_v8 = vadd.f32 %v1170_v10, %v8010_v31  ;;  %2920 = vmatpush1.bf16.msra.mxu1 %v7158_v18 }
 0x1c4   :  { %v11119_v36 = vmax.f32 %v8300_v42, 0.0  ;;  %2921 = vmatprep.subr.bf16.mxu1 %v7159_v3  ;;  %v7165_v3 = vld [vmem:[%s11103_s3 + $0xb4] ss:$8 sps:$4 sm:$0xff]  }
 0x1c5   :  { %v1248_v52 = vmax.f32 %v1171_v8, 0.0  ;;  %1427 = vrot.lane.b32.xlu1 %v1246_v48, %s7256_s2  ;;  %1425 = vrot.lane.b32.xlu0 %v11118_v51, %s7256_s2 }
 0x1c7   :  { %v1174_v10 = vpop.f32.mrb[56].mxu0  ;;  %2922 = vmatpush1.bf16.msra.mxu1 %v7161_v23 }
 0x1c8   :  { %v8315_v13 = vadd.f32 %v1174_v10, %v8006_v53  ;;  %v1176_v24 = vpop.f32.mrb[57].mxu0 }
 0x1c9   :  { %v1177_v48 = vadd.f32 %v1176_v24, %v8010_v31  ;;  %1431 = vrot.lane.b32.xlu1 %v1248_v52, %s7256_s2  ;;  %1429 = vrot.lane.b32.xlu0 %v11119_v36, %s7256_s2  ;;  %v8325_v8 = vpop.f32.mrb[58].mxu0  ;;  %v7162_v52 = vld [vmem:[%s11103_s3 + $0xa4] ss:$8 sps:$4 sm:$0xff]   ;;  %v7164_v24 = vld [vmem:[%s11103_s3 + $0xa0] ss:$8 sps:$4 sm:$0xff]  }
 0x1ca   :  { %v11120_v18 = vmax.f32 %v8315_v13, 0.0  ;;  %v8331_v10 = vpop.f32.mrb[59].mxu0  ;;  %2923 = vmatprep.subr.bf16.mxu1 %v7162_v52 }
 0x1cb   :  { %v1250_v51 = vmax.f32 %v1177_v48, 0.0  ;;  %2924 = vmatpush1.bf16.msra.mxu1 %v7164_v24  ;;  %v1181_v12 = vadd.f32 %v8331_v10, %v8010_v31 }
 0x1cc   :  { %2925 = vmatprep.subr.bf16.mxu1 %v7165_v3  ;;  %v7171_v3 = vld [vmem:[%s11103_s3 + $0xd4] ss:$8 sps:$4 sm:$0xff]  }
 0x1cd   :  { %1433 = vrot.lane.b32.xlu1 %v11120_v18, %s7256_s2  ;;  %1435 = vrot.lane.b32.xlu0 %v1250_v51, %s7256_s2  ;;  %v7167_v18 = vld [vmem:[%s11103_s3 + $0xb0] ss:$8 sps:$4 sm:$0xff]  }
 0x1ce   :  { %v1322_v48 = vpop.permute.xlu0 %1321 }
 0x1cf   :  { %v1324_v23 = vpop.permute.xlu1 %1323  ;;  %v8346_v36 = vpop.f32.mrb[60].mxu0  ;;  %2926 = vmatpush1.bf16.msra.mxu1 %v7167_v18  ;;  %v7173_v18 = vld [vmem:[%s11103_s3 + $0xd0] ss:$8 sps:$4 sm:$0xff]  }
 0x1d0   :  { %v8351_v51 = vpop.f32.mrb[61].mxu0  ;;  %v1450_v11 = vsel %vm1449_vm7, %v1322_v48, %v1324_v23  ;;  %2927 = vmatprep.subr.bf16.mxu1 %v7168_v47 }
 0x1d1   :  { %v8356_v29 = vpop.f32.mrb[62].mxu0  ;;  %v1514_v17 = vadd.f32 %v1450_v11, %v1193_v43 }
 0x1d2   :  { %v1326_v40 = vpop.permute.xlu0 %1325  ;;  %v8358_v52 = vpop.f32.mrb[63].mxu0 }
 0x1d3   :  { %v1328_v24 = vpop.permute.xlu1 %1327  ;;  %2928 = vmatpush1.bf16.msra.mxu1 %v7170_v28  ;;  %v7174_v28 = vld [vmem:[%s11103_s3 + $0xe4] ss:$8 sps:$4 sm:$0xff]  }
 0x1d4   :  { %v1451_v49 = vsel %vm1449_vm7, %v1326_v40, %v1328_v24  ;;  %2929 = vmatprep.subr.bf16.mxu1 %v7171_v3  ;;  %v1578_v24 = vrot.slane %v1514_v17, 1 }
 0x1d5   :  { %v1515_v32 = vadd.f32 %v1451_v49, %v1195_v5 }
 0x1d6   :  { %v1330_v48 = vpop.permute.xlu0 %1329 }
 0x1d7   :  { %v1332_v23 = vpop.permute.xlu1 %1331  ;;  %v1579_v15 = vrot.slane %v1515_v32, 1  ;;  %2930 = vmatpush1.bf16.msra.mxu1 %v7173_v18 }
 0x1d8   :  { %v1452_v40 = vsel %vm1449_vm7, %v1330_v48, %v1332_v23  ;;  %2931 = vmatprep.subr.bf16.mxu1 %v7174_v28 }
 0x1d9   :  { %v1516_v47 = vadd.f32 %v1452_v40, %v1197_v57  ;;  %v1580_v2 = vsel %vm103_vm0, %v1578_v24, %v1579_v15 }
 0x1da   :  { %v1334_v45 = vpop.permute.xlu0 %1333  ;;  %v8391_v23 = vadd.f32 %v1580_v2, %v1514_v17  ;;  %v7179_v17 = vld [vmem:[%s11103_s3 + $0xf0] ss:$8 sps:$4 sm:$0xff]  }
 0x1db   :  { %v1581_v5 = vrot.slane %v1516_v47, 1  ;;  %v1336_v49 = vpop.permute.xlu1 %1335  ;;  %2932 = vmatpush1.bf16.msra.mxu1 %v7176_v55 }
 0x1dc   :  { %v1453_v43 = vsel %vm1449_vm7, %v1334_v45, %v1336_v49  ;;  %2933 = vmatprep.subr.bf16.mxu1 %v7177_v58 }
 0x1dd   :  { %v1582_v11 = vsel %vm103_vm0, %v1579_v15, %v1581_v5  ;;  %v1517_v3 = vadd.f32 %v1453_v43, %v1199_v60 }
 0x1de   :  { %v8389_v57 = vadd.f32 %v1582_v11, %v1515_v32  ;;  %v1338_v48 = vpop.permute.xlu0 %1337  ;;  %v1803_v11 = vrot.slane %v8391_v23, 4 }
 0x1df   :  { %v1583_v18 = vrot.slane %v1517_v3, 1  ;;  %v1340_v40 = vpop.permute.xlu1 %1339  ;;  %2934 = vmatpush1.bf16.msra.mxu1 %v7179_v17 }
 0x1e0   :  { %v1454_v24 = vsel %vm1449_vm7, %v1338_v48, %v1340_v40  ;;  %v1804_v32 = vrot.slane %v8389_v57, 4  ;;  %v1739_v2 = vrot.slane %v8389_v57, 2  ;;  %v1870_v58 = vrot.slane %v8389_v57, 6 }
 0x1e1   :  { %v1584_v60 = vsel %vm103_vm0, %v1581_v5, %v1583_v18  ;;  %v1518_v15 = vadd.f32 %v1454_v24, %v1201_v38  ;;  %v1738_v5 = vrot.slane %v8391_v23, 2 }
 0x1e2   :  { %v8404_v45 = vadd.f32 %v1584_v60, %v1516_v47  ;;  %v1342_v49 = vpop.permute.xlu0 %1341  ;;  %v1805_v24 = vsel %vm301_vm3, %v1803_v11, %v1804_v32 }
 0x1e3   :  { %v1585_v43 = vrot.slane %v1518_v15, 1  ;;  %v1344_v28 = vpop.permute.xlu1 %1343 }
 0x1e4   :  { %v1455_v37 = vsel %vm1449_vm7, %v1342_v49, %v1344_v28  ;;  %v1806_v38 = vrot.slane %v8404_v45, 4  ;;  %v1741_v55 = vrot.slane %v8404_v45, 2  ;;  %v1872_v47 = vrot.slane %v8404_v45, 6 }
 0x1e5   :  { %v1586_v48 = vsel %vm103_vm0, %v1583_v18, %v1585_v43  ;;  %v1519_v40 = vadd.f32 %v1455_v37, %v1203_v21  ;;  %v1740_v28 = vsel %vm169_vm2, %v1738_v5, %v1739_v2  ;;  %v1869_v21 = vrot.slane %v8391_v23, 6 }
 0x1e6   :  { %v8418_v60 = vadd.f32 %v1586_v48, %v1517_v3  ;;  %v1346_v17 = vpop.permute.xlu0 %1345  ;;  %v1807_v49 = vsel %vm301_vm3, %v1804_v32, %v1806_v38  ;;  %v1742_v9 = vsel %vm169_vm2, %v1739_v2, %v1741_v55  ;;  %v1873_v11 = vsel %vm1868_vm8, %v1870_v58, %v1872_v47 }
 0x1e7   :  { %v1587_v56 = vrot.slane %v1519_v40, 1  ;;  %v1348_v26 = vpop.permute.xlu1 %1347  ;;  %v6472_v25 = vpack.i.bf16 %v1807_v49, %v1805_v24  ;;  %v6467_v18 = vpack.i.bf16 %v1742_v9, %v1740_v28  ;;  %v1871_v5 = vsel %vm1868_vm8, %v1869_v21, %v1870_v58 }
 0x1e8   :  { %v1456_v6 = vsel %vm1449_vm7, %v1346_v17, %v1348_v26  ;;  %v1808_v9 = vrot.slane %v8418_v60, 4  ;;  %v1743_v37 = vrot.slane %v8418_v60, 2  ;;  %v6477_v24 = vpack.i.bf16 %v1873_v11, %v1871_v5 }
 0x1e9   :  { %v1588_v3 = vsel %vm103_vm0, %v1585_v43, %v1587_v56  ;;  %v1520_v32 = vadd.f32 %v1456_v6, %v1205_v27  ;;  %6473 = vrot.lane.b32.xlu1 %v6472_v25, %s7257_s30  ;;  %6468 = vrot.lane.b32.xlu0 %v6467_v18, %s7258_s14  ;;  %v1874_v28 = vrot.slane %v8418_v60, 6 }
 0x1ea   :  { %v8432_v2 = vadd.f32 %v1588_v3, %v1518_v15  ;;  %v1350_v26 = vpop.permute.xlu0 %1349  ;;  %v1809_v58 = vsel %vm301_vm3, %v1806_v38, %v1808_v9  ;;  %v1744_v11 = vsel %vm169_vm2, %v1741_v55, %v1743_v37 }
 0x1eb   :  { %v1589_v48 = vrot.slane %v1520_v32, 1  ;;  %v1352_v43 = vpop.permute.xlu1 %1351 }
 0x1ec   :  { %v1457_v30 = vsel %vm1449_vm7, %v1350_v26, %v1352_v43  ;;  %v1810_v27 = vrot.slane %v8432_v2, 4  ;;  %v1745_v25 = vrot.slane %v8432_v2, 2  ;;  %v1876_v17 = vrot.slane %v8432_v2, 6 }
 0x1ed   :  { %v1590_v49 = vsel %vm103_vm0, %v1587_v56, %v1589_v48  ;;  %v1521_v15 = vadd.f32 %v1457_v30, %v1207_v1  ;;  %6478 = vrot.lane.b32.xlu0 %v6477_v24, %s7259_s15  ;;  %v8468_v30 = vadd.f32 %v8325_v8, %v8006_v53 }
 0x1ee   :  { %v8446_v18 = vadd.f32 %v1590_v49, %v1519_v40  ;;  %v1354_v6 = vpop.permute.xlu0 %1353  ;;  %v1811_v21 = vsel %vm301_vm3, %v1808_v9, %v1810_v27  ;;  %v1746_v56 = vsel %vm169_vm2, %v1743_v37, %v1745_v25  ;;  %v1877_v40 = vsel %vm1868_vm8, %v1874_v28, %v1876_v17 }
 0x1ef   :  { %v1591_v1 = vrot.slane %v1521_v15, 1  ;;  %v1356_v3 = vpop.permute.xlu1 %1355  ;;  %v6487_v26 = vpack.i.bf16 %v1811_v21, %v1809_v58  ;;  %v6482_v38 = vpack.i.bf16 %v1746_v56, %v1744_v11  ;;  %v1875_v37 = vsel %vm1868_vm8, %v1872_v47, %v1874_v28 }
 0x1f0   :  { %v1458_v5 = vsel %vm1449_vm7, %v1354_v6, %v1356_v3  ;;  %v1747_v24 = vrot.slane %v8446_v18, 2  ;;  %v1252_v49 = vmax.f32 %v1181_v12, 0.0  ;;  %v6492_v19 = vpack.i.bf16 %v1877_v40, %v1875_v37 }
 0x1f1   :  { %v1592_v43 = vsel %vm103_vm0, %v1589_v48, %v1591_v1  ;;  %v1522_v9 = vadd.f32 %v1458_v5, %v1209_v39  ;;  %6488 = vrot.lane.b32.xlu0 %v6487_v26, %s7257_s30  ;;  %6483 = vrot.lane.b32.xlu1 %v6482_v38, %s7258_s14  ;;  %v11183_v28 = vmax.f32 %v8090_v61, 0.0  ;;  %v1812_v8 = vrot.slane %v8446_v18, 4 }
 0x1f2   :  { %v8462_v55 = vadd.f32 %v1592_v43, %v1520_v32  ;;  %v1358_v10 = vpop.permute.xlu0 %1357  ;;  %v1748_v3 = vsel %vm169_vm2, %v1745_v25, %v1747_v24  ;;  %v1878_v38 = vrot.slane %v8446_v18, 6 }
 0x1f3   :  { %v1593_v48 = vrot.slane %v1522_v9, 1  ;;  %v1360_v58 = vpop.permute.xlu1 %1359 }
 0x1f4   :  { %v1459_v39 = vsel %vm1449_vm7, %v1358_v10, %v1360_v58  ;;  %v1749_v6 = vrot.slane %v8462_v55, 2  ;;  %v1814_v32 = vrot.slane %v8462_v55, 4  ;;  %v1880_v21 = vrot.slane %v8462_v55, 6 }
 0x1f5   :  { %v1594_v47 = vsel %vm103_vm0, %v1591_v1, %v1593_v48  ;;  %v1523_v11 = vadd.f32 %v1459_v39, %v11183_v28  ;;  %1439 = vrot.lane.b32.xlu0 %v1252_v49, %s7256_s2  ;;  %6493 = vrot.lane.b32.xlu1 %v6492_v19, %s7259_s15  ;;  %v1251_v1 = vmax.f32 %v8468_v30, 0.0  ;;  %v11184_v49 = vmax.f32 %v8099_v41, 0.0 }
 0x1f6   :  { %v8480_v56 = vadd.f32 %v1594_v47, %v1521_v15  ;;  %v1362_v12 = vpop.permute.xlu0 %1361  ;;  %v1750_v26 = vsel %vm169_vm2, %v1747_v24, %v1749_v6  ;;  %v1815_v10 = vsel %vm301_vm3, %v1812_v8, %v1814_v32  ;;  %v1881_v37 = vsel %vm1868_vm8, %v1878_v38, %v1880_v21 }
 0x1f7   :  { %v1595_v5 = vrot.slane %v1523_v11, 1  ;;  %v1364_v61 = vpop.permute.xlu1 %1363  ;;  %v6497_v40 = vpack.i.bf16 %v1750_v26, %v1748_v3  ;;  %v1813_v39 = vsel %vm301_vm3, %v1810_v27, %v1812_v8  ;;  %v8506_v26 = vadd.f32 %v8346_v36, %v8006_v53 }
 0x1f8   :  { %v1460_v43 = vsel %vm1449_vm7, %v1362_v12, %v1364_v61  ;;  %v1816_v24 = vrot.slane %v8480_v56, 4  ;;  %v1751_v41 = vrot.slane %v8480_v56, 2  ;;  %v6502_v12 = vpack.i.bf16 %v1815_v10, %v1813_v39 }
 0x1f9   :  { %v1596_v15 = vsel %vm103_vm0, %v1593_v48, %v1595_v5  ;;  %v1524_v25 = vadd.f32 %v1460_v43, %v11184_v49  ;;  %1437 = vrot.lane.b32.xlu1 %v1251_v1, %s7256_s2  ;;  %6498 = vrot.lane.b32.xlu0 %v6497_v40, %s7258_s14  ;;  %v1879_v48 = vsel %vm1868_vm8, %v1876_v17, %v1878_v38  ;;  %v11185_v8 = vmax.f32 %v8108_v22, 0.0 }
 0x1fa   :  { %v8497_v58 = vadd.f32 %v1596_v15, %v1522_v9  ;;  %v1366_v19 = vpop.permute.xlu0 %1365  ;;  %v6507_v3 = vpack.i.bf16 %v1881_v37, %v1879_v48  ;;  %v1817_v36 = vsel %vm301_vm3, %v1814_v32, %v1816_v24  ;;  %v1882_v43 = vrot.slane %v8480_v56, 6 }
 0x1fb   :  { %v1597_v47 = vrot.slane %v1524_v25, 1  ;;  %v1368_v28 = vpop.permute.xlu1 %1367  ;;  %v1752_v49 = vsel %vm169_vm2, %v1749_v6, %v1751_v41 }
 0x1fc   :  { %v1461_v9 = vsel %vm1449_vm7, %v1366_v19, %v1368_v28  ;;  %v1818_v61 = vrot.slane %v8497_v58, 4  ;;  %v1753_v40 = vrot.slane %v8497_v58, 2  ;;  %v1884_v27 = vrot.slane %v8497_v58, 6 }
 0x1fd   :  { %v1598_v17 = vsel %vm103_vm0, %v1595_v5, %v1597_v47  ;;  %v1525_v38 = vadd.f32 %v1461_v9, %v11185_v8  ;;  %6503 = vrot.lane.b32.xlu1 %v6502_v12, %s7257_s30  ;;  %6508 = vrot.lane.b32.xlu0 %v6507_v3, %s7259_s15  ;;  %v11186_v3 = vmax.f32 %v8117_v59, 0.0  ;;  %v1187_v8 = vadd.f32 %v8351_v51, %v8010_v31 }
 0x1fe   :  { %v8519_v10 = vadd.f32 %v1598_v17, %v1523_v11  ;;  %v1370_v37 = vpop.permute.xlu0 %1369  ;;  %v1819_v15 = vsel %vm301_vm3, %v1816_v24, %v1818_v61  ;;  %v1754_v5 = vsel %vm169_vm2, %v1751_v41, %v1753_v40  ;;  %v1885_v12 = vsel %vm1868_vm8, %v1882_v43, %v1884_v27 }
 0x1ff   :  { %v1599_v19 = vrot.slane %v1525_v38, 1  ;;  %v1372_v22 = vpop.permute.xlu1 %1371  ;;  %v6517_v39 = vpack.i.bf16 %v1819_v15, %v1817_v36  ;;  %v6512_v48 = vpack.i.bf16 %v1754_v5, %v1752_v49  ;;  %v1253_v11 = vmax.f32 %v8506_v26, 0.0 }
 0x200   :  { %v1462_v28 = vsel %vm1449_vm7, %v1370_v37, %v1372_v22  ;;  %v1883_v41 = vsel %vm1868_vm8, %v1880_v21, %v1882_v43  ;;  %v1755_v17 = vrot.slane %v8519_v10, 2  ;;  %v11187_v21 = vmax.f32 %v8126_v14, 0.0 }
 0x201   :  { %v1600_v32 = vsel %vm103_vm0, %v1597_v47, %v1599_v19  ;;  %v1526_v9 = vadd.f32 %v1462_v28, %v11186_v3  ;;  %6518 = vrot.lane.b32.xlu0 %v6517_v39, %s7257_s30  ;;  %6513 = vrot.lane.b32.xlu1 %v6512_v48, %s7258_s14  ;;  %v6522_v37 = vpack.i.bf16 %v1885_v12, %v1883_v41  ;;  %v1820_v51 = vrot.slane %v8519_v10, 4 }
 0x202   :  { %v8532_v6 = vadd.f32 %v1600_v32, %v1524_v25  ;;  %v1374_v24 = vpop.permute.xlu0 %1373  ;;  %v1756_v48 = vsel %vm169_vm2, %v1753_v40, %v1755_v17  ;;  %v1254_v12 = vmax.f32 %v1187_v8, 0.0 }
 0x203   :  { %v1601_v47 = vrot.slane %v1526_v9, 1  ;;  %v1376_v36 = vpop.permute.xlu1 %1375 }
 0x204   :  { %v1463_v59 = vsel %vm1449_vm7, %v1374_v24, %v1376_v36  ;;  %v1757_v15 = vrot.slane %v8532_v6, 2  ;;  %v1822_v49 = vrot.slane %v8532_v6, 4  ;;  %v1888_v25 = vrot.slane %v8532_v6, 6 }
 0x205   :  { %v1602_v5 = vsel %vm103_vm0, %v1599_v19, %v1601_v47  ;;  %v1527_v43 = vadd.f32 %v1463_v59, %v11187_v21  ;;  %1441 = vrot.lane.b32.xlu0 %v1253_v11, %s7256_s2  ;;  %6523 = vrot.lane.b32.xlu1 %v6522_v37, %s7259_s15  ;;  %v1886_v19 = vrot.slane %v8519_v10, 6  ;;  %v11188_v37 = vmax.f32 %v8135_v16, 0.0 }
 0x206   :  { %v8550_v22 = vadd.f32 %v1602_v5, %v1525_v38  ;;  %v1378_v39 = vpop.permute.xlu0 %1377  ;;  %v1758_v28 = vsel %vm169_vm2, %v1755_v17, %v1757_v15  ;;  %v1823_v41 = vsel %vm301_vm3, %v1820_v51, %v1822_v49  ;;  %v1821_v5 = vsel %vm301_vm3, %v1818_v61, %v1820_v51 }
 0x207   :  { %v1603_v14 = vrot.slane %v1527_v43, 1  ;;  %v1380_v32 = vpop.permute.xlu1 %1379  ;;  %v6527_v3 = vpack.i.bf16 %v1758_v28, %v1756_v48  ;;  %v1889_v36 = vsel %vm1868_vm8, %v1886_v19, %v1888_v25  ;;  %v1887_v21 = vsel %vm1868_vm8, %v1884_v27, %v1886_v19 }
 0x208   :  { %v1464_v24 = vsel %vm1449_vm7, %v1378_v39, %v1380_v32  ;;  %v1824_v40 = vrot.slane %v8550_v22, 4  ;;  %v1759_v39 = vrot.slane %v8550_v22, 2  ;;  %v6532_v28 = vpack.i.bf16 %v1823_v41, %v1821_v5 }
 0x209   :  { %v1604_v38 = vsel %vm103_vm0, %v1601_v47, %v1603_v14  ;;  %v1528_v59 = vadd.f32 %v1464_v24, %v11188_v37  ;;  %1443 = vrot.lane.b32.xlu1 %v1254_v12, %s7256_s2  ;;  %6528 = vrot.lane.b32.xlu0 %v6527_v3, %s7258_s14  ;;  %v6537_v16 = vpack.i.bf16 %v1889_v36, %v1887_v21  ;;  %v11189_v61 = vmax.f32 %v8144_v0, 0.0 }
 0x20a   :  { %v8564_v17 = vadd.f32 %v1604_v38, %v1526_v9  ;;  %v1382_v8 = vpop.permute.xlu0 %1381  ;;  %v1825_v27 = vsel %vm301_vm3, %v1822_v49, %v1824_v40  ;;  %v1890_v19 = vrot.slane %v8550_v22, 6  ;;  %v8589_v37 = vadd.f32 %v8356_v29, %v8006_v53 }
 0x20b   :  { %v1605_v48 = vrot.slane %v1528_v59, 1  ;;  %v1384_v47 = vpop.permute.xlu1 %1383 }
 0x20c   :  { %v1465_v32 = vsel %vm1449_vm7, %v1382_v8, %v1384_v47  ;;  %v1826_v12 = vrot.slane %v8564_v17, 4  ;;  %v1761_v3 = vrot.slane %v8564_v17, 2  ;;  %v1892_v9 = vrot.slane %v8564_v17, 6 }
 0x20d   :  { %v1606_v24 = vsel %vm103_vm0, %v1603_v14, %v1605_v48  ;;  %v1529_v51 = vadd.f32 %v1465_v32, %v11189_v61  ;;  %6533 = vrot.lane.b32.xlu1 %v6532_v28, %s7257_s30  ;;  %6538 = vrot.lane.b32.xlu0 %v6537_v16, %s7259_s15  ;;  %v1760_v14 = vsel %vm169_vm2, %v1757_v15, %v1759_v39  ;;  %v1255_v32 = vmax.f32 %v8589_v37, 0.0 }
 0x20e   :  { %v8580_v41 = vadd.f32 %v1606_v24, %v1527_v43  ;;  %v1386_v36 = vpop.permute.xlu0 %1385  ;;  %v1827_v38 = vsel %vm301_vm3, %v1824_v40, %v1826_v12  ;;  %v1762_v0 = vsel %vm169_vm2, %v1759_v39, %v1761_v3  ;;  %v1893_v47 = vsel %vm1868_vm8, %v1890_v19, %v1892_v9 }
 0x20f   :  { %v1607_v8 = vrot.slane %v1529_v51, 1  ;;  %v1388_v5 = vpop.permute.xlu1 %1387  ;;  %v6547_v49 = vpack.i.bf16 %v1827_v38, %v1825_v27  ;;  %v6542_v21 = vpack.i.bf16 %v1762_v0, %v1760_v14  ;;  %v11190_v40 = vmax.f32 %v8153_v44, 0.0 }
 0x210   :  { %v1466_v43 = vsel %vm1449_vm7, %v1386_v36, %v1388_v5  ;;  %v1891_v29 = vsel %vm1868_vm8, %v1888_v25, %v1890_v19  ;;  %v1763_v39 = vrot.slane %v8580_v41, 2  ;;  %v1191_v24 = vadd.f32 %v8358_v52, %v8010_v31 }
 0x211   :  { %v1608_v28 = vsel %vm103_vm0, %v1605_v48, %v1607_v8  ;;  %v1530_v16 = vadd.f32 %v1466_v43, %v11190_v40  ;;  %6548 = vrot.lane.b32.xlu0 %v6547_v49, %s7257_s30  ;;  %6543 = vrot.lane.b32.xlu1 %v6542_v21, %s7258_s14  ;;  %v6552_v44 = vpack.i.bf16 %v1893_v47, %v1891_v29  ;;  %v11191_v19 = vmax.f32 %v8162_v35, 0.0 }
 0x212   :  { %v8598_v15 = vadd.f32 %v1608_v28, %v1528_v59  ;;  %v1390_v53 = vpop.permute.xlu0 %1389  ;;  %v1828_v31 = vrot.slane %v8580_v41, 4  ;;  %v1764_v5 = vsel %vm169_vm2, %v1761_v3, %v1763_v39  ;;  %v1256_v21 = vmax.f32 %v1191_v24, 0.0 }
 0x213   :  { %v1609_v48 = vrot.slane %v1530_v16, 1  ;;  %v1392_v61 = vpop.permute.xlu1 %1391  ;;  %v11192_v29 = vmax.f32 %v8171_v4, 0.0 }
 0x214   :  { %v1467_v27 = vsel %vm1449_vm7, %v1390_v53, %v1392_v61  ;;  %v1765_v36 = vrot.slane %v8598_v15, 2  ;;  %v1830_v59 = vrot.slane %v8598_v15, 4  ;;  %v1896_v38 = vrot.slane %v8598_v15, 6 }
 0x215   :  { %v1610_v25 = vsel %vm103_vm0, %v1607_v8, %v1609_v48  ;;  %v1531_v14 = vadd.f32 %v1467_v27, %v11191_v19  ;;  %1445 = vrot.lane.b32.xlu0 %v1255_v32, %s7256_s2  ;;  %6553 = vrot.lane.b32.xlu1 %v6552_v44, %s7259_s15  ;;  %v1894_v8 = vrot.slane %v8580_v41, 6  ;;  %v1829_v44 = vsel %vm301_vm3, %v1826_v12, %v1828_v31 }
 0x216   :  { %v8617_v52 = vadd.f32 %v1610_v25, %v1529_v51  ;;  %v1394_v0 = vpop.permute.xlu0 %1393  ;;  %v1766_v49 = vsel %vm169_vm2, %v1763_v39, %v1765_v36  ;;  %v1831_v40 = vsel %vm301_vm3, %v1828_v31, %v1830_v59  ;;  %v11193_v12 = vmax.f32 %v8180_v50, 0.0 }
 0x217   :  { %v1611_v35 = vrot.slane %v1531_v14, 1  ;;  %v1396_v43 = vpop.permute.xlu1 %1395  ;;  %v6557_v47 = vpack.i.bf16 %v1766_v49, %v1764_v5  ;;  %v1897_v53 = vsel %vm1868_vm8, %v1894_v8, %v1896_v38  ;;  %v1895_v27 = vsel %vm1868_vm8, %v1892_v9, %v1894_v8 }
 0x218   :  { %v1468_v28 = vsel %vm1449_vm7, %v1394_v0, %v1396_v43  ;;  %v1832_v3 = vrot.slane %v8617_v52, 4  ;;  %v6562_v19 = vpack.i.bf16 %v1831_v40, %v1829_v44  ;;  %v6567_v0 = vpack.i.bf16 %v1897_v53, %v1895_v27 }
 0x219   :  { %v1612_v51 = vsel %vm103_vm0, %v1609_v48, %v1611_v35  ;;  %v1532_v61 = vadd.f32 %v1468_v28, %v11192_v29  ;;  %1447 = vrot.lane.b32.xlu1 %v1256_v21, %s7256_s2  ;;  %6558 = vrot.lane.b32.xlu0 %v6557_v47, %s7258_s14  ;;  %v1767_v48 = vrot.slane %v8617_v52, 2  ;;  %v1898_v8 = vrot.slane %v8617_v52, 6 }
 0x21a   :  { %v8631_v39 = vadd.f32 %v1612_v51, %v1530_v16  ;;  %v1398_v24 = vpop.permute.xlu0 %1397  ;;  %v1833_v9 = vsel %vm301_vm3, %v1830_v59, %v1832_v3 }
 0x21b   :  { %v1613_v25 = vrot.slane %v1532_v61, 1  ;;  %v1400_v4 = vpop.permute.xlu1 %1399  ;;  %v1768_v40 = vsel %vm169_vm2, %v1765_v36, %v1767_v48 }
 0x21c   :  { %v1469_v5 = vsel %vm1449_vm7, %v1398_v24, %v1400_v4  ;;  %v1834_v49 = vrot.slane %v8631_v39, 4  ;;  %v1769_v16 = vrot.slane %v8631_v39, 2  ;;  %v1900_v21 = vrot.slane %v8631_v39, 6 }
 0x21d   :  { %v1614_v43 = vsel %vm103_vm0, %v1611_v35, %v1613_v25  ;;  %v1533_v31 = vadd.f32 %v1469_v5, %v11193_v12  ;;  %6563 = vrot.lane.b32.xlu1 %v6562_v19, %s7257_s30  ;;  %6568 = vrot.lane.b32.xlu0 %v6567_v0, %s7259_s15 }
 0x21e   :  { %v8649_v47 = vadd.f32 %v1614_v43, %v1531_v14  ;;  %v1835_v28 = vsel %vm301_vm3, %v1832_v3, %v1834_v49  ;;  %v1770_v53 = vsel %vm169_vm2, %v1767_v48, %v1769_v16  ;;  %v1901_v27 = vsel %vm1868_vm8, %v1898_v8, %v1900_v21 }
 0x21f   :  { %v1615_v35 = vrot.slane %v1533_v31, 1  ;;  %v1402_v51 = vpop.permute.xlu1 %1401  ;;  %v1404_v50 = vpop.permute.xlu0 %1403  ;;  %v6577_v29 = vpack.i.bf16 %v1835_v28, %v1833_v9  ;;  %v6572_v24 = vpack.i.bf16 %v1770_v53, %v1768_v40  ;;  %v11194_v14 = vmax.f32 %v8195_v34, 0.0 }
 0x220   :  { %v1470_v44 = vsel %vm1449_vm7, %v1402_v51, %v1404_v50  ;;  %v1836_v36 = vrot.slane %v8649_v47, 4  ;;  %v1899_v48 = vsel %vm1868_vm8, %v1896_v38, %v1898_v8  ;;  %v1771_v19 = vrot.slane %v8649_v47, 2  ;;  %v7182_v51 = vld [vmem:[%s11103_s3 + $0x104] ss:$8 sps:$4 sm:$0xff]  }
 0x221   :  { %v1616_v59 = vsel %vm103_vm0, %v1613_v25, %v1615_v35  ;;  %v1534_v4 = vadd.f32 %v1470_v44, %v11194_v14  ;;  %6578 = vrot.lane.b32.xlu0 %v6577_v29, %s7257_s30  ;;  %6573 = vrot.lane.b32.xlu1 %v6572_v24, %s7258_s14  ;;  %v6582_v12 = vpack.i.bf16 %v1901_v27, %v1899_v48  ;;  %v1902_v8 = vrot.slane %v8649_v47, 6 }
 0x222   :  { %v8662_v3 = vadd.f32 %v1616_v59, %v1532_v61  ;;  %v11195_v61 = vmax.f32 %v8210_v46, 0.0  ;;  %v1837_v38 = vsel %vm301_vm3, %v1834_v49, %v1836_v36  ;;  %v1772_v24 = vsel %vm169_vm2, %v1769_v16, %v1771_v19  ;;  %3096 = vmatprep.subr.bf16.mxu1 %v7182_v51 }
 0x223   :  { %v1617_v0 = vrot.slane %v1534_v4, 1  ;;  %v1406_v5 = vpop.permute.xlu1 %1405  ;;  %v1408_v43 = vpop.permute.xlu0 %1407 }
 0x224   :  { %v1471_v25 = vsel %vm1449_vm7, %v1406_v5, %v1408_v43  ;;  %v1838_v34 = vrot.slane %v8662_v3, 4  ;;  %v1773_v9 = vrot.slane %v8662_v3, 2  ;;  %v1904_v28 = vrot.slane %v8662_v3, 6 }
 0x225   :  { %v1618_v40 = vsel %vm103_vm0, %v1615_v35, %v1617_v0  ;;  %v1535_v53 = vadd.f32 %v1471_v25, %v11195_v61  ;;  %6583 = vrot.lane.b32.xlu1 %v6582_v12, %s7259_s15 }
 0x226   :  { %v8679_v50 = vadd.f32 %v1618_v40, %v1533_v31  ;;  %v1839_v29 = vsel %vm301_vm3, %v1836_v36, %v1838_v34  ;;  %v1774_v35 = vsel %vm169_vm2, %v1771_v19, %v1773_v9  ;;  %v1905_v48 = vsel %vm1868_vm8, %v1902_v8, %v1904_v28 }
 0x227   :  { %v1619_v46 = vrot.slane %v1535_v53, 1  ;;  %v1412_v44 = vpop.permute.xlu1 %1411  ;;  %v1410_v27 = vpop.permute.xlu0 %1409  ;;  %v6592_v59 = vpack.i.bf16 %v1839_v29, %v1837_v38  ;;  %v6587_v14 = vpack.i.bf16 %v1774_v35, %v1772_v24  ;;  %v11196_v31 = vmax.f32 %v8225_v20, 0.0 }
 0x228   :  { %v1472_v49 = vsel %vm1449_vm7, %v1410_v27, %v1412_v44  ;;  %v1840_v16 = vrot.slane %v8679_v50, 4  ;;  %v1903_v19 = vsel %vm1868_vm8, %v1900_v21, %v1902_v8  ;;  %v1775_v12 = vrot.slane %v8679_v50, 2 }
 0x229   :  { %v1620_v5 = vsel %vm103_vm0, %v1617_v0, %v1619_v46  ;;  %v1536_v43 = vadd.f32 %v1472_v49, %v11196_v31  ;;  %6593 = vrot.lane.b32.xlu1 %v6592_v59, %s7257_s30  ;;  %6588 = vrot.lane.b32.xlu0 %v6587_v14, %s7258_s14  ;;  %v6597_v38 = vpack.i.bf16 %v1905_v48, %v1903_v19  ;;  %v1906_v8 = vrot.slane %v8679_v50, 6 }
 0x22a   :  { %v8692_v36 = vadd.f32 %v1620_v5, %v1534_v4  ;;  %v11197_v4 = vmax.f32 %v8240_v62, 0.0  ;;  %v1841_v21 = vsel %vm301_vm3, %v1838_v34, %v1840_v16  ;;  %v1776_v59 = vsel %vm169_vm2, %v1773_v9, %v1775_v12 }
 0x22b   :  { %v1621_v25 = vrot.slane %v1536_v43, 1  ;;  %v1416_v40 = vpop.permute.xlu1 %1415  ;;  %v1414_v61 = vpop.permute.xlu0 %1413 }
 0x22c   :  { %v1473_v0 = vsel %vm1449_vm7, %v1414_v61, %v1416_v40  ;;  %v1842_v20 = vrot.slane %v8692_v36, 4  ;;  %v1777_v51 = vrot.slane %v8692_v36, 2  ;;  %v1908_v29 = vrot.slane %v8692_v36, 6 }
 0x22d   :  { %v1622_v24 = vsel %vm103_vm0, %v1619_v46, %v1621_v25  ;;  %v1537_v35 = vadd.f32 %v1473_v0, %v11197_v4  ;;  %6598 = vrot.lane.b32.xlu0 %v6597_v38, %s7259_s15 }
 0x22e   :  { %v8706_v44 = vadd.f32 %v1622_v24, %v1535_v53  ;;  %v1843_v27 = vsel %vm301_vm3, %v1840_v16, %v1842_v20  ;;  %v1778_v14 = vsel %vm169_vm2, %v1775_v12, %v1777_v51  ;;  %v1909_v19 = vsel %vm1868_vm8, %v1906_v8, %v1908_v29 }
 0x22f   :  { %v1623_v49 = vrot.slane %v1537_v35, 1  ;;  %v1418_v48 = vpop.permute.xlu1 %1417  ;;  %v1420_v46 = vpop.permute.xlu0 %1419  ;;  %v6607_v5 = vpack.i.bf16 %v1843_v27, %v1841_v21  ;;  %v6602_v62 = vpack.i.bf16 %v1778_v14, %v1776_v59  ;;  %v11198_v53 = vmax.f32 %v8255_v33, 0.0 }
 0x230   :  { %v1474_v31 = vsel %vm1449_vm7, %v1418_v48, %v1420_v46  ;;  %v1844_v9 = vrot.slane %v8706_v44, 4  ;;  %v1907_v12 = vsel %vm1868_vm8, %v1904_v28, %v1906_v8  ;;  %v1779_v61 = vrot.slane %v8706_v44, 2 }
 0x231   :  { %v1624_v34 = vsel %vm103_vm0, %v1621_v25, %v1623_v49  ;;  %v1538_v40 = vadd.f32 %v1474_v31, %v11198_v53  ;;  %6608 = vrot.lane.b32.xlu0 %v6607_v5, %s7257_s30  ;;  %6603 = vrot.lane.b32.xlu1 %v6602_v62, %s7258_s14  ;;  %v6612_v4 = vpack.i.bf16 %v1909_v19, %v1907_v12  ;;  %v1910_v8 = vrot.slane %v8706_v44, 6 }
 0x232   :  { %v8719_v16 = vadd.f32 %v1624_v34, %v1536_v43  ;;  %v11199_v43 = vmax.f32 %v8270_v54, 0.0  ;;  %v1845_v28 = vsel %vm301_vm3, %v1842_v20, %v1844_v9  ;;  %v1780_v5 = vsel %vm169_vm2, %v1777_v51, %v1779_v61 }
 0x233   :  { %v1625_v38 = vrot.slane %v1538_v40, 1  ;;  %v1422_v0 = vpop.permute.xlu1 %1421  ;;  %v1424_v24 = vpop.permute.xlu0 %1423 }
 0x234   :  { %v1475_v25 = vsel %vm1449_vm7, %v1422_v0, %v1424_v24  ;;  %v1846_v33 = vrot.slane %v8719_v16, 4  ;;  %v1781_v21 = vrot.slane %v8719_v16, 2  ;;  %v1912_v27 = vrot.slane %v8719_v16, 6 }
 0x235   :  { %v1626_v59 = vsel %vm103_vm0, %v1623_v49, %v1625_v38  ;;  %v1539_v14 = vadd.f32 %v1475_v25, %v11199_v43  ;;  %6613 = vrot.lane.b32.xlu1 %v6612_v4, %s7259_s15 }
 0x236   :  { %v8733_v48 = vadd.f32 %v1626_v59, %v1537_v35  ;;  %v1847_v46 = vsel %vm301_vm3, %v1844_v9, %v1846_v33  ;;  %v1782_v62 = vsel %vm169_vm2, %v1779_v61, %v1781_v21  ;;  %v1913_v12 = vsel %vm1868_vm8, %v1910_v8, %v1912_v27 }
 0x237   :  { %v1627_v31 = vrot.slane %v1539_v14, 1  ;;  %v1428_v19 = vpop.permute.xlu1 %1427  ;;  %v1426_v49 = vpop.permute.xlu0 %1425  ;;  %v6622_v34 = vpack.i.bf16 %v1847_v46, %v1845_v28  ;;  %v6617_v54 = vpack.i.bf16 %v1782_v62, %v1780_v5  ;;  %v11200_v35 = vmax.f32 %v8285_v63, 0.0 }
 0x238   :  { %v1476_v53 = vsel %vm1449_vm7, %v1426_v49, %v1428_v19  ;;  %v1848_v51 = vrot.slane %v8733_v48, 4  ;;  %v1911_v61 = vsel %vm1868_vm8, %v1908_v29, %v1910_v8  ;;  %v1783_v24 = vrot.slane %v8733_v48, 2 }
 0x239   :  { %v1628_v20 = vsel %vm103_vm0, %v1625_v38, %v1627_v31  ;;  %v1540_v0 = vadd.f32 %v1476_v53, %v11200_v35  ;;  %6623 = vrot.lane.b32.xlu1 %v6622_v34, %s7257_s30  ;;  %6618 = vrot.lane.b32.xlu0 %v6617_v54, %s7258_s14  ;;  %v6627_v43 = vpack.i.bf16 %v1913_v12, %v1911_v61  ;;  %v1914_v8 = vrot.slane %v8733_v48, 6 }
 0x23a   :  { %v8746_v9 = vadd.f32 %v1628_v20, %v1538_v40  ;;  %v11201_v40 = vmax.f32 %v8300_v42, 0.0  ;;  %v1849_v29 = vsel %vm301_vm3, %v1846_v33, %v1848_v51  ;;  %v1784_v34 = vsel %vm169_vm2, %v1781_v21, %v1783_v24 }
 0x23b   :  { %v1629_v4 = vrot.slane %v1540_v0, 1  ;;  %v1432_v25 = vpop.permute.xlu1 %1431  ;;  %v1430_v59 = vpop.permute.xlu0 %1429  ;;  %v1915_v21 = vsel %vm1868_vm8, %v1912_v27, %v1914_v8 }
 0x23c   :  { %v1477_v38 = vsel %vm1449_vm7, %v1430_v59, %v1432_v25  ;;  %v1850_v63 = vrot.slane %v8746_v9, 4  ;;  %v1785_v28 = vrot.slane %v8746_v9, 2  ;;  %v1916_v46 = vrot.slane %v8746_v9, 6 }
 0x23d   :  { %v1630_v5 = vsel %vm103_vm0, %v1627_v31, %v1629_v4  ;;  %v8757_v62 = vadd.f32 %v1477_v38, %v11201_v40  ;;  %6628 = vrot.lane.b32.xlu0 %v6627_v43, %s7259_s15 }
 0x23e   :  { %v8762_v19 = vadd.f32 %v1630_v5, %v1539_v14  ;;  %v1851_v49 = vsel %vm301_vm3, %v1848_v51, %v1850_v63  ;;  %v1786_v54 = vsel %vm169_vm2, %v1783_v24, %v1785_v28  ;;  %v1917_v12 = vsel %vm1868_vm8, %v1914_v8, %v1916_v46 }
 0x23f   :  { %v1631_v31 = vrot.slane %v8757_v62, 1  ;;  %v6637_v53 = vpack.i.bf16 %v1851_v49, %v1849_v29  ;;  %v6632_v42 = vpack.i.bf16 %v1786_v54, %v1784_v34  ;;  %v6642_v51 = vpack.i.bf16 %v1917_v12, %v1915_v21  ;;  %v1436_v8 = vpop.permute.xlu0 %1435 }
 0x240   :  { %v1852_v20 = vrot.slane %v8762_v19, 4  ;;  %v1787_v35 = vrot.slane %v8762_v19, 2 }
 0x241   :  { %v1632_v33 = vsel %vm103_vm0, %v1629_v4, %v1631_v31  ;;  %6638 = vrot.lane.b32.xlu0 %v6637_v53, %s7257_s30  ;;  %6633 = vrot.lane.b32.xlu1 %v6632_v42, %s7258_s14  ;;  %v1918_v4 = vrot.slane %v8762_v19, 6 }
 0x242   :  { %v8774_v14 = vadd.f32 %v1632_v33, %v1540_v0  ;;  %v1853_v0 = vsel %vm301_vm3, %v1850_v63, %v1852_v20  ;;  %v1788_v59 = vsel %vm169_vm2, %v1785_v28, %v1787_v35  ;;  %v1434_v28 = vpop.permute.xlu1 %1433 }
 0x243   :  { %v1919_v63 = vsel %vm1868_vm8, %v1916_v46, %v1918_v4  ;;  %v1478_v33 = vsel %vm1449_vm7, %v1434_v28, %v1436_v8 }
 0x244   :  { %v1854_v61 = vrot.slane %v8774_v14, 4  ;;  %v1789_v24 = vrot.slane %v8774_v14, 2  ;;  %v1920_v25 = vrot.slane %v8774_v14, 6 }
 0x245   :  { %6643 = vrot.lane.b32.xlu1 %v6642_v51, %s7259_s15 }
 0x246   :  { %v1855_v27 = vsel %vm301_vm3, %v1852_v20, %v1854_v61  ;;  %v1790_v43 = vsel %vm169_vm2, %v1787_v35, %v1789_v24  ;;  %v1921_v40 = vsel %vm1868_vm8, %v1918_v4, %v1920_v25 }
 0x247   :  { %v6652_v38 = vpack.i.bf16 %v1855_v27, %v1853_v0  ;;  %v6647_v5 = vpack.i.bf16 %v1790_v43, %v1788_v59  ;;  %v6657_v29 = vpack.i.bf16 %v1921_v40, %v1919_v63  ;;  %v11202_v27 = vmax.f32 %v8315_v13, 0.0  ;;  %v7185_v13 = vld [vmem:[%s11103_s3 + $0x114] ss:$8 sps:$4 sm:$0xff]  }
 0x249   :  { %6653 = vrot.lane.b32.xlu1 %v6652_v38, %s7257_s30  ;;  %6648 = vrot.lane.b32.xlu0 %v6647_v5, %s7258_s14  ;;  %v1542_v59 = vadd.f32 %v1478_v33, %v11202_v27 }
 0x24d   :  { %6658 = vrot.lane.b32.xlu0 %v6657_v29, %s7259_s15 }
 0x25b   :  { %v6474_v49 = vpop.permute.xlu1 %6473  ;;  %v6469_v34 = vpop.permute.xlu0 %6468 }
 0x25c   :  { %v6476_v54 = vunpack.i.h.bf16 %v6474_v49  ;;  %v6475_v53 = vunpack.i.l.bf16 %v6474_v49  ;;  %v6471_v42 = vunpack.i.h.bf16 %v6469_v34  ;;  %v6470_v12 = vunpack.i.l.bf16 %v6469_v34 }
 0x25e   :  { %v2356_v35 = vsel %vm2355_vm9, %v6470_v12, %v6475_v53  ;;  %v2357_v51 = vsel %vm2355_vm9, %v6471_v42, %v6476_v54  ;;  %v2323_v4 = vsel %vm2322_vm10, %v8391_v23, %v6470_v12  ;;  %v2324_v0 = vsel %vm2322_vm10, %v8389_v57, %v6471_v42  ;;  %v7180_v23 = vld [vmem:[%s11103_s3 + $0x100] ss:$8 sps:$4 sm:$0xff]   ;;  %v7183_v12 = vld [vmem:[%s11103_s3 + $0x110] ss:$8 sps:$4 sm:$0xff]  }
 0x25f   :  { %v8800_v21 = vpop.permute.xlu0 %6478  ;;  %v2454_v29 = vpack.c.bf16 %v2324_v0, %v2323_v4  ;;  %v1633_v54 = vrot.slane %v1542_v59, 1 }
 0x260   :  { %v11136_v46 = vunpack.i.h.bf16 %v8800_v21  ;;  %v11139_v20 = vunpack.i.l.bf16 %v8800_v21 }
 0x262   :  { %v2389_v43 = vsel %vm2388_vm11, %v2356_v35, %v11139_v20  ;;  %v2390_v38 = vsel %vm2388_vm11, %v2357_v51, %v11136_v46  ;;  %v7188_v51 = vld [vmem:[%s11103_s3 + $0x124] ss:$8 sps:$4 sm:$0xff]  }
 0x263   :  { %v6484_v5 = vpop.permute.xlu1 %6483  ;;  %v6489_v40 = vpop.permute.xlu0 %6488  ;;  %v2455_v63 = vpack.c.bf16 %v2390_v38, %v2389_v43  ;;  %v1634_v38 = vsel %vm103_vm0, %v1631_v31, %v1633_v54  ;;  %v7191_v31 = vld [vmem:[%s11103_s3 + $0x134] ss:$8 sps:$4 sm:$0xff]  }
 0x264   :  { %v6486_v28 = vunpack.i.h.bf16 %v6484_v5  ;;  %v6485_v8 = vunpack.i.l.bf16 %v6484_v5  ;;  %v6491_v49 = vunpack.i.h.bf16 %v6489_v40  ;;  %v6490_v34 = vunpack.i.l.bf16 %v6489_v40 }
 0x265   :  { %2935 = vmatprep.mubr.bf16.mxu1 %v2455_v63 }
 0x266   :  { %2936 = vmatmul.mubr.bf16.vlgmr.msra.gmra.mrb[0].mxu1 %v2454_v29  ;;  %v2358_v4 = vsel %vm2355_vm9, %v6485_v8, %v6490_v34  ;;  %v2359_v0 = vsel %vm2355_vm9, %v6486_v28, %v6491_v49  ;;  %v2325_v27 = vsel %vm2322_vm10, %v8404_v45, %v6485_v8  ;;  %v2326_v43 = vsel %vm2322_vm10, %v8418_v60, %v6486_v28 }
 0x267   :  { %v8824_v53 = vpop.permute.xlu1 %6493  ;;  %v1440_v42 = vpop.permute.xlu0 %1439  ;;  %3097 = vmatpush1.bf16.msra.mxu1 %v7180_v23  ;;  %v2458_v8 = vpack.c.bf16 %v2326_v43, %v2325_v27  ;;  %v8857_v49 = vadd.f32 %v1634_v38, %v8757_v62  ;;  %v7194_v38 = vld [vmem:[%s11103_s3 + $0x144] ss:$8 sps:$4 sm:$0xff]  }
 0x268   :  { %v11134_v33 = vunpack.i.h.bf16 %v8824_v53  ;;  %v11135_v35 = vunpack.i.l.bf16 %v8824_v53  ;;  %3098 = vmatprep.subr.bf16.mxu1 %v7185_v13  ;;  %v7186_v13 = vld [vmem:[%s11103_s3 + $0x120] ss:$8 sps:$4 sm:$0xff]  }
 0x26a   :  { %v2391_v5 = vsel %vm2388_vm11, %v2358_v4, %v11135_v35  ;;  %v2392_v40 = vsel %vm2388_vm11, %v2359_v0, %v11134_v33 }
 0x26b   :  { %v1438_v63 = vpop.permute.xlu1 %1437  ;;  %v6499_v23 = vpop.permute.xlu0 %6498  ;;  %v2459_v29 = vpack.c.bf16 %v2392_v40, %v2391_v5  ;;  %3099 = vmatpush1.bf16.msra.mxu1 %v7183_v12  ;;  %v1856_v40 = vrot.slane %v8857_v49, 4 }
 0x26c   :  { %v1479_v28 = vsel %vm1449_vm7, %v1438_v63, %v1440_v42  ;;  %3100 = vmatprep.subr.bf16.mxu1 %v7188_v51  ;;  %v6501_v4 = vunpack.i.h.bf16 %v6499_v23  ;;  %v6500_v0 = vunpack.i.l.bf16 %v6499_v23  ;;  %v7189_v51 = vld [vmem:[%s11103_s3 + $0x130] ss:$8 sps:$4 sm:$0xff]  }
 0x26d   :  { %v8861_v34 = vadd.f32 %v1479_v28, %v1251_v1  ;;  %2945 = vmatprep.mubr.bf16.mxu1 %v2459_v29 }
 0x26e   :  { %2946 = vmatmul.mubr.bf16.gmra.mrb[4].mxu1 %v2458_v8 }
 0x26f   :  { %v1635_v12 = vrot.slane %v8861_v34, 1  ;;  %v6504_v42 = vpop.permute.xlu1 %6503  ;;  %v8864_v27 = vpop.permute.xlu0 %6508  ;;  %3101 = vmatpush1.bf16.msra.mxu1 %v7186_v13  ;;  %v1791_v13 = vrot.slane %v8857_v49, 2 }
 0x270   :  { %v6506_v62 = vunpack.i.h.bf16 %v6504_v42  ;;  %v6505_v43 = vunpack.i.l.bf16 %v6504_v42  ;;  %v11138_v30 = vunpack.i.h.bf16 %v8864_v27  ;;  %v11137_v1 = vunpack.i.l.bf16 %v8864_v27  ;;  %3102 = vmatprep.subr.bf16.mxu1 %v7191_v31 }
 0x271   :  { %v1636_v5 = vsel %vm103_vm0, %v1633_v54, %v1635_v12  ;;  %v2328_v42 = vsel %vm2322_vm10, %v8446_v18, %v6501_v4 }
 0x272   :  { %v8878_v63 = vadd.f32 %v1636_v5, %v1542_v59  ;;  %v2360_v23 = vsel %vm2355_vm9, %v6500_v0, %v6505_v43  ;;  %v2361_v29 = vsel %vm2355_vm9, %v6501_v4, %v6506_v62  ;;  %v2327_v59 = vsel %vm2322_vm10, %v8432_v2, %v6500_v0  ;;  %v7192_v0 = vld [vmem:[%s11103_s3 + $0x140] ss:$8 sps:$4 sm:$0xff]  }
 0x273   :  { %v6514_v28 = vpop.permute.xlu1 %6513  ;;  %v6519_v8 = vpop.permute.xlu0 %6518  ;;  %v2393_v31 = vsel %vm2388_vm11, %v2360_v23, %v11137_v1  ;;  %v2394_v54 = vsel %vm2388_vm11, %v2361_v29, %v11138_v30  ;;  %3103 = vmatpush1.bf16.msra.mxu1 %v7189_v51  ;;  %v2462_v29 = vpack.c.bf16 %v2328_v42, %v2327_v59  ;;  %v1922_v4 = vrot.slane %v8857_v49, 6 }
 0x274   :  { %v6516_v62 = vunpack.i.h.bf16 %v6514_v28  ;;  %v6515_v43 = vunpack.i.l.bf16 %v6514_v28  ;;  %v6521_v5 = vunpack.i.h.bf16 %v6519_v8  ;;  %v6520_v33 = vunpack.i.l.bf16 %v6519_v8  ;;  %3104 = vmatprep.subr.bf16.mxu1 %v7194_v38 }
 0x275   :  { %v2463_v35 = vpack.c.bf16 %v2394_v54, %v2393_v31  ;;  %v1858_v46 = vrot.slane %v8878_v63, 4  ;;  %v1793_v23 = vrot.slane %v8878_v63, 2  ;;  %v1924_v1 = vrot.slane %v8878_v63, 6 }
 0x276   :  { %v1857_v38 = vsel %vm301_vm3, %v1854_v61, %v1856_v40  ;;  %v1792_v31 = vsel %vm169_vm2, %v1789_v24, %v1791_v13  ;;  %v2362_v24 = vsel %vm2355_vm9, %v6515_v43, %v6520_v33  ;;  %v2363_v20 = vsel %vm2355_vm9, %v6516_v62, %v6521_v5  ;;  %v7200_v33 = vld [vmem:[%s11103_s3 + $0x164] ss:$8 sps:$4 sm:$0xff]  }
 0x277   :  { %2955 = vmatprep.mubr.bf16.mxu1 %v2463_v35  ;;  %v8900_v51 = vpop.permute.xlu1 %6523  ;;  %v1442_v28 = vpop.permute.xlu0 %1441  ;;  %v1859_v8 = vsel %vm301_vm3, %v1856_v40, %v1858_v46  ;;  %v1794_v54 = vsel %vm169_vm2, %v1791_v13, %v1793_v23  ;;  %v7197_v35 = vld [vmem:[%s11103_s3 + $0x154] ss:$8 sps:$4 sm:$0xff]   ;;  %v1925_v40 = vsel %vm1868_vm8, %v1922_v4, %v1924_v1  ;;  %3105 = vmatpush1.bf16.msra.mxu1 %v7192_v0  ;;  %v7195_v13 = vld [vmem:[%s11103_s3 + $0x150] ss:$8 sps:$4 sm:$0xff]  }
 0x278   :  { %v11144_v59 = vunpack.i.h.bf16 %v8900_v51  ;;  %v11145_v61 = vunpack.i.l.bf16 %v8900_v51  ;;  %2956 = vmatmul.mubr.bf16.gmra.mrb[8].mxu1 %v2462_v29  ;;  %v6667_v42 = vpack.i.bf16 %v1859_v8, %v1857_v38  ;;  %v6662_v30 = vpack.i.bf16 %v1794_v54, %v1792_v31  ;;  %3106 = vmatprep.subr.bf16.mxu1 %v7197_v35 }
 0x279   :  { %v1923_v8 = vsel %vm1868_vm8, %v1920_v25, %v1922_v4  ;;  %v2330_v54 = vsel %vm2322_vm10, %v8480_v56, %v6516_v62  ;;  %v7203_v62 = vld [vmem:[%s11103_s3 + $0x174] ss:$8 sps:$4 sm:$0xff]  }
 0x27a   :  { %6668 = vrot.lane.b32.xlu0 %v6667_v42, %s7257_s30  ;;  %6663 = vrot.lane.b32.xlu1 %v6662_v30, %s7258_s14  ;;  %v2395_v29 = vsel %vm2388_vm11, %v2362_v24, %v11145_v61  ;;  %v2396_v38 = vsel %vm2388_vm11, %v2363_v20, %v11144_v59  ;;  %v2329_v30 = vsel %vm2322_vm10, %v8462_v55, %v6515_v43  ;;  %v7198_v24 = vld [vmem:[%s11103_s3 + $0x160] ss:$8 sps:$4 sm:$0xff]  }
 0x27b   :  { %v1444_v5 = vpop.permute.xlu1 %1443  ;;  %v6529_v0 = vpop.permute.xlu0 %6528  ;;  %v2467_v31 = vpack.c.bf16 %v2396_v38, %v2395_v29  ;;  %v6672_v42 = vpack.i.bf16 %v1925_v40, %v1923_v8  ;;  %3107 = vmatpush1.bf16.msra.mxu1 %v7195_v13  ;;  %v2466_v43 = vpack.c.bf16 %v2330_v54, %v2329_v30  ;;  %v7206_v8 = vld [vmem:[%s11103_s3 + $0x184] ss:$8 sps:$4 sm:$0xff]  }
 0x27c   :  { %v1480_v20 = vsel %vm1449_vm7, %v1442_v28, %v1444_v5  ;;  %3108 = vmatprep.subr.bf16.mxu1 %v7200_v33  ;;  %v6531_v4 = vunpack.i.h.bf16 %v6529_v0  ;;  %v6530_v28 = vunpack.i.l.bf16 %v6529_v0 }
 0x27d   :  { %2965 = vmatprep.mubr.bf16.mxu1 %v2467_v31  ;;  %v8951_v25 = vadd.f32 %v1480_v20, %v1253_v11  ;;  %v7201_v11 = vld [vmem:[%s11103_s3 + $0x170] ss:$8 sps:$4 sm:$0xff]  }
 0x27e   :  { %6673 = vrot.lane.b32.xlu1 %v6672_v42, %s7259_s15  ;;  %v2331_v42 = vsel %vm2322_vm10, %v8497_v58, %v6530_v28 }
 0x27f   :  { %v6534_v35 = vpop.permute.xlu1 %6533  ;;  %v8957_v40 = vpop.permute.xlu0 %6538  ;;  %3109 = vmatpush1.bf16.msra.mxu1 %v7198_v24  ;;  %v1637_v33 = vrot.slane %v8951_v25, 1  ;;  %v2332_v24 = vsel %vm2322_vm10, %v8519_v10, %v6531_v4 }
 0x280   :  { %v6536_v13 = vunpack.i.h.bf16 %v6534_v35  ;;  %v6535_v29 = vunpack.i.l.bf16 %v6534_v35  ;;  %v11140_v38 = vunpack.i.h.bf16 %v8957_v40  ;;  %v11143_v26 = vunpack.i.l.bf16 %v8957_v40  ;;  %2966 = vmatmul.mubr.bf16.gmra.mrb[12].mxu1 %v2466_v43  ;;  %3110 = vmatprep.subr.bf16.mxu1 %v7203_v62 }
 0x282   :  { %v2364_v5 = vsel %vm2355_vm9, %v6530_v28, %v6535_v29  ;;  %v2365_v0 = vsel %vm2355_vm9, %v6531_v4, %v6536_v13 }
 0x283   :  { %v6544_v31 = vpop.permute.xlu1 %6543  ;;  %v6549_v30 = vpop.permute.xlu0 %6548  ;;  %v2397_v54 = vsel %vm2388_vm11, %v2364_v5, %v11143_v26  ;;  %v2398_v20 = vsel %vm2388_vm11, %v2365_v0, %v11140_v38  ;;  %3111 = vmatpush1.bf16.msra.mxu1 %v7201_v11  ;;  %v7204_v5 = vld [vmem:[%s11103_s3 + $0x180] ss:$8 sps:$4 sm:$0xff]   ;;  %v1638_v0 = vsel %vm103_vm0, %v1635_v12, %v1637_v33  ;;  %v2470_v38 = vpack.c.bf16 %v2332_v24, %v2331_v42 }
 0x284   :  { %v6546_v43 = vunpack.i.h.bf16 %v6544_v31  ;;  %v6545_v62 = vunpack.i.l.bf16 %v6544_v31  ;;  %v6551_v35 = vunpack.i.h.bf16 %v6549_v30  ;;  %v6550_v13 = vunpack.i.l.bf16 %v6549_v30  ;;  %3112 = vmatprep.subr.bf16.mxu1 %v7206_v8 }
 0x285   :  { %v2471_v29 = vpack.c.bf16 %v2398_v20, %v2397_v54  ;;  %v8991_v11 = vadd.f32 %v1638_v0, %v8861_v34  ;;  %v7207_v0 = vld [vmem:[%s11103_s3 + $0x190] ss:$8 sps:$4 sm:$0xff]  }
 0x286   :  { %v2366_v54 = vsel %vm2355_vm9, %v6545_v62, %v6550_v13  ;;  %v2367_v20 = vsel %vm2355_vm9, %v6546_v43, %v6551_v35  ;;  %v2333_v34 = vsel %vm2322_vm10, %v8532_v6, %v6545_v62 }
 0x287   :  { %2975 = vmatprep.mubr.bf16.mxu1 %v2471_v29  ;;  %v8986_v28 = vpop.permute.xlu1 %6553  ;;  %v1446_v4 = vpop.permute.xlu0 %1445  ;;  %3113 = vmatpush1.bf16.msra.mxu1 %v7204_v5  ;;  %v1860_v5 = vrot.slane %v8991_v11, 4  ;;  %v1795_v37 = vrot.slane %v8991_v11, 2 }
 0x288   :  { %v11141_v31 = vunpack.i.h.bf16 %v8986_v28  ;;  %v11142_v30 = vunpack.i.l.bf16 %v8986_v28  ;;  %2976 = vmatmul.mubr.bf16.gmra.mrb[16].mxu1 %v2470_v38  ;;  %v2334_v38 = vsel %vm2322_vm10, %v8550_v22, %v6546_v43 }
 0x289   :  { %v2474_v62 = vpack.c.bf16 %v2334_v38, %v2333_v34  ;;  %v1926_v38 = vrot.slane %v8991_v11, 6 }
 0x28a   :  { %v2399_v12 = vsel %vm2388_vm11, %v2366_v54, %v11142_v30  ;;  %v2400_v8 = vsel %vm2388_vm11, %v2367_v20, %v11141_v31  ;;  %v7209_v54 = vld [vmem:[%s11103_s3 + $0x194] ss:$8 sps:$4 sm:$0xff]  }
 0x28b   :  { %v1448_v42 = vpop.permute.xlu1 %1447  ;;  %v6559_v24 = vpop.permute.xlu0 %6558  ;;  %v2475_v29 = vpack.c.bf16 %v2400_v8, %v2399_v12  ;;  %3114 = vmatprep.subr.bf16.mxu1 %v7209_v54 }
 0x28c   :  { %v1481_v35 = vsel %vm1449_vm7, %v1446_v4, %v1448_v42  ;;  %v6561_v12 = vunpack.i.h.bf16 %v6559_v24  ;;  %v6560_v43 = vunpack.i.l.bf16 %v6559_v24  ;;  %v1861_v24 = vsel %vm301_vm3, %v1858_v46, %v1860_v5  ;;  %3115 = vmatpush1.bf16.msra.mxu1 %v7207_v0 }
 0x28d   :  { %v1545_v13 = vadd.f32 %v1481_v35, %v1255_v32  ;;  %2985 = vmatprep.mubr.bf16.mxu1 %v2475_v29 }
 0x28f   :  { %v1639_v20 = vrot.slane %v1545_v13, 1  ;;  %v6564_v8 = vpop.permute.xlu1 %6563  ;;  %v9015_v4 = vpop.permute.xlu0 %6568 }
 0x290   :  { %11203 = vst [vmem:[#allocation3_spill] sm:$0xff] %v9015_v4  ;;  %v6566_v32 = vunpack.i.h.bf16 %v6564_v8  ;;  %v6565_v42 = vunpack.i.l.bf16 %v6564_v8  ;;  %v11147_v29 = vunpack.i.h.bf16 %v9015_v4  ;;  %v11146_v35 = vunpack.i.l.bf16 %v9015_v4  ;;  %2986 = vmatmul.mubr.bf16.gmra.mrb[20].mxu1 %v2474_v62 }
 0x291   :  { %v1640_v31 = vsel %vm103_vm0, %v1637_v33, %v1639_v20  ;;  %v1673_v34 = vsel %vm103_vm0, %v1639_v20, 0.0  ;;  %vm4681_vm0 = vcmask 130048  }
 0x292   :  { %v9027_v54 = vadd.f32 %v1640_v31, %v8951_v25  ;;  %v9029_v8 = vadd.f32 %v1673_v34, %v1545_v13  ;;  %v2368_v30 = vsel %vm2355_vm9, %v6560_v43, %v6565_v42  ;;  %v2369_v62 = vsel %vm2355_vm9, %v6561_v12, %v6566_v32 }
 0x293   :  { %v6574_v26 = vpop.permute.xlu1 %6573  ;;  %v6579_v33 = vpop.permute.xlu0 %6578  ;;  %v2401_v20 = vsel %vm2388_vm11, %v2368_v30, %v11146_v35  ;;  %v2402_v46 = vsel %vm2388_vm11, %v2369_v62, %v11147_v29  ;;  %v2335_v25 = vsel %vm2322_vm10, %v8564_v17, %v6560_v43  ;;  %v2336_v31 = vsel %vm2322_vm10, %v8580_v41, %v6561_v12 }
 0x294   :  { %v6576_v13 = vunpack.i.h.bf16 %v6574_v26  ;;  %v6575_v0 = vunpack.i.l.bf16 %v6574_v26  ;;  %v6581_v42 = vunpack.i.h.bf16 %v6579_v33  ;;  %v6580_v32 = vunpack.i.l.bf16 %v6579_v33 }
 0x295   :  { %v2479_v34 = vpack.c.bf16 %v2402_v46, %v2401_v20  ;;  %v1862_v59 = vrot.slane %v9027_v54, 4  ;;  %v1797_v61 = vrot.slane %v9027_v54, 2  ;;  %v1799_v30 = vrot.slane %v9029_v8, 2 }
 0x296   :  { %v2478_v35 = vpack.c.bf16 %v2336_v31, %v2335_v25  ;;  %v1796_v62 = vsel %vm169_vm2, %v1793_v23, %v1795_v37  ;;  %v1927_v12 = vsel %vm1868_vm8, %v1924_v1, %v1926_v38  ;;  %v1928_v26 = vrot.slane %v9027_v54, 6 }
 0x297   :  { %2995 = vmatprep.mubr.bf16.mxu1 %v2479_v34  ;;  %v9053_v43 = vpop.permute.xlu1 %6583  ;;  %v1863_v33 = vsel %vm301_vm3, %v1860_v5, %v1862_v59  ;;  %v1798_v20 = vsel %vm169_vm2, %v1795_v37, %v1797_v61  ;;  %v1800_v46 = vsel %vm169_vm2, %v1797_v61, %v1799_v30  ;;  %v1802_v25 = vsel %vm169_vm2, %v1799_v30, 0.0 }
 0x298   :  { %v11152_v31 = vunpack.i.h.bf16 %v9053_v43  ;;  %v6585_v23 = vunpack.i.l.bf16 %v9053_v43  ;;  %2996 = vmatmul.mubr.bf16.gmra.mrb[24].mxu1 %v2478_v35  ;;  %v6682_v29 = vpack.i.bf16 %v1863_v33, %v1861_v24  ;;  %v6677_v1 = vpack.i.bf16 %v1798_v20, %v1796_v62 }
 0x299   :  { %v1929_v7 = vsel %vm1868_vm8, %v1926_v38, %v1928_v26  ;;  %v2370_v34 = vsel %vm2355_vm9, %v6575_v0, %v6580_v32  ;;  %v2371_v4 = vsel %vm2355_vm9, %v6576_v13, %v6581_v42  ;;  %v1930_v5 = vrot.slane %v9029_v8, 6 }
 0x29a   :  { %6683 = vrot.lane.b32.xlu1 %v6682_v29, %s7257_s30  ;;  %6678 = vrot.lane.b32.xlu0 %v6677_v1, %s7258_s14  ;;  %v2403_v61 = vsel %vm2388_vm11, %v2370_v34, %v6585_v23  ;;  %v2404_v37 = vsel %vm2388_vm11, %v2371_v4, %v11152_v31  ;;  %v2337_v35 = vsel %vm2322_vm10, %v8598_v15, %v6575_v0  ;;  %v1864_v24 = vrot.slane %v9029_v8, 4  ;;  %v2570_v4 = vld [vmem:[%s11103_s3 + $0x1a0] sm:$0x33]  ;;  %s7260_s3 = smov 80  }
 0x29b   :  { %v6594_v38 = vpop.permute.xlu1 %6593  ;;  %v6589_v42 = vpop.permute.xlu0 %6588  ;;  %v6692_v32 = vpack.i.bf16 %v1802_v25, %v1800_v46  ;;  %v6687_v30 = vpack.i.bf16 %v1929_v7, %v1927_v12  ;;  %v2483_v29 = vpack.c.bf16 %v2404_v37, %v2403_v61  ;;  %v2338_v62 = vsel %vm2322_vm10, %v8617_v52, %v6576_v13 }
 0x29c   :  { %v6596_v33 = vunpack.i.h.bf16 %v6594_v38  ;;  %v6595_v20 = vunpack.i.l.bf16 %v6594_v38  ;;  %v1931_v1 = vsel %vm1868_vm8, %v1928_v26, %v1930_v5  ;;  %v1933_v34 = vsel %vm1868_vm8, %v1930_v5, 0.0 }
 0x29d   :  { %v6591_v0 = vunpack.i.h.bf16 %v6589_v42  ;;  %v6590_v31 = vunpack.i.l.bf16 %v6589_v42  ;;  %3005 = vmatprep.mubr.bf16.mxu1 %v2483_v29  ;;  %v1865_v46 = vsel %vm301_vm3, %v1862_v59, %v1864_v24  ;;  %v1867_v7 = vsel %vm301_vm3, %v1864_v24, 0.0 }
 0x29e   :  { %6693 = vrot.lane.b32.xlu1 %v6692_v32, %s7258_s14  ;;  %6688 = vrot.lane.b32.xlu0 %v6687_v30, %s7259_s15  ;;  %v2482_v13 = vpack.c.bf16 %v2338_v62, %v2337_v35  ;;  %v6702_v26 = vpack.i.bf16 %v1933_v34, %v1931_v1  ;;  %v5737_v25 = vcombine.high %v2570_v4, %v2570_v4 }
 0x29f   :  { %v9087_v12 = vpop.permute.xlu0 %6598  ;;  %v6697_v37 = vpack.i.bf16 %v1867_v7, %v1865_v46  ;;  %v5736_v38 = vcombine.low %v2570_v4, %v2570_v4  ;;  %v2372_v59 = vsel %vm2355_vm9, %v6590_v31, %v6595_v20  ;;  %v2373_v24 = vsel %vm2355_vm9, %v6591_v0, %v6596_v33 }
 0x2a0   :  { %v6601_v5 = vunpack.i.h.bf16 %v9087_v12  ;;  %v6600_v61 = vunpack.i.l.bf16 %v9087_v12  ;;  %3006 = vmatmul.mubr.bf16.gmra.mrb[28].mxu1 %v2482_v13  ;;  %5738 = vmatprep.subr.msk.bf16.mxu1 %vm1868_vm8, %v5737_v25  ;;  %v2339_v33 = vsel %vm2322_vm10, %v8631_v39, %v6590_v31  ;;  %v2340_v20 = vsel %vm2322_vm10, %v8649_v47, %v6591_v0 }
 0x2a1   :  { %v2898_v32 = vsel %vm1868_vm8, %v5736_v38, 0  ;;  %v6712_v1 = vpack.i.bf16 %v8432_v2, %v8418_v60  ;;  %v6707_v34 = vpack.i.bf16 %v8404_v45, %v8389_v57  ;;  %v2486_v31 = vpack.c.bf16 %v2340_v20, %v2339_v33 }
 0x2a2   :  { %6703 = vrot.lane.b32.xlu1 %v6702_v26, %s7259_s15  ;;  %6698 = vrot.lane.b32.xlu0 %v6697_v37, %s7257_s30  ;;  %v2405_v35 = vsel %vm2388_vm11, %v2372_v59, %v6600_v61  ;;  %v2406_v42 = vsel %vm2388_vm11, %v2373_v24, %v6601_v5  ;;  %v6722_v57 = vpack.i.bf16 %v8497_v58, %v8480_v56 }
 0x2a3   :  { %v6604_v30 = vpop.permute.xlu1 %6603  ;;  %v6609_v29 = vpop.permute.xlu0 %6608  ;;  %v2487_v62 = vpack.c.bf16 %v2406_v42, %v2405_v35  ;;  %3117 = vmatpush1.bf16.msra.mxu1 %v2898_v32  ;;  %v6717_v45 = vpack.i.bf16 %v8462_v55, %v8446_v18  ;;  %v6732_v24 = vpack.i.bf16 %v8564_v17, %v8550_v22  ;;  %v6727_v35 = vpack.i.bf16 %v8532_v6, %v8519_v10 }
 0x2a4   :  { %v6606_v4 = vunpack.i.h.bf16 %v6604_v30  ;;  %v6605_v46 = vunpack.i.l.bf16 %v6604_v30  ;;  %v6611_v7 = vunpack.i.h.bf16 %v6609_v29  ;;  %v6610_v13 = vunpack.i.l.bf16 %v6609_v29 }
 0x2a5   :  { %3015 = vmatprep.mubr.bf16.mxu1 %v2487_v62  ;;  %v6742_v10 = vpack.i.bf16 %v8631_v39, %v8617_v52  ;;  %v6737_v6 = vpack.i.bf16 %v8598_v15, %v8580_v41 }
 0x2a6   :  { %6713 = vrot.lane.b32.xlu1 %v6712_v1, %s7260_s3  ;;  %6708 = vrot.lane.b32.xlu0 %v6707_v34, %s7260_s3  ;;  %v2374_v2 = vsel %vm2355_vm9, %v6605_v46, %v6610_v13  ;;  %v2375_v25 = vsel %vm2355_vm9, %v6606_v4, %v6611_v7  ;;  %v2341_v18 = vsel %vm2322_vm10, %v8662_v3, %v6605_v46 }
 0x2a7   :  { %v9113_v26 = vpop.permute.xlu1 %6613  ;;  %v2342_v55 = vsel %vm2322_vm10, %v8679_v50, %v6606_v4  ;;  %v6752_v7 = vpack.i.bf16 %v8692_v36, %v8679_v50  ;;  %v6747_v13 = vpack.i.bf16 %v8662_v3, %v8649_v47  ;;  %v6762_v47 = vpack.i.bf16 %v8746_v9, %v8733_v48 }
 0x2a8   :  { %v6616_v0 = vunpack.i.h.bf16 %v9113_v26  ;;  %v6615_v60 = vunpack.i.l.bf16 %v9113_v26  ;;  %3016 = vmatmul.mubr.bf16.gmra.mrb[32].mxu1 %v2486_v31  ;;  %v2490_v62 = vpack.c.bf16 %v2342_v55, %v2341_v18  ;;  %v6757_v3 = vpack.i.bf16 %v8719_v16, %v8706_v44 }
 0x2aa   :  { %6723 = vrot.lane.b32.xlu1 %v6722_v57, %s7260_s3  ;;  %6718 = vrot.lane.b32.xlu0 %v6717_v45, %s7260_s3  ;;  %v2407_v37 = vsel %vm2388_vm11, %v2374_v2, %v6615_v60  ;;  %v2408_v38 = vsel %vm2388_vm11, %v2375_v25, %v6616_v0 }
 0x2ab   :  { %v6624_v56 = vpop.permute.xlu1 %6623  ;;  %v6619_v58 = vpop.permute.xlu0 %6618  ;;  %v2491_v59 = vpack.c.bf16 %v2408_v38, %v2407_v37 }
 0x2ac   :  { %v6626_v42 = vunpack.i.h.bf16 %v6624_v56  ;;  %v6625_v32 = vunpack.i.l.bf16 %v6624_v56  ;;  %v6621_v30 = vunpack.i.h.bf16 %v6619_v58  ;;  %v6620_v29 = vunpack.i.l.bf16 %v6619_v58 }
 0x2ad   :  { %3025 = vmatprep.mubr.bf16.mxu1 %v2491_v59 }
 0x2ae   :  { %6733 = vrot.lane.b32.xlu1 %v6732_v24, %s7260_s3  ;;  %6728 = vrot.lane.b32.xlu0 %v6727_v35, %s7260_s3  ;;  %v2376_v22 = vsel %vm2355_vm9, %v6620_v29, %v6625_v32  ;;  %v2377_v17 = vsel %vm2355_vm9, %v6621_v30, %v6626_v42  ;;  %v2343_v41 = vsel %vm2322_vm10, %v8692_v36, %v6620_v29 }
 0x2af   :  { %v9141_v33 = vpop.permute.xlu0 %6628  ;;  %v2344_v15 = vsel %vm2322_vm10, %v8706_v44, %v6621_v30  ;;  %v6772_v42 = vpack.i.bf16 %v8878_v63, %v8857_v49  ;;  %v6767_v32 = vpack.i.bf16 %v8774_v14, %v8762_v19 }
 0x2b0   :  { %v6631_v20 = vunpack.i.h.bf16 %v9141_v33  ;;  %v6630_v1 = vunpack.i.l.bf16 %v9141_v33  ;;  %3026 = vmatmul.mubr.bf16.gmra.mrb[36].mxu1 %v2490_v62  ;;  %v2494_v25 = vpack.c.bf16 %v2344_v15, %v2343_v41 }
 0x2b2   :  { %6743 = vrot.lane.b32.xlu1 %v6742_v10, %s7260_s3  ;;  %6738 = vrot.lane.b32.xlu0 %v6737_v6, %s7260_s3  ;;  %v2409_v34 = vsel %vm2388_vm11, %v2376_v22, %v6630_v1  ;;  %v2410_v4 = vsel %vm2388_vm11, %v2377_v17, %v6631_v20  ;;  %v11153_v17 = vmov 0.0  }
 0x2b3   :  { %v6634_v52 = vpop.permute.xlu1 %6633  ;;  %v6639_v39 = vpop.permute.xlu0 %6638  ;;  %v2495_v46 = vpack.c.bf16 %v2410_v4, %v2409_v34  ;;  %v6782_v34 = vpack.i.bf16 %v11153_v17, %v9029_v8  ;;  %v6777_v4 = vpack.i.bf16 %v9027_v54, %v8991_v11 }
 0x2b4   :  { %v6636_v31 = vunpack.i.h.bf16 %v6634_v52  ;;  %v6635_v57 = vunpack.i.l.bf16 %v6634_v52  ;;  %v6641_v45 = vunpack.i.h.bf16 %v6639_v39  ;;  %v6640_v2 = vunpack.i.l.bf16 %v6639_v39 }
 0x2b5   :  { %3035 = vmatprep.mubr.bf16.mxu1 %v2495_v46 }
 0x2b6   :  { %6753 = vrot.lane.b32.xlu1 %v6752_v7, %s7260_s3  ;;  %6748 = vrot.lane.b32.xlu0 %v6747_v13, %s7260_s3  ;;  %v2378_v50 = vsel %vm2355_vm9, %v6635_v57, %v6640_v2  ;;  %v2379_v36 = vsel %vm2355_vm9, %v6636_v31, %v6641_v45  ;;  %v2345_v44 = vsel %vm2322_vm10, %v8719_v16, %v6635_v57 }
 0x2b7   :  { %v9169_v37 = vpop.permute.xlu1 %6643  ;;  %v2346_v35 = vsel %vm2322_vm10, %v8733_v48, %v6636_v31 }
 0x2b8   :  { %v6646_v38 = vunpack.i.h.bf16 %v9169_v37  ;;  %v6645_v56 = vunpack.i.l.bf16 %v9169_v37  ;;  %3036 = vmatmul.mubr.bf16.gmra.mrb[40].mxu1 %v2494_v25  ;;  %v2498_v6 = vpack.c.bf16 %v2346_v35, %v2345_v44 }
 0x2ba   :  { %6763 = vrot.lane.b32.xlu1 %v6762_v47, %s7260_s3  ;;  %6758 = vrot.lane.b32.xlu0 %v6757_v3, %s7260_s3  ;;  %v2411_v58 = vsel %vm2388_vm11, %v2378_v50, %v6645_v56  ;;  %v2412_v59 = vsel %vm2388_vm11, %v2379_v36, %v6646_v38 }
 0x2bb   :  { %v6654_v18 = vpop.permute.xlu1 %6653  ;;  %v6649_v55 = vpop.permute.xlu0 %6648  ;;  %v2499_v24 = vpack.c.bf16 %v2412_v59, %v2411_v58 }
 0x2bc   :  { %v6656_v30 = vunpack.i.h.bf16 %v6654_v18  ;;  %v6655_v29 = vunpack.i.l.bf16 %v6654_v18  ;;  %v6651_v62 = vunpack.i.h.bf16 %v6649_v55  ;;  %v6650_v10 = vunpack.i.l.bf16 %v6649_v55 }
 0x2bd   :  { %3045 = vmatprep.mubr.bf16.mxu1 %v2499_v24 }
 0x2be   :  { %6773 = vrot.lane.b32.xlu1 %v6772_v42, %s7260_s3  ;;  %6768 = vrot.lane.b32.xlu0 %v6767_v32, %s7260_s3  ;;  %v2380_v52 = vsel %vm2355_vm9, %v6650_v10, %v6655_v29  ;;  %v2381_v39 = vsel %vm2355_vm9, %v6651_v62, %v6656_v30  ;;  %v2347_v7 = vsel %vm2322_vm10, %v8746_v9, %v6650_v10 }
 0x2bf   :  { %v9197_v16 = vpop.permute.xlu0 %6658  ;;  %v2348_v13 = vsel %vm2322_vm10, %v8762_v19, %v6651_v62 }
 0x2c0   :  { %v6661_v48 = vunpack.i.h.bf16 %v9197_v16  ;;  %v6660_v22 = vunpack.i.l.bf16 %v9197_v16  ;;  %3046 = vmatmul.mubr.bf16.gmra.mrb[44].mxu1 %v2498_v6  ;;  %v2502_v31 = vpack.c.bf16 %v2348_v13, %v2347_v7 }
 0x2c2   :  { %6783 = vrot.lane.b32.xlu1 %v6782_v34, %s7260_s3  ;;  %6778 = vrot.lane.b32.xlu0 %v6777_v4, %s7260_s3  ;;  %v2413_v46 = vsel %vm2388_vm11, %v2380_v52, %v6660_v22  ;;  %v2414_v41 = vsel %vm2388_vm11, %v2381_v39, %v6661_v48 }
 0x2c3   :  { %v2503_v15 = vpack.c.bf16 %v2414_v41, %v2413_v46 }
 0x2c5   :  { %3055 = vmatprep.mubr.bf16.mxu1 %v2503_v15 }
 0x2c8   :  { %3056 = vmatmul.mubr.bf16.gmra.mrb[48].mxu1 %v2502_v31 }
 0x2ec   :  { %v6664_v57 = vpop.permute.xlu1 %6663  ;;  %v6669_v45 = vpop.permute.xlu0 %6668 }
 0x2ed   :  { %v6666_v2 = vunpack.i.h.bf16 %v6664_v57  ;;  %v6665_v25 = vunpack.i.l.bf16 %v6664_v57  ;;  %v6671_v47 = vunpack.i.h.bf16 %v6669_v45  ;;  %v6670_v3 = vunpack.i.l.bf16 %v6669_v45 }
 0x2ef   :  { %v2382_v9 = vsel %vm2355_vm9, %v6665_v25, %v6670_v3  ;;  %v2383_v59 = vsel %vm2355_vm9, %v6666_v2, %v6671_v47  ;;  %v2349_v19 = vsel %vm2322_vm10, %v8774_v14, %v6665_v25  ;;  %v2350_v18 = vsel %vm2322_vm10, %v8857_v49, %v6666_v2 }
 0x2f0   :  { %v9219_v50 = vpop.permute.xlu1 %6673  ;;  %v2506_v35 = vpack.c.bf16 %v2350_v18, %v2349_v19 }
 0x2f1   :  { %v6676_v36 = vunpack.i.h.bf16 %v9219_v50  ;;  %v6675_v58 = vunpack.i.l.bf16 %v9219_v50  ;;  %v11220_v50 = vld [vmem:[#allocation2_spill] sm:$0xff] }
 0x2f3   :  { %v2415_v55 = vsel %vm2388_vm11, %v2382_v9, %v6675_v58  ;;  %v2416_v24 = vsel %vm2388_vm11, %v2383_v59, %v6676_v36 }
 0x2f4   :  { %v2507_v44 = vpack.c.bf16 %v2416_v24, %v2415_v55 }
 0x2f6   :  { %3065 = vmatprep.mubr.bf16.mxu1 %v2507_v44 }
 0x2f7   :  { %3066 = vmatmul.mubr.bf16.gmra.mrb[52].mxu1 %v2506_v35 }
 0x30c   :  { %v6684_v42 = vpop.permute.xlu1 %6683  ;;  %v6679_v32 = vpop.permute.xlu0 %6678 }
 0x30d   :  { %v6681_v30 = vunpack.i.h.bf16 %v6679_v32  ;;  %v6680_v29 = vunpack.i.l.bf16 %v6679_v32  ;;  %v6686_v14 = vunpack.i.h.bf16 %v6684_v42  ;;  %v6685_v62 = vunpack.i.l.bf16 %v6684_v42 }
 0x30f   :  { %v2351_v4 = vsel %vm2322_vm10, %v8878_v63, %v6680_v29  ;;  %v2352_v52 = vsel %vm2322_vm10, %v8991_v11, %v6681_v30  ;;  %v2384_v39 = vsel %vm2355_vm9, %v6680_v29, %v6685_v62  ;;  %v2385_v46 = vsel %vm2355_vm9, %v6681_v30, %v6686_v14 }
 0x310   :  { %v6694_v10 = vpop.permute.xlu1 %6693  ;;  %v9235_v49 = vpop.permute.xlu0 %6688  ;;  %v2510_v45 = vpack.c.bf16 %v2352_v52, %v2351_v4 }
 0x311   :  { %v6691_v6 = vunpack.i.h.bf16 %v9235_v49  ;;  %v6690_v34 = vunpack.i.l.bf16 %v9235_v49  ;;  %v6696_v7 = vunpack.i.h.bf16 %v6694_v10  ;;  %v6695_v13 = vunpack.i.l.bf16 %v6694_v10 }
 0x313   :  { %v2417_v41 = vsel %vm2388_vm11, %v2384_v39, %v6690_v34  ;;  %v2418_v15 = vsel %vm2388_vm11, %v2385_v46, %v6691_v6  ;;  %v2353_v24 = vsel %vm2322_vm10, %v9027_v54, %v6695_v13  ;;  %v2354_v32 = vsel %vm2322_vm10, %v9029_v8, %v6696_v7 }
 0x314   :  { %v9251_v31 = vpop.permute.xlu1 %6703  ;;  %v6699_v63 = vpop.permute.xlu0 %6698  ;;  %v2511_v57 = vpack.c.bf16 %v2418_v15, %v2417_v41  ;;  %v2514_v14 = vpack.c.bf16 %v2354_v32, %v2353_v24  ;;  %v11204_v39 = vunpack.i.l.bf16 %v8800_v21  ;;  %v11205_v8 = vunpack.i.h.bf16 %v8800_v21 }
 0x315   :  { %v6706_v11 = vunpack.i.h.bf16 %v9251_v31  ;;  %v6705_v2 = vunpack.i.l.bf16 %v9251_v31  ;;  %v6701_v25 = vunpack.i.h.bf16 %v6699_v63  ;;  %v6700_v47 = vunpack.i.l.bf16 %v6699_v63 }
 0x316   :  { %3075 = vmatprep.mubr.bf16.mxu1 %v2511_v57 }
 0x317   :  { %3076 = vmatmul.mubr.bf16.gmra.mrb[56].mxu1 %v2510_v45  ;;  %v2386_v3 = vsel %vm2355_vm9, %v6695_v13, %v6700_v47  ;;  %v2387_v9 = vsel %vm2355_vm9, %v6696_v7, %v6701_v25 }
 0x318   :  { %v6714_v59 = vpop.permute.xlu1 %6713  ;;  %v6709_v19 = vpop.permute.xlu0 %6708  ;;  %v2419_v18 = vsel %vm2388_vm11, %v2386_v3, %v6705_v2  ;;  %v2420_v55 = vsel %vm2388_vm11, %v2387_v9, %v6706_v11  ;;  %v11206_v3 = vunpack.i.l.bf16 %v8824_v53  ;;  %v11207_v9 = vunpack.i.h.bf16 %v8824_v53 }
 0x319   :  { %v6711_v44 = vunpack.i.h.bf16 %v6709_v19  ;;  %v6710_v35 = vunpack.i.l.bf16 %v6709_v19  ;;  %v2515_v42 = vpack.c.bf16 %v2420_v55, %v2419_v18  ;;  %v6716_v54 = vunpack.i.h.bf16 %v6714_v59 }
 0x31a   :  { %v6715_v52 = vunpack.i.l.bf16 %v6714_v59  ;;  %v11209_v53 = vunpack.i.h.bf16 %v8864_v27 }
 0x31b   :  { %3085 = vmatprep.mubr.bf16.mxu1 %v2515_v42  ;;  %v2457_v62 = vpack.c.bf16 %v6711_v44, %v6710_v35  ;;  %v2422_v46 = vsel %vm2421_vm13, %v11204_v39, %v6710_v35  ;;  %v2423_v41 = vsel %vm2421_vm13, %v11205_v8, %v6711_v44  ;;  %v2425_v59 = vsel %vm2421_vm13, %v11207_v9, %v6716_v54 }
 0x31c   :  { %v6724_v30 = vpop.permute.xlu1 %6723  ;;  %v6719_v29 = vpop.permute.xlu0 %6718  ;;  %v2456_v13 = vpack.c.bf16 %v2423_v41, %v2422_v46  ;;  %v2461_v63 = vpack.c.bf16 %v6716_v54, %v6715_v52  ;;  %v2424_v21 = vsel %vm2421_vm13, %v11206_v3, %v6715_v52  ;;  %v11208_v42 = vunpack.i.l.bf16 %v8864_v27 }
 0x31d   :  { %v6721_v25 = vunpack.i.h.bf16 %v6719_v29  ;;  %v6720_v47 = vunpack.i.l.bf16 %v6719_v29  ;;  %v2460_v55 = vpack.c.bf16 %v2425_v59, %v2424_v21  ;;  %v11210_v21 = vunpack.i.l.bf16 %v8900_v51 }
 0x31e   :  { %v11211_v59 = vunpack.i.h.bf16 %v8900_v51 }
 0x31f   :  { %3086 = vmatmul.mubr.bf16.gmra.mrb[60].mxu1 %v2514_v14  ;;  %v2465_v24 = vpack.c.bf16 %v6721_v25, %v6720_v47  ;;  %v2426_v32 = vsel %vm2421_vm13, %v11208_v42, %v6720_v47  ;;  %v2427_v29 = vsel %vm2421_vm13, %v11209_v53, %v6721_v25  ;;  %v6726_v14 = vunpack.i.h.bf16 %v6724_v30 }
 0x320   :  { %v9267_v10 = vpop.permute.xlu1 %6733  ;;  %v6729_v4 = vpop.permute.xlu0 %6728  ;;  %5739 = vmatprep.mubr.msk.bf16.mxu1 %vm2848_vm12, %v2457_v62  ;;  %v6725_v62 = vunpack.i.l.bf16 %v6724_v30  ;;  %v2464_v39 = vpack.c.bf16 %v2427_v29, %v2426_v32  ;;  %v11212_v42 = vunpack.i.l.bf16 %v8957_v40  ;;  %v11213_v32 = vunpack.i.h.bf16 %v8957_v40 }
 0x321   :  { %v6730_v3 = vunpack.i.l.bf16 %v6729_v4  ;;  %v6736_v31 = vunpack.i.h.bf16 %v9267_v10 }
 0x322   :  { %v2428_v9 = vsel %vm2421_vm13, %v11210_v21, %v6725_v62 }
 0x324   :  { %v9276_v15 = vpop.permute.xlu1 %6743  ;;  %v9278_v7 = vpop.permute.xlu0 %6738 }
 0x327   :  { %3129 = vmatmul.mubr.bf16.vlgmr.msra.gmra.mrb[0].mxu1 %v2456_v13 }
 0x328   :  { %v9280_v57 = vpop.permute.xlu1 %6753  ;;  %v9282_v45 = vpop.permute.xlu0 %6748  ;;  %5740 = vmatprep.mubr.msk.bf16.mxu1 %vm2848_vm12, %v2461_v63  ;;  %v2469_v63 = vpack.c.bf16 %v6726_v14, %v6725_v62  ;;  %v6740_v62 = vunpack.i.l.bf16 %v9278_v7 }
 0x32c   :  { %v9291_v19 = vpop.permute.xlu1 %6763  ;;  %v9293_v18 = vpop.permute.xlu0 %6758 }
 0x32f   :  { %3139 = vmatmul.mubr.bf16.gmra.mrb[4].mxu1 %v2460_v55 }
 0x330   :  { %v9295_v44 = vpop.permute.xlu1 %6773  ;;  %v9297_v35 = vpop.permute.xlu0 %6768  ;;  %5741 = vmatprep.mubr.msk.bf16.mxu1 %vm2848_vm12, %v2465_v24 }
 0x334   :  { %v9306_v54 = vpop.permute.xlu1 %6783  ;;  %v9308_v52 = vpop.permute.xlu0 %6778 }
 0x335   :  { %v6786_v46 = vunpack.i.h.bf16 %v9306_v54  ;;  %v6785_v8 = vunpack.i.l.bf16 %v9306_v54  ;;  %v6781_v41 = vunpack.i.h.bf16 %v9308_v52  ;;  %v6780_v13 = vunpack.i.l.bf16 %v9308_v52 }
 0x336   :  { %v11222_v54 = vsub.s32 1, %v11220_v50 }
 0x337   :  { %3149 = vmatmul.mubr.bf16.gmra.mrb[8].mxu1 %v2464_v39  ;;  %v9319_v27 = vsel %vm2421_vm13, %v6690_v34, %v6780_v13  ;;  %v9326_v30 = vsel %vm2421_vm13, %v6691_v6, %v6781_v41  ;;  %v9336_v47 = vsel %vm2421_vm13, %v6705_v2, %v6785_v8  ;;  %v9343_v49 = vsel %vm2421_vm13, %v6706_v11, %v6786_v46 }
 0x338   :  { %5742 = vmatprep.mubr.msk.bf16.mxu1 %vm2848_vm12, %v2469_v63  ;;  %v2512_v25 = vpack.c.bf16 %v9326_v30, %v9319_v27  ;;  %v2516_v6 = vpack.c.bf16 %v9343_v49, %v9336_v47  ;;  %v6731_v34 = vunpack.i.h.bf16 %v6729_v4  ;;  %v2429_v2 = vsel %vm2421_vm13, %v11211_v59, %v6726_v14  ;;  %v11216_v59 = vld [vmem:[#allocation3_spill] sm:$0xff] }
 0x339   :  { %v2468_v55 = vpack.c.bf16 %v2429_v2, %v2428_v9  ;;  %v6735_v11 = vunpack.i.l.bf16 %v9267_v10  ;;  %v2430_v4 = vsel %vm2421_vm13, %v11212_v42, %v6730_v3  ;;  %v6741_v14 = vunpack.i.h.bf16 %v9278_v7 }
 0x33a   :  { %v2473_v24 = vpack.c.bf16 %v6731_v34, %v6730_v3  ;;  %v2431_v53 = vsel %vm2421_vm13, %v11213_v32, %v6731_v34  ;;  %v11214_v39 = vunpack.i.l.bf16 %v8986_v28  ;;  %v11215_v63 = vunpack.i.h.bf16 %v8986_v28 }
 0x33b   :  { %v2472_v51 = vpack.c.bf16 %v2431_v53, %v2430_v4  ;;  %v2477_v29 = vpack.c.bf16 %v6736_v31, %v6735_v11  ;;  %v2481_v21 = vpack.c.bf16 %v6741_v14, %v6740_v62  ;;  %v6746_v34 = vunpack.i.h.bf16 %v9276_v15 }
 0x33c   :  { %v2432_v10 = vsel %vm2421_vm13, %v11214_v39, %v6735_v11  ;;  %v2433_v3 = vsel %vm2421_vm13, %v11215_v63, %v6736_v31  ;;  %v6745_v9 = vunpack.i.l.bf16 %v9276_v15  ;;  %v11217_v2 = vunpack.i.l.bf16 %v11216_v59 }
 0x33d   :  { %v2476_v40 = vpack.c.bf16 %v2433_v3, %v2432_v10  ;;  %v6751_v31 = vunpack.i.h.bf16 %v9282_v45  ;;  %v6750_v42 = vunpack.i.l.bf16 %v9282_v45  ;;  %v11219_v4 = vunpack.i.h.bf16 %v9053_v43 }
 0x33e   :  { %v2434_v7 = vsel %vm2421_vm13, %v11217_v2, %v6740_v62  ;;  %v2485_v11 = vpack.c.bf16 %v6746_v34, %v6745_v9  ;;  %v2436_v15 = vsel %vm2421_vm13, %v6585_v23, %v6745_v9  ;;  %v6761_v39 = vunpack.i.h.bf16 %v9293_v18 }
 0x33f   :  { %3159 = vmatmul.mubr.bf16.gmra.mrb[12].mxu1 %v2468_v55  ;;  %v11218_v55 = vunpack.i.h.bf16 %v11216_v59  ;;  %v2437_v32 = vsel %vm2421_vm13, %v11219_v4, %v6746_v34  ;;  %v2438_v45 = vsel %vm2421_vm13, %v6600_v61, %v6750_v42  ;;  %v2439_v23 = vsel %vm2421_vm13, %v6601_v5, %v6751_v31 }
 0x340   :  { %5743 = vmatprep.mubr.msk.bf16.mxu1 %vm2848_vm12, %v2473_v24  ;;  %v2484_v53 = vpack.c.bf16 %v2437_v32, %v2436_v15  ;;  %v2488_v43 = vpack.c.bf16 %v2439_v23, %v2438_v45  ;;  %v6760_v10 = vunpack.i.l.bf16 %v9293_v18  ;;  %v6766_v5 = vunpack.i.h.bf16 %v9291_v19 }
 0x341   :  { %v2435_v24 = vsel %vm2421_vm13, %v11218_v55, %v6741_v14  ;;  %v6755_v14 = vunpack.i.l.bf16 %v9280_v57  ;;  %v6765_v3 = vunpack.i.l.bf16 %v9291_v19  ;;  %v6775_v9 = vunpack.i.l.bf16 %v9295_v44 }
 0x342   :  { %v2480_v28 = vpack.c.bf16 %v2435_v24, %v2434_v7  ;;  %v2497_v63 = vpack.c.bf16 %v6761_v39, %v6760_v10  ;;  %v2442_v18 = vsel %vm2421_vm13, %v6630_v1, %v6760_v10  ;;  %v2445_v1 = vsel %vm2421_vm13, %v6646_v38, %v6766_v5 }
 0x343   :  { %v2444_v19 = vsel %vm2421_vm13, %v6645_v56, %v6765_v3  ;;  %v2448_v38 = vsel %vm2421_vm13, %v6675_v58, %v6775_v9  ;;  %v2513_v16 = vpack.c.bf16 %v6781_v41, %v6780_v13 }
 0x344   :  { %v2500_v33 = vpack.c.bf16 %v2445_v1, %v2444_v19 }
 0x347   :  { %3169 = vmatmul.mubr.bf16.gmra.mrb[16].mxu1 %v2472_v51  ;;  %v2489_v51 = vpack.c.bf16 %v6751_v31, %v6750_v42 }
 0x348   :  { %5744 = vmatprep.mubr.msk.bf16.mxu1 %vm2848_vm12, %v2477_v29  ;;  %v6756_v29 = vunpack.i.h.bf16 %v9280_v57  ;;  %v2440_v57 = vsel %vm2421_vm13, %v6615_v60, %v6755_v14  ;;  %v2443_v60 = vsel %vm2421_vm13, %v6631_v20, %v6761_v39  ;;  %v6776_v20 = vunpack.i.h.bf16 %v9295_v44 }
 0x349   :  { %v2496_v26 = vpack.c.bf16 %v2443_v60, %v2442_v18 }
 0x34a   :  { %v2493_v62 = vpack.c.bf16 %v6756_v29, %v6755_v14  ;;  %v2441_v61 = vsel %vm2421_vm13, %v6616_v0, %v6756_v29  ;;  %v6771_v0 = vunpack.i.h.bf16 %v9297_v35  ;;  %v2509_v59 = vpack.c.bf16 %v6776_v20, %v6775_v9 }
 0x34b   :  { %v2492_v12 = vpack.c.bf16 %v2441_v61, %v2440_v57  ;;  %v2449_v44 = vsel %vm2421_vm13, %v6676_v36, %v6776_v20  ;;  %v11221_v36 = vsub.s32 0, %v11220_v50 }
 0x34c   :  { %v2447_v56 = vsel %vm2421_vm13, %v6661_v48, %v6771_v0  ;;  %v2508_v2 = vpack.c.bf16 %v2449_v44, %v2448_v38  ;;  %v2517_v48 = vpack.c.bf16 %v6786_v46, %v6785_v8 }
 0x34f   :  { %3179 = vmatmul.mubr.bf16.gmra.mrb[20].mxu1 %v2476_v40  ;;  %v2501_v40 = vpack.c.bf16 %v6766_v5, %v6765_v3 }
 0x350   :  { %5745 = vmatprep.mubr.msk.bf16.mxu1 %vm2848_vm12, %v2481_v21  ;;  %v6770_v21 = vunpack.i.l.bf16 %v9297_v35 }
 0x352   :  { %v2505_v34 = vpack.c.bf16 %v6771_v0, %v6770_v21  ;;  %v2446_v35 = vsel %vm2421_vm13, %v6660_v22, %v6770_v21  ;;  %v2571_v22 = vld [vmem:[%s11104_s4] sm:$0x3]  ;;  %s7262_s4 = smov 48  }
 0x353   :  { %v2504_v37 = vpack.c.bf16 %v2447_v56, %v2446_v35  ;;  %v9462_v58 = vrot.slane %v2571_v22, %v11221_v36  ;;  %v9466_v52 = vrot.slane %v2571_v22, %v11222_v54 }
 0x357   :  { %3189 = vmatmul.mubr.bf16.gmra.mrb[24].mxu1 %v2480_v28 }
 0x358   :  { %5746 = vmatprep.mubr.msk.bf16.mxu1 %vm2848_vm12, %v2485_v11 }
 0x35f   :  { %3199 = vmatmul.mubr.bf16.gmra.mrb[28].mxu1 %v2484_v53 }
 0x360   :  { %5747 = vmatprep.mubr.msk.bf16.mxu1 %vm2848_vm12, %v2489_v51 }
 0x367   :  { %3209 = vmatmul.mubr.bf16.gmra.mrb[32].mxu1 %v2488_v43 }
 0x368   :  { %5748 = vmatprep.mubr.msk.bf16.mxu1 %vm2848_vm12, %v2493_v62 }
 0x36f   :  { %3219 = vmatmul.mubr.bf16.gmra.mrb[36].mxu1 %v2492_v12 }
 0x370   :  { %5749 = vmatprep.mubr.msk.bf16.mxu1 %vm2848_vm12, %v2497_v63 }
 0x377   :  { %3229 = vmatmul.mubr.bf16.gmra.mrb[40].mxu1 %v2496_v26 }
 0x378   :  { %5750 = vmatprep.mubr.msk.bf16.mxu1 %vm2848_vm12, %v2501_v40 }
 0x37f   :  { %3239 = vmatmul.mubr.bf16.gmra.mrb[44].mxu1 %v2500_v33 }
 0x380   :  { %5751 = vmatprep.mubr.msk.bf16.mxu1 %vm2848_vm12, %v2505_v34 }
 0x387   :  { %3249 = vmatmul.mubr.bf16.gmra.mrb[48].mxu1 %v2504_v37 }
 0x388   :  { %5752 = vmatprep.mubr.msk.bf16.mxu1 %vm2848_vm12, %v2509_v59 }
 0x38f   :  { %3259 = vmatmul.mubr.bf16.gmra.mrb[52].mxu1 %v2508_v2 }
 0x390   :  { %5753 = vmatprep.mubr.msk.bf16.mxu1 %vm2848_vm12, %v2513_v16 }
 0x397   :  { %3269 = vmatmul.mubr.bf16.gmra.mrb[56].mxu1 %v2512_v25 }
 0x398   :  { %5754 = vmatprep.mubr.msk.bf16.mxu1 %vm2848_vm12, %v2517_v48 }
 0x39f   :  { %3279 = vmatmul.mubr.bf16.gmra.mrb[60].mxu1 %v2516_v6 }
 0x3fa   :  { %v3130_v46 = vpop.f32.mrb[0].mxu1 }
 0x3fb   :  { %v9469_v8 = vadd.f32 %v3130_v46, %v9462_v58  ;;  %v3132_v41 = vpop.f32.mrb[1].mxu1 }
 0x3fc   :  { %v6088_v13 = vadd.f32 %v3132_v41, %v9466_v52  ;;  %v3134_v27 = vpop.f32.mrb[2].mxu1 }
 0x3fd   :  { %v3289_v30 = vmax.f32 %v9469_v8, 0.0  ;;  %v9474_v25 = vadd.f32 %v3134_v27, %v9462_v58  ;;  %v3136_v47 = vpop.f32.mrb[3].mxu1 }
 0x3fe   :  { %v3290_v49 = vmax.f32 %v6088_v13, 0.0  ;;  %v6090_v6 = vadd.f32 %v3136_v47, %v9466_v52 }
 0x3ff   :  { %3417 = vrot.lane.b32.xlu0 %v3289_v30, %s7262_s4  ;;  %v3291_v7 = vmax.f32 %v9474_v25, 0.0 }
 0x400   :  { %3419 = vrot.lane.b32.xlu1 %v3290_v49, %s7262_s4  ;;  %v3292_v55 = vmax.f32 %v6090_v6, 0.0 }
 0x402   :  { %v3140_v24 = vpop.f32.mrb[4].mxu1 }
 0x403   :  { %v9483_v28 = vadd.f32 %v3140_v24, %v9462_v58  ;;  %v3142_v11 = vpop.f32.mrb[5].mxu1  ;;  %3421 = vrot.lane.b32.xlu0 %v3291_v7, %s7262_s4 }
 0x404   :  { %v6092_v31 = vadd.f32 %v3142_v11, %v9466_v52  ;;  %v3144_v42 = vpop.f32.mrb[6].mxu1  ;;  %3423 = vrot.lane.b32.xlu1 %v3292_v55, %s7262_s4 }
 0x405   :  { %v3293_v15 = vmax.f32 %v9483_v28, 0.0  ;;  %v9492_v4 = vadd.f32 %v3144_v42, %v9462_v58  ;;  %v3146_v32 = vpop.f32.mrb[7].mxu1 }
 0x406   :  { %v3294_v53 = vmax.f32 %v6092_v31, 0.0  ;;  %v6094_v51 = vadd.f32 %v3146_v32, %v9466_v52 }
 0x407   :  { %3425 = vrot.lane.b32.xlu0 %v3293_v15, %s7262_s4  ;;  %v3295_v29 = vmax.f32 %v9492_v4, 0.0 }
 0x408   :  { %3427 = vrot.lane.b32.xlu1 %v3294_v53, %s7262_s4  ;;  %v3296_v14 = vmax.f32 %v6094_v51, 0.0 }
 0x40a   :  { %v3150_v45 = vpop.f32.mrb[8].mxu1 }
 0x40b   :  { %v9501_v23 = vadd.f32 %v3150_v45, %v9462_v58  ;;  %v3152_v43 = vpop.f32.mrb[9].mxu1  ;;  %3429 = vrot.lane.b32.xlu0 %v3295_v29, %s7262_s4 }
 0x40c   :  { %v6096_v62 = vadd.f32 %v3152_v43, %v9466_v52  ;;  %v3154_v39 = vpop.f32.mrb[10].mxu1  ;;  %3431 = vrot.lane.b32.xlu1 %v3296_v14, %s7262_s4 }
 0x40d   :  { %v3297_v10 = vmax.f32 %v9501_v23, 0.0  ;;  %v9510_v57 = vadd.f32 %v3154_v39, %v9462_v58  ;;  %v3156_v61 = vpop.f32.mrb[11].mxu1 }
 0x40e   :  { %v3298_v12 = vmax.f32 %v6096_v62, 0.0  ;;  %v6098_v63 = vadd.f32 %v3156_v61, %v9466_v52 }
 0x40f   :  { %3433 = vrot.lane.b32.xlu0 %v3297_v10, %s7262_s4  ;;  %v3299_v5 = vmax.f32 %v9510_v57, 0.0  ;;  %v7226_v57 = vld [vmem:[%s11105_s5 + $0x78] sm:$0xff]  }
 0x410   :  { %3435 = vrot.lane.b32.xlu1 %v3298_v12, %s7262_s4  ;;  %v3300_v3 = vmax.f32 %v6098_v63, 0.0 }
 0x412   :  { %v3160_v18 = vpop.f32.mrb[12].mxu1 }
 0x413   :  { %v9519_v60 = vadd.f32 %v3160_v18, %v9462_v58  ;;  %v3162_v26 = vpop.f32.mrb[13].mxu1  ;;  %3437 = vrot.lane.b32.xlu0 %v3299_v5, %s7262_s4 }
 0x414   :  { %v6100_v40 = vadd.f32 %v3162_v26, %v9466_v52  ;;  %v3164_v0 = vpop.f32.mrb[14].mxu1  ;;  %3439 = vrot.lane.b32.xlu1 %v3300_v3, %s7262_s4 }
 0x415   :  { %v3301_v21 = vmax.f32 %v9519_v60, 0.0  ;;  %v9528_v19 = vadd.f32 %v3164_v0, %v9462_v58  ;;  %v3166_v1 = vpop.f32.mrb[15].mxu1 }
 0x416   :  { %v3302_v33 = vmax.f32 %v6100_v40, 0.0  ;;  %v6102_v34 = vadd.f32 %v3166_v1, %v9466_v52 }
 0x417   :  { %3441 = vrot.lane.b32.xlu0 %v3301_v21, %s7262_s4  ;;  %v3303_v20 = vmax.f32 %v9528_v19, 0.0 }
 0x418   :  { %3443 = vrot.lane.b32.xlu1 %v3302_v33, %s7262_s4  ;;  %v3304_v9 = vmax.f32 %v6102_v34, 0.0 }
 0x41a   :  { %v3170_v35 = vpop.f32.mrb[16].mxu1 }
 0x41b   :  { %v9537_v56 = vadd.f32 %v3170_v35, %v9462_v58  ;;  %v3172_v37 = vpop.f32.mrb[17].mxu1  ;;  %3445 = vrot.lane.b32.xlu0 %v3303_v20, %s7262_s4 }
 0x41c   :  { %v6104_v59 = vadd.f32 %v3172_v37, %v9466_v52  ;;  %v3174_v38 = vpop.f32.mrb[18].mxu1  ;;  %3447 = vrot.lane.b32.xlu1 %v3304_v9, %s7262_s4 }
 0x41d   :  { %v3305_v44 = vmax.f32 %v9537_v56, 0.0  ;;  %v9546_v2 = vadd.f32 %v3174_v38, %v9462_v58  ;;  %v3176_v16 = vpop.f32.mrb[19].mxu1 }
 0x41e   :  { %v3306_v48 = vmax.f32 %v6104_v59, 0.0  ;;  %v6106_v22 = vadd.f32 %v3176_v16, %v9466_v52 }
 0x41f   :  { %3449 = vrot.lane.b32.xlu0 %v3305_v44, %s7262_s4  ;;  %v3307_v50 = vmax.f32 %v9546_v2, 0.0 }
 0x420   :  { %3451 = vrot.lane.b32.xlu1 %v3306_v48, %s7262_s4  ;;  %v3308_v36 = vmax.f32 %v6106_v22, 0.0 }
 0x422   :  { %v3180_v54 = vpop.f32.mrb[20].mxu1 }
 0x423   :  { %v9555_v46 = vadd.f32 %v3180_v54, %v9462_v58  ;;  %v3182_v41 = vpop.f32.mrb[21].mxu1  ;;  %3453 = vrot.lane.b32.xlu0 %v3307_v50, %s7262_s4 }
 0x424   :  { %v6108_v13 = vadd.f32 %v3182_v41, %v9466_v52  ;;  %v3184_v27 = vpop.f32.mrb[22].mxu1  ;;  %3455 = vrot.lane.b32.xlu1 %v3308_v36, %s7262_s4 }
 0x425   :  { %v3309_v47 = vmax.f32 %v9555_v46, 0.0  ;;  %v9564_v49 = vadd.f32 %v3184_v27, %v9462_v58  ;;  %v3186_v6 = vpop.f32.mrb[23].mxu1 }
 0x426   :  { %v3310_v55 = vmax.f32 %v6108_v13, 0.0  ;;  %v6110_v24 = vadd.f32 %v3186_v6, %v9466_v52 }
 0x427   :  { %3457 = vrot.lane.b32.xlu0 %v3309_v47, %s7262_s4  ;;  %v3311_v11 = vmax.f32 %v9564_v49, 0.0 }
 0x428   :  { %3459 = vrot.lane.b32.xlu1 %v3310_v55, %s7262_s4  ;;  %v3312_v31 = vmax.f32 %v6110_v24, 0.0 }
 0x42a   :  { %v3190_v42 = vpop.f32.mrb[24].mxu1 }
 0x42b   :  { %v9573_v32 = vadd.f32 %v3190_v42, %v9462_v58  ;;  %v3192_v53 = vpop.f32.mrb[25].mxu1  ;;  %3461 = vrot.lane.b32.xlu0 %v3311_v11, %s7262_s4 }
 0x42c   :  { %v6112_v51 = vadd.f32 %v3192_v53, %v9466_v52  ;;  %v3194_v14 = vpop.f32.mrb[26].mxu1  ;;  %3463 = vrot.lane.b32.xlu1 %v3312_v31, %s7262_s4 }
 0x42d   :  { %v3313_v45 = vmax.f32 %v9573_v32, 0.0  ;;  %v9582_v43 = vadd.f32 %v3194_v14, %v9462_v58  ;;  %v3196_v62 = vpop.f32.mrb[27].mxu1 }
 0x42e   :  { %v3314_v39 = vmax.f32 %v6112_v51, 0.0  ;;  %v6114_v61 = vadd.f32 %v3196_v62, %v9466_v52 }
 0x42f   :  { %3465 = vrot.lane.b32.xlu0 %v3313_v45, %s7262_s4  ;;  %v11169_v12 = vmax.f32 %v9582_v43, 0.0 }
 0x430   :  { %3467 = vrot.lane.b32.xlu1 %v3314_v39, %s7262_s4  ;;  %v3316_v63 = vmax.f32 %v6114_v61, 0.0 }
 0x432   :  { %v3200_v3 = vpop.f32.mrb[28].mxu1 }
 0x433   :  { %v9591_v18 = vadd.f32 %v3200_v3, %v9462_v58  ;;  %v3202_v26 = vpop.f32.mrb[29].mxu1  ;;  %3469 = vrot.lane.b32.xlu0 %v11169_v12, %s7262_s4 }
 0x434   :  { %v6116_v40 = vadd.f32 %v3202_v26, %v9466_v52  ;;  %v3204_v0 = vpop.f32.mrb[30].mxu1  ;;  %3471 = vrot.lane.b32.xlu1 %v3316_v63, %s7262_s4 }
 0x435   :  { %v11168_v1 = vmax.f32 %v9591_v18, 0.0  ;;  %v9600_v33 = vadd.f32 %v3204_v0, %v9462_v58  ;;  %v3206_v34 = vpop.f32.mrb[31].mxu1 }
 0x436   :  { %v3318_v9 = vmax.f32 %v6116_v40, 0.0  ;;  %v6118_v35 = vadd.f32 %v3206_v34, %v9466_v52 }
 0x437   :  { %3473 = vrot.lane.b32.xlu0 %v11168_v1, %s7262_s4  ;;  %v11167_v37 = vmax.f32 %v9600_v33, 0.0 }
 0x438   :  { %3475 = vrot.lane.b32.xlu1 %v3318_v9, %s7262_s4  ;;  %v3320_v59 = vmax.f32 %v6118_v35, 0.0 }
 0x43a   :  { %v3210_v38 = vpop.f32.mrb[32].mxu1 }
 0x43b   :  { %v9609_v16 = vadd.f32 %v3210_v38, %v9462_v58  ;;  %v3212_v48 = vpop.f32.mrb[33].mxu1  ;;  %3477 = vrot.lane.b32.xlu0 %v11167_v37, %s7262_s4 }
 0x43c   :  { %v6120_v22 = vadd.f32 %v3212_v48, %v9466_v52  ;;  %v3214_v36 = vpop.f32.mrb[34].mxu1  ;;  %3479 = vrot.lane.b32.xlu1 %v3320_v59, %s7262_s4 }
 0x43d   :  { %v11166_v54 = vmax.f32 %v9609_v16, 0.0  ;;  %v9618_v41 = vadd.f32 %v3214_v36, %v9462_v58  ;;  %v3216_v13 = vpop.f32.mrb[35].mxu1 }
 0x43e   :  { %v3322_v27 = vmax.f32 %v6120_v22, 0.0  ;;  %v6122_v6 = vadd.f32 %v3216_v13, %v9466_v52 }
 0x43f   :  { %3481 = vrot.lane.b32.xlu0 %v11166_v54, %s7262_s4  ;;  %v11165_v55 = vmax.f32 %v9618_v41, 0.0 }
 0x440   :  { %3483 = vrot.lane.b32.xlu1 %v3322_v27, %s7262_s4  ;;  %v3324_v24 = vmax.f32 %v6122_v6, 0.0 }
 0x442   :  { %v3220_v31 = vpop.f32.mrb[36].mxu1 }
 0x443   :  { %v9627_v42 = vadd.f32 %v3220_v31, %v9462_v58  ;;  %v3222_v53 = vpop.f32.mrb[37].mxu1  ;;  %3485 = vrot.lane.b32.xlu0 %v11165_v55, %s7262_s4  ;;  %v7212_v31 = vld [vmem:[%s11105_s5 + $0x40] sm:$0xff]  }
 0x444   :  { %v6124_v51 = vadd.f32 %v3222_v53, %v9466_v52  ;;  %v3224_v14 = vpop.f32.mrb[38].mxu1  ;;  %3487 = vrot.lane.b32.xlu1 %v3324_v24, %s7262_s4  ;;  %5815 = vmatprep.subr.bf16.mxu0 %v7212_v31 }
 0x445   :  { %v11164_v62 = vmax.f32 %v9627_v42, 0.0  ;;  %v9636_v39 = vadd.f32 %v3224_v14, %v9462_v58  ;;  %v3226_v61 = vpop.f32.mrb[39].mxu1  ;;  %v7213_v14 = vld [vmem:[%s11105_s5] sm:$0xff]  }
 0x446   :  { %v3326_v63 = vmax.f32 %v6124_v51, 0.0  ;;  %v6126_v3 = vadd.f32 %v3226_v61, %v9466_v52  ;;  %5816 = vmatpush3.bf16.msra.mxu0 %v7213_v14 }
 0x447   :  { %3489 = vrot.lane.b32.xlu0 %v11164_v62, %s7262_s4  ;;  %v11163_v26 = vmax.f32 %v9636_v39, 0.0 }
 0x448   :  { %3491 = vrot.lane.b32.xlu1 %v3326_v63, %s7262_s4  ;;  %v3328_v40 = vmax.f32 %v6126_v3, 0.0 }
 0x44a   :  { %v3230_v0 = vpop.f32.mrb[40].mxu1 }
 0x44b   :  { %v9645_v34 = vadd.f32 %v3230_v0, %v9462_v58  ;;  %v3232_v9 = vpop.f32.mrb[41].mxu1  ;;  %3493 = vrot.lane.b32.xlu0 %v11163_v26, %s7262_s4 }
 0x44c   :  { %v6128_v35 = vadd.f32 %v3232_v9, %v9466_v52  ;;  %v3234_v59 = vpop.f32.mrb[42].mxu1  ;;  %3495 = vrot.lane.b32.xlu1 %v3328_v40, %s7262_s4 }
 0x44d   :  { %v11162_v38 = vmax.f32 %v9645_v34, 0.0  ;;  %v9654_v48 = vadd.f32 %v3234_v59, %v9462_v58  ;;  %v3236_v22 = vpop.f32.mrb[43].mxu1 }
 0x44e   :  { %v3330_v36 = vmax.f32 %v6128_v35, 0.0  ;;  %v6130_v13 = vadd.f32 %v3236_v22, %v9466_v52 }
 0x44f   :  { %3497 = vrot.lane.b32.xlu0 %v11162_v38, %s7262_s4  ;;  %v11161_v6 = vmax.f32 %v9654_v48, 0.0 }
 0x450   :  { %v3332_v27 = vmax.f32 %v6130_v13, 0.0  ;;  %3499 = vrot.lane.b32.xlu1 %v3330_v36, %s7262_s4 }
 0x452   :  { %v3240_v24 = vpop.f32.mrb[44].mxu1 }
 0x453   :  { %v9666_v53 = vadd.f32 %v3240_v24, %v9462_v58  ;;  %v3242_v51 = vpop.f32.mrb[45].mxu1  ;;  %3503 = vrot.lane.b32.xlu0 %v3332_v27, %s7262_s4 }
 0x454   :  { %v6132_v61 = vadd.f32 %v3242_v51, %v9466_v52  ;;  %v3244_v63 = vpop.f32.mrb[46].mxu1  ;;  %3501 = vrot.lane.b32.xlu1 %v11161_v6, %s7262_s4 }
 0x455   :  { %v11160_v3 = vmax.f32 %v9666_v53, 0.0  ;;  %v9678_v40 = vadd.f32 %v3244_v63, %v9462_v58  ;;  %v3246_v0 = vpop.f32.mrb[47].mxu1 }
 0x456   :  { %v3334_v9 = vmax.f32 %v6132_v61, 0.0  ;;  %v6134_v35 = vadd.f32 %v3246_v0, %v9466_v52 }
 0x457   :  { %v11156_v59 = vmax.f32 %v9678_v40, 0.0 }
 0x458   :  { %3505 = vrot.lane.b32.xlu1 %v11160_v3, %s7262_s4  ;;  %3507 = vrot.lane.b32.xlu0 %v3334_v9, %s7262_s4  ;;  %v3336_v22 = vmax.f32 %v6134_v35, 0.0  ;;  %v7214_v35 = vld [vmem:[%s11105_s5 + $0x48] sm:$0xff]  }
 0x459   :  { %5817 = vmatprep.subr.bf16.mxu0 %v7214_v35 }
 0x45a   :  { %v3250_v36 = vpop.f32.mrb[48].mxu1 }
 0x45b   :  { %v9687_v13 = vadd.f32 %v3250_v36, %v9462_v58  ;;  %v3252_v27 = vpop.f32.mrb[49].mxu1 }
 0x45c   :  { %v6136_v24 = vadd.f32 %v3252_v27, %v9466_v52  ;;  %v3254_v31 = vpop.f32.mrb[50].mxu1  ;;  %3511 = vrot.lane.b32.xlu1 %v3336_v22, %s7262_s4  ;;  %3509 = vrot.lane.b32.xlu0 %v11156_v59, %s7262_s4  ;;  %v7215_v22 = vld [vmem:[%s11105_s5 + $0x8] sm:$0xff]  }
 0x45d   :  { %v11155_v51 = vmax.f32 %v9687_v13, 0.0  ;;  %v9696_v14 = vadd.f32 %v3254_v31, %v9462_v58  ;;  %v3256_v61 = vpop.f32.mrb[51].mxu1  ;;  %5818 = vmatpush3.bf16.msra.mxu0 %v7215_v22 }
 0x45e   :  { %v3338_v63 = vmax.f32 %v6136_v24, 0.0  ;;  %v6138_v0 = vadd.f32 %v3256_v61, %v9466_v52 }
 0x45f   :  { %v11157_v9 = vmax.f32 %v9696_v14, 0.0 }
 0x460   :  { %3515 = vrot.lane.b32.xlu1 %v3338_v63, %s7262_s4  ;;  %3513 = vrot.lane.b32.xlu0 %v11155_v51, %s7262_s4  ;;  %v3340_v36 = vmax.f32 %v6138_v0, 0.0 }
 0x462   :  { %v3260_v27 = vpop.f32.mrb[52].mxu1 }
 0x463   :  { %v9711_v24 = vadd.f32 %v3260_v27, %v9462_v58  ;;  %v3262_v31 = vpop.f32.mrb[53].mxu1 }
 0x464   :  { %v6140_v61 = vadd.f32 %v3262_v31, %v9466_v52  ;;  %v3264_v63 = vpop.f32.mrb[54].mxu1  ;;  %3517 = vrot.lane.b32.xlu1 %v11157_v9, %s7262_s4  ;;  %3519 = vrot.lane.b32.xlu0 %v3340_v36, %s7262_s4 }
 0x465   :  { %v11159_v17 = vmax.f32 %v9711_v24, 0.0  ;;  %v3266_v51 = vpop.f32.mrb[55].mxu1  ;;  %v9720_v59 = vadd.f32 %v3264_v63, %v9462_v58 }
 0x466   :  { %v3342_v0 = vmax.f32 %v6140_v61, 0.0  ;;  %v6142_v27 = vadd.f32 %v3266_v51, %v9466_v52  ;;  %v7216_v51 = vld [vmem:[%s11105_s5 + $0x50] sm:$0xff]  }
 0x467   :  { %v11158_v35 = vmax.f32 %v9720_v59, 0.0  ;;  %v7217_v61 = vld [vmem:[%s11105_s5 + $0x10] sm:$0xff]   ;;  %5819 = vmatprep.subr.bf16.mxu0 %v7216_v51 }
 0x468   :  { %3521 = vrot.lane.b32.xlu1 %v11159_v17, %s7262_s4  ;;  %3523 = vrot.lane.b32.xlu0 %v3342_v0, %s7262_s4  ;;  %v3344_v31 = vmax.f32 %v6142_v27, 0.0  ;;  %v7218_v0 = vld [vmem:[%s11105_s5 + $0x58] sm:$0xff]  }
 0x469   :  { %5820 = vmatpush3.bf16.msra.mxu0 %v7217_v61  ;;  %v7219_v27 = vld [vmem:[%s11105_s5 + $0x18] sm:$0xff]  }
 0x46a   :  { %v9728_v36 = vpop.f32.mrb[56].mxu1  ;;  %5821 = vmatprep.subr.bf16.mxu0 %v7218_v0 }
 0x46b   :  { %v9730_v9 = vpop.f32.mrb[57].mxu1 }
 0x46c   :  { %v9732_v22 = vpop.f32.mrb[58].mxu1  ;;  %3527 = vrot.lane.b32.xlu1 %v3344_v31, %s7262_s4  ;;  %3525 = vrot.lane.b32.xlu0 %v11158_v35, %s7262_s4  ;;  %v6144_v2 = vadd.f32 %v9730_v9, %v9466_v52 }
 0x46d   :  { %v9744_v63 = vpop.f32.mrb[59].mxu1  ;;  %5822 = vmatpush3.bf16.msra.mxu0 %v7219_v27 }
 0x46e   :  { %v3346_v9 = vmax.f32 %v6144_v2, 0.0 }
 0x471   :  { %v3418_v31 = vpop.permute.xlu0 %3417 }
 0x472   :  { %v9752_v35 = vpop.f32.mrb[60].mxu1  ;;  %v3420_v17 = vpop.permute.xlu1 %3419 }
 0x473   :  { %v9754_v3 = vpop.f32.mrb[61].mxu1  ;;  %v3546_v61 = vsel %vm3545_vm14, %v3418_v31, %v3420_v17  ;;  %v7220_v17 = vld [vmem:[%s11105_s5 + $0x60] sm:$0xff]  }
 0x474   :  { %v9756_v6 = vpop.f32.mrb[62].mxu1  ;;  %v3610_v54 = vadd.f32 %v3546_v61, %v3289_v30  ;;  %5823 = vmatprep.subr.bf16.mxu0 %v7220_v17  ;;  %v7221_v61 = vld [vmem:[%s11105_s5 + $0x20] sm:$0xff]  }
 0x475   :  { %v9758_v38 = vpop.f32.mrb[63].mxu1  ;;  %v3422_v26 = vpop.permute.xlu0 %3421  ;;  %5824 = vmatpush3.bf16.msra.mxu0 %v7221_v61 }
 0x476   :  { %v3424_v51 = vpop.permute.xlu1 %3423 }
 0x477   :  { %v3547_v62 = vsel %vm3545_vm14, %v3422_v26, %v3424_v51  ;;  %v3674_v26 = vrot.slane %v3610_v54, 2 }
 0x478   :  { %v3611_v0 = vadd.f32 %v3547_v62, %v3291_v7 }
 0x479   :  { %v3426_v55 = vpop.permute.xlu0 %3425 }
 0x47a   :  { %v3428_v37 = vpop.permute.xlu1 %3427  ;;  %v3675_v1 = vrot.slane %v3611_v0, 2 }
 0x47b   :  { %v3548_v27 = vsel %vm3545_vm14, %v3426_v55, %v3428_v37 }
 0x47c   :  { %v3612_v12 = vadd.f32 %v3548_v27, %v3293_v15  ;;  %v3676_v8 = vsel %vm169_vm2, %v3674_v26, %v3675_v1  ;;  %v7222_v27 = vld [vmem:[%s11105_s5 + $0x68] sm:$0xff]  }
 0x47d   :  { %v3430_v31 = vpop.permute.xlu0 %3429  ;;  %v9785_v17 = vadd.f32 %v3676_v8, %v3610_v54  ;;  %5825 = vmatprep.subr.bf16.mxu0 %v7222_v27  ;;  %v7224_v54 = vld [vmem:[%s11105_s5 + $0x70] sm:$0xff]  }
 0x47e   :  { %v3677_v51 = vrot.slane %v3612_v12, 2  ;;  %v3432_v25 = vpop.permute.xlu1 %3431 }
 0x47f   :  { %v3549_v7 = vsel %vm3545_vm14, %v3430_v31, %v3432_v25  ;;  %v3834_v23 = vrot.slane %v9785_v17, 4 }
 0x480   :  { %v3678_v30 = vsel %vm169_vm2, %v3675_v1, %v3677_v51  ;;  %v3613_v37 = vadd.f32 %v3549_v7, %v3295_v29 }
 0x481   :  { %v9777_v28 = vadd.f32 %v3678_v30, %v3611_v0  ;;  %v3434_v15 = vpop.permute.xlu0 %3433  ;;  %v7223_v0 = vld [vmem:[%s11105_s5 + $0x28] sm:$0xff]  }
 0x482   :  { %v3679_v55 = vrot.slane %v3613_v37, 2  ;;  %v3436_v62 = vpop.permute.xlu1 %3435  ;;  %5826 = vmatpush3.bf16.msra.mxu0 %v7223_v0 }
 0x483   :  { %v3550_v1 = vsel %vm3545_vm14, %v3434_v15, %v3436_v62  ;;  %v3835_v25 = vrot.slane %v9777_v28, 4  ;;  %5827 = vmatprep.subr.bf16.mxu0 %v7224_v54  ;;  %v7227_v54 = vld [vmem:[%s11105_s5 + $0x38] sm:$0xff]  }
 0x484   :  { %v3680_v4 = vsel %vm169_vm2, %v3677_v51, %v3679_v55  ;;  %v3614_v29 = vadd.f32 %v3550_v1, %v3297_v10 }
 0x485   :  { %v9794_v31 = vadd.f32 %v3680_v4, %v3612_v12  ;;  %v3438_v26 = vpop.permute.xlu0 %3437  ;;  %v3836_v27 = vsel %vm301_vm3, %v3834_v23, %v3835_v25  ;;  %v7225_v4 = vld [vmem:[%s11105_s5 + $0x30] sm:$0xff]  }
 0x486   :  { %v3681_v7 = vrot.slane %v3614_v29, 2  ;;  %v3440_v51 = vpop.permute.xlu1 %3439  ;;  %5828 = vmatpush3.bf16.msra.mxu0 %v7225_v4 }
 0x487   :  { %v3551_v10 = vsel %vm3545_vm14, %v3438_v26, %v3440_v51  ;;  %v6787_v8 = vpack.i.bf16 %v9794_v31, %v9777_v28  ;;  %v3837_v12 = vrot.slane %v9794_v31, 4  ;;  %5829 = vmatprep.subr.bf16.mxu0 %v7226_v57 }
 0x488   :  { %v3682_v30 = vsel %vm169_vm2, %v3679_v55, %v3681_v7  ;;  %v3615_v15 = vadd.f32 %v3551_v10, %v3299_v5 }
 0x489   :  { %v9808_v62 = vadd.f32 %v3682_v30, %v3613_v37  ;;  %6788 = vrot.lane.b32.xlu1 %v6787_v8, %s7253_s12  ;;  %v3442_v61 = vpop.permute.xlu0 %3441  ;;  %v3838_v1 = vsel %vm301_vm3, %v3835_v25, %v3837_v12 }
 0x48a   :  { %v3683_v5 = vrot.slane %v3615_v15, 2  ;;  %v3444_v55 = vpop.permute.xlu1 %3443  ;;  %v6792_v37 = vpack.i.bf16 %v3838_v1, %v3836_v27  ;;  %5830 = vmatpush3.bf16.msra.mxu0 %v7227_v54 }
 0x48b   :  { %v3552_v0 = vsel %vm3545_vm14, %v3442_v61, %v3444_v55  ;;  %v3839_v25 = vrot.slane %v9808_v62, 4 }
 0x48c   :  { %v3684_v26 = vsel %vm169_vm2, %v3681_v7, %v3683_v5  ;;  %v3616_v51 = vadd.f32 %v3552_v0, %v3301_v21  ;;  %6793 = vrot.lane.b32.xlu0 %v6792_v37, %s7260_s3 }
 0x48d   :  { %v9828_v23 = vadd.f32 %v3684_v26, %v3614_v29  ;;  %v3446_v10 = vpop.permute.xlu0 %3445  ;;  %v3840_v4 = vsel %vm301_vm3, %v3837_v12, %v3839_v25 }
 0x48e   :  { %v3685_v8 = vrot.slane %v3616_v51, 2  ;;  %v3448_v30 = vpop.permute.xlu1 %3447 }
 0x48f   :  { %v3553_v7 = vsel %vm3545_vm14, %v3446_v10, %v3448_v30  ;;  %v6797_v60 = vpack.i.bf16 %v9828_v23, %v9808_v62  ;;  %v3841_v21 = vrot.slane %v9828_v23, 4  ;;  %v9844_v10 = vadd.f32 %v9728_v36, %v9462_v58 }
 0x490   :  { %v3686_v61 = vsel %vm169_vm2, %v3683_v5, %v3685_v8  ;;  %v3617_v27 = vadd.f32 %v3553_v7, %v3303_v20  ;;  %v6802_v20 = vpack.i.bf16 %v3840_v4, %v3838_v1 }
 0x491   :  { %v9838_v29 = vadd.f32 %v3686_v61, %v3615_v15  ;;  %6798 = vrot.lane.b32.xlu0 %v6797_v60, %s7253_s12  ;;  %v3450_v57 = vpop.permute.xlu0 %3449  ;;  %v3842_v55 = vsel %vm301_vm3, %v3839_v25, %v3841_v21  ;;  %v3345_v7 = vmax.f32 %v9844_v10, 0.0 }
 0x492   :  { %v3687_v37 = vrot.slane %v3617_v27, 2  ;;  %v3452_v0 = vpop.permute.xlu1 %3451  ;;  %v6807_v26 = vpack.i.bf16 %v3842_v55, %v3840_v4 }
 0x493   :  { %v3554_v19 = vsel %vm3545_vm14, %v3450_v57, %v3452_v0  ;;  %v3843_v5 = vrot.slane %v9838_v29, 4 }
 0x494   :  { %v3688_v12 = vsel %vm169_vm2, %v3685_v8, %v3687_v37  ;;  %v3618_v15 = vadd.f32 %v3554_v19, %v3305_v44  ;;  %6808 = vrot.lane.b32.xlu1 %v6807_v26, %s7260_s3 }
 0x495   :  { %v9852_v25 = vadd.f32 %v3688_v12, %v3616_v51  ;;  %6803 = vrot.lane.b32.xlu0 %v6802_v20, %s7263_s17  ;;  %v3454_v54 = vpop.permute.xlu0 %3453  ;;  %v3844_v60 = vsel %vm301_vm3, %v3841_v21, %v3843_v5 }
 0x496   :  { %v3689_v36 = vrot.slane %v3618_v15, 2  ;;  %v3456_v30 = vpop.permute.xlu1 %3455  ;;  %v6817_v21 = vpack.i.bf16 %v3844_v60, %v3842_v55 }
 0x497   :  { %v3555_v1 = vsel %vm3545_vm14, %v3454_v54, %v3456_v30  ;;  %v6812_v56 = vpack.i.bf16 %v9852_v25, %v9838_v29  ;;  %v3845_v44 = vrot.slane %v9852_v25, 4 }
 0x498   :  { %v3690_v8 = vsel %vm169_vm2, %v3687_v37, %v3689_v36  ;;  %v3619_v51 = vadd.f32 %v3555_v1, %v3307_v50 }
 0x499   :  { %v9864_v61 = vadd.f32 %v3690_v8, %v3617_v27  ;;  %3529 = vrot.lane.b32.xlu0 %v3345_v7, %s7262_s4  ;;  %6813 = vrot.lane.b32.xlu1 %v6812_v56, %s7253_s12  ;;  %v3458_v4 = vpop.permute.xlu0 %3457  ;;  %v3846_v57 = vsel %vm301_vm3, %v3843_v5, %v3845_v44 }
 0x49a   :  { %v3691_v0 = vrot.slane %v3619_v51, 2  ;;  %v3460_v26 = vpop.permute.xlu1 %3459  ;;  %v6822_v19 = vpack.i.bf16 %v3846_v57, %v3844_v60 }
 0x49b   :  { %v3556_v50 = vsel %vm3545_vm14, %v3458_v4, %v3460_v26  ;;  %v3847_v20 = vrot.slane %v9864_v61, 4 }
 0x49c   :  { %v3692_v27 = vsel %vm169_vm2, %v3689_v36, %v3691_v0  ;;  %v3620_v37 = vadd.f32 %v3556_v50, %v3309_v47 }
 0x49d   :  { %v9878_v12 = vadd.f32 %v3692_v27, %v3618_v15  ;;  %6818 = vrot.lane.b32.xlu1 %v6817_v21, %s7263_s17  ;;  %6823 = vrot.lane.b32.xlu0 %v6822_v19, %s7260_s3  ;;  %v3462_v5 = vpop.permute.xlu0 %3461  ;;  %v3848_v36 = vsel %vm301_vm3, %v3845_v44, %v3847_v20 }
 0x49e   :  { %v3693_v54 = vrot.slane %v3620_v37, 2  ;;  %v3464_v30 = vpop.permute.xlu1 %3463 }
 0x49f   :  { %v3557_v1 = vsel %vm3545_vm14, %v3462_v5, %v3464_v30  ;;  %v6827_v55 = vpack.i.bf16 %v9878_v12, %v9864_v61  ;;  %v3849_v46 = vrot.slane %v9878_v12, 4 }
 0x4a0   :  { %v3694_v47 = vsel %vm169_vm2, %v3691_v0, %v3693_v54  ;;  %v3621_v15 = vadd.f32 %v3557_v1, %v3311_v11  ;;  %v6146_v0 = vadd.f32 %v9744_v63, %v9466_v52  ;;  %v6832_v11 = vpack.i.bf16 %v3848_v36, %v3846_v57 }
 0x4a1   :  { %v9890_v56 = vadd.f32 %v3694_v47, %v3619_v51  ;;  %3531 = vrot.lane.b32.xlu1 %v3346_v9, %s7262_s4  ;;  %6828 = vrot.lane.b32.xlu0 %v6827_v55, %s7253_s12  ;;  %v3466_v8 = vpop.permute.xlu0 %3465  ;;  %v3850_v60 = vsel %vm301_vm3, %v3847_v20, %v3849_v46  ;;  %v6148_v57 = vadd.f32 %v9754_v3, %v9466_v52 }
 0x4a2   :  { %v3695_v4 = vrot.slane %v3621_v15, 2  ;;  %v3468_v26 = vpop.permute.xlu1 %3467  ;;  %v6837_v19 = vpack.i.bf16 %v3850_v60, %v3848_v36  ;;  %v3348_v63 = vmax.f32 %v6146_v0, 0.0  ;;  %v9922_v36 = vadd.f32 %v9732_v22, %v9462_v58 }
 0x4a3   :  { %v3558_v49 = vsel %vm3545_vm14, %v3466_v8, %v3468_v26  ;;  %v3851_v2 = vrot.slane %v9890_v56, 4  ;;  %v3350_v8 = vmax.f32 %v6148_v57, 0.0 }
 0x4a4   :  { %v3696_v44 = vsel %vm169_vm2, %v3693_v54, %v3695_v4  ;;  %v3622_v51 = vadd.f32 %v3558_v49, %v3313_v45 }
 0x4a5   :  { %v9902_v50 = vadd.f32 %v3696_v44, %v3620_v37  ;;  %6833 = vrot.lane.b32.xlu0 %v6832_v11, %s7263_s17  ;;  %6838 = vrot.lane.b32.xlu1 %v6837_v19, %s7260_s3  ;;  %v3470_v21 = vpop.permute.xlu0 %3469  ;;  %v11223_v37 = vmax.f32 %v9582_v43, 0.0  ;;  %v3852_v30 = vsel %vm301_vm3, %v3849_v46, %v3851_v2 }
 0x4a6   :  { %v3697_v27 = vrot.slane %v3622_v51, 2  ;;  %v3472_v20 = vpop.permute.xlu1 %3471 }
 0x4a7   :  { %v3559_v5 = vsel %vm3545_vm14, %v3470_v21, %v3472_v20  ;;  %v6842_v32 = vpack.i.bf16 %v9902_v50, %v9890_v56  ;;  %v3853_v9 = vrot.slane %v9902_v50, 4  ;;  %v9937_v21 = vadd.f32 %v9752_v35, %v9462_v58 }
 0x4a8   :  { %v3698_v45 = vsel %vm169_vm2, %v3695_v4, %v3697_v27  ;;  %v3623_v54 = vadd.f32 %v3559_v5, %v11223_v37  ;;  %v6847_v4 = vpack.i.bf16 %v3852_v30, %v3850_v60  ;;  %v3347_v60 = vmax.f32 %v9922_v36, 0.0 }
 0x4a9   :  { %v9916_v1 = vadd.f32 %v3698_v45, %v3621_v15  ;;  %3535 = vrot.lane.b32.xlu0 %v3348_v63, %s7262_s4  ;;  %6843 = vrot.lane.b32.xlu1 %v6842_v32, %s7253_s12  ;;  %v3474_v3 = vpop.permute.xlu0 %3473  ;;  %v11224_v15 = vmax.f32 %v9591_v18, 0.0  ;;  %v3854_v19 = vsel %vm301_vm3, %v3851_v2, %v3853_v9  ;;  %v3349_v37 = vmax.f32 %v9937_v21, 0.0 }
 0x4aa   :  { %v3699_v55 = vrot.slane %v3623_v54, 2  ;;  %v3476_v47 = vpop.permute.xlu1 %3475  ;;  %v6852_v2 = vpack.i.bf16 %v3854_v19, %v3852_v30 }
 0x4ab   :  { %v3560_v43 = vsel %vm3545_vm14, %v3474_v3, %v3476_v47  ;;  %v3855_v0 = vrot.slane %v9916_v1, 4  ;;  %v11226_v3 = vmax.f32 %v9609_v16, 0.0 }
 0x4ac   :  { %v3700_v46 = vsel %vm169_vm2, %v3697_v27, %v3699_v55  ;;  %v3624_v26 = vadd.f32 %v3560_v43, %v11224_v15  ;;  %v9966_v15 = vadd.f32 %v9756_v6, %v9462_v58 }
 0x4ad   :  { %v9930_v49 = vadd.f32 %v3700_v46, %v3622_v51  ;;  %3539 = vrot.lane.b32.xlu0 %v3350_v8, %s7262_s4  ;;  %6848 = vrot.lane.b32.xlu1 %v6847_v4, %s7263_s17  ;;  %v3478_v22 = vpop.permute.xlu0 %3477  ;;  %v11225_v51 = vmax.f32 %v9600_v33, 0.0  ;;  %v3856_v63 = vsel %vm301_vm3, %v3853_v9, %v3855_v0 }
 0x4ae   :  { %v3701_v11 = vrot.slane %v3624_v26, 2  ;;  %v3480_v44 = vpop.permute.xlu1 %3479  ;;  %v6857_v30 = vpack.i.bf16 %v3856_v63, %v3854_v19 }
 0x4af   :  { %v3561_v18 = vsel %vm3545_vm14, %v3478_v22, %v3480_v44  ;;  %v3857_v57 = vrot.slane %v9930_v49, 4  ;;  %v6862_v19 = vpack.i.bf16 %v9930_v49, %v9916_v1  ;;  %v11227_v22 = vmax.f32 %v9618_v41, 0.0 }
 0x4b0   :  { %v3702_v27 = vsel %vm169_vm2, %v3699_v55, %v3701_v11  ;;  %v3625_v20 = vadd.f32 %v3561_v18, %v11225_v51  ;;  %v3351_v51 = vmax.f32 %v9966_v15, 0.0 }
 0x4b1   :  { %v9945_v5 = vadd.f32 %v3702_v27, %v3623_v54  ;;  %3533 = vrot.lane.b32.xlu1 %v3347_v60, %s7262_s4  ;;  %6853 = vrot.lane.b32.xlu0 %v6852_v2, %s7260_s3  ;;  %v3482_v35 = vpop.permute.xlu0 %3481  ;;  %v3858_v55 = vsel %vm301_vm3, %v3855_v0, %v3857_v57 }
 0x4b2   :  { %v3703_v32 = vrot.slane %v3625_v20, 2  ;;  %v3484_v45 = vpop.permute.xlu1 %3483 }
 0x4b3   :  { %v3562_v33 = vsel %vm3545_vm14, %v3482_v35, %v3484_v45  ;;  %v3859_v47 = vrot.slane %v9945_v5, 4 }
 0x4b4   :  { %v3704_v9 = vsel %vm169_vm2, %v3701_v11, %v3703_v32  ;;  %v3626_v54 = vadd.f32 %v3562_v33, %v11226_v3 }
 0x4b5   :  { %v9958_v8 = vadd.f32 %v3704_v9, %v3624_v26  ;;  %3537 = vrot.lane.b32.xlu1 %v3349_v37, %s7262_s4  ;;  %6858 = vrot.lane.b32.xlu0 %v6857_v30, %s7263_s17  ;;  %v3486_v43 = vpop.permute.xlu0 %3485  ;;  %v6867_v26 = vpack.i.bf16 %v3858_v55, %v3856_v63  ;;  %v3860_v44 = vsel %vm301_vm3, %v3857_v57, %v3859_v47 }
 0x4b6   :  { %v3705_v4 = vrot.slane %v3626_v54, 2  ;;  %v3488_v46 = vpop.permute.xlu1 %3487  ;;  %v6150_v63 = vadd.f32 %v9758_v38, %v9466_v52  ;;  %v6872_v35 = vpack.i.bf16 %v3860_v44, %v3858_v55 }
 0x4b7   :  { %v3563_v16 = vsel %vm3545_vm14, %v3486_v43, %v3488_v46  ;;  %v3861_v18 = vrot.slane %v9958_v8, 4 }
 0x4b8   :  { %v3706_v0 = vsel %vm169_vm2, %v3703_v32, %v3705_v4  ;;  %v3627_v11 = vadd.f32 %v3563_v16, %v11227_v22  ;;  %v3352_v3 = vmax.f32 %v6150_v63, 0.0 }
 0x4b9   :  { %v9976_v2 = vadd.f32 %v3706_v0, %v3625_v20  ;;  %6863 = vrot.lane.b32.xlu0 %v6862_v19, %s7253_s12  ;;  %6868 = vrot.lane.b32.xlu1 %v6867_v26, %s7260_s3  ;;  %v3490_v58 = vpop.permute.xlu0 %3489  ;;  %v11228_v20 = vmax.f32 %v9627_v42, 0.0  ;;  %v3862_v45 = vsel %vm301_vm3, %v3859_v47, %v3861_v18  ;;  %v11229_v47 = vmax.f32 %v9636_v39, 0.0 }
 0x4ba   :  { %v3707_v6 = vrot.slane %v3627_v11, 2  ;;  %v3492_v27 = vpop.permute.xlu1 %3491  ;;  %v6882_v42 = vpack.i.bf16 %v3862_v45, %v3860_v44  ;;  %v6877_v44 = vpack.i.bf16 %v9958_v8, %v9945_v5 }
 0x4bb   :  { %v3564_v41 = vsel %vm3545_vm14, %v3490_v58, %v3492_v27  ;;  %v3863_v33 = vrot.slane %v9976_v2, 4 }
 0x4bc   :  { %v3708_v57 = vsel %vm169_vm2, %v3705_v4, %v3707_v6  ;;  %v3628_v32 = vadd.f32 %v3564_v41, %v11228_v20 }
 0x4bd   :  { %v9989_v30 = vadd.f32 %v3708_v57, %v3626_v54  ;;  %3541 = vrot.lane.b32.xlu0 %v3351_v51, %s7262_s4  ;;  %6873 = vrot.lane.b32.xlu1 %v6872_v35, %s7263_s17  ;;  %v3494_v52 = vpop.permute.xlu0 %3493  ;;  %v3864_v54 = vsel %vm301_vm3, %v3861_v18, %v3863_v33  ;;  %v11230_v18 = vmax.f32 %v9645_v34, 0.0 }
 0x4be   :  { %v3709_v38 = vrot.slane %v3628_v32, 2  ;;  %v3496_v9 = vpop.permute.xlu1 %3495  ;;  %v6887_v39 = vpack.i.bf16 %v3864_v54, %v3862_v45 }
 0x4bf   :  { %v3565_v55 = vsel %vm3545_vm14, %v3494_v52, %v3496_v9  ;;  %v3865_v46 = vrot.slane %v9989_v30, 4  ;;  %v6892_v45 = vpack.i.bf16 %v9989_v30, %v9976_v2 }
 0x4c0   :  { %v3710_v43 = vsel %vm169_vm2, %v3707_v6, %v3709_v38  ;;  %v3629_v4 = vadd.f32 %v3565_v55, %v11229_v47 }
 0x4c1   :  { %v10001_v16 = vadd.f32 %v3710_v43, %v3627_v11  ;;  %3543 = vrot.lane.b32.xlu1 %v3352_v3, %s7262_s4  ;;  %6883 = vrot.lane.b32.xlu0 %v6882_v42, %s7260_s3  ;;  %v3498_v19 = vpop.permute.xlu0 %3497  ;;  %v3866_v11 = vsel %vm301_vm3, %v3863_v33, %v3865_v46 }
 0x4c2   :  { %v3711_v26 = vrot.slane %v3629_v4, 2  ;;  %v3500_v0 = vpop.permute.xlu1 %3499  ;;  %v6897_v34 = vpack.i.bf16 %v3866_v11, %v3864_v54 }
 0x4c3   :  { %v3566_v22 = vsel %vm3545_vm14, %v3498_v19, %v3500_v0  ;;  %v3867_v27 = vrot.slane %v10001_v16, 4 }
 0x4c4   :  { %v3712_v58 = vsel %vm169_vm2, %v3709_v38, %v3711_v26  ;;  %v3630_v6 = vadd.f32 %v3566_v22, %v11230_v18 }
 0x4c5   :  { %v10013_v63 = vadd.f32 %v3712_v58, %v3628_v32  ;;  %6878 = vrot.lane.b32.xlu1 %v6877_v44, %s7253_s12  ;;  %6888 = vrot.lane.b32.xlu0 %v6887_v39, %s7263_s17  ;;  %v3504_v41 = vpop.permute.xlu0 %3503  ;;  %v11231_v32 = vmax.f32 %v9654_v48, 0.0  ;;  %v3868_v9 = vsel %vm301_vm3, %v3865_v46, %v3867_v27 }
 0x4c6   :  { %v3713_v35 = vrot.slane %v3630_v6, 2  ;;  %v3502_v57 = vpop.permute.xlu1 %3501 }
 0x4c7   :  { %v3567_v20 = vsel %vm3545_vm14, %v3502_v57, %v3504_v41  ;;  %v3869_v52 = vrot.slane %v10013_v63, 4  ;;  %v11233_v57 = vmax.f32 %v9678_v40, 0.0 }
 0x4c8   :  { %v3714_v33 = vsel %vm169_vm2, %v3711_v26, %v3713_v35  ;;  %v3631_v38 = vadd.f32 %v3567_v20, %v11231_v32  ;;  %v6902_v26 = vpack.i.bf16 %v3868_v9, %v3866_v11  ;;  %v7264_v11 = vmov 0  }
 0x4c9   :  { %v10025_v3 = vadd.f32 %v3714_v33, %v3629_v4  ;;  %6893 = vrot.lane.b32.xlu0 %v6892_v45, %s7253_s12  ;;  %6898 = vrot.lane.b32.xlu1 %v6897_v34, %s7260_s3  ;;  %v3870_v55 = vsel %vm301_vm3, %v3867_v27, %v3869_v52  ;;  %v11232_v4 = vmax.f32 %v9666_v53, 0.0  ;;  %v6907_v53 = vpack.i.bf16 %v10013_v63, %v10001_v16 }
 0x4ca   :  { %v3715_v42 = vrot.slane %v3631_v38, 2  ;;  %v3506_v43 = vpop.permute.xlu1 %3505  ;;  %v3508_v47 = vpop.permute.xlu0 %3507  ;;  %v6912_v54 = vpack.i.bf16 %v3870_v55, %v3868_v9  ;;  %4891 = vmatprep.subr.bf16.mxu0 %v7264_v11 }
 0x4cb   :  { %v3568_v19 = vsel %vm3545_vm14, %v3506_v43, %v3508_v47  ;;  %v3871_v48 = vrot.slane %v10025_v3, 4  ;;  %v11234_v43 = vmax.f32 %v9687_v13, 0.0  ;;  %v11235_v13 = vmax.f32 %v9696_v14, 0.0 }
 0x4cc   :  { %v3716_v0 = vsel %vm169_vm2, %v3713_v35, %v3715_v42  ;;  %v3632_v46 = vadd.f32 %v3568_v19, %v11232_v4 }
 0x4cd   :  { %v10035_v22 = vadd.f32 %v3716_v0, %v3630_v6  ;;  %6903 = vrot.lane.b32.xlu1 %v6902_v26, %s7263_s17  ;;  %6913 = vrot.lane.b32.xlu0 %v6912_v54, %s7260_s3  ;;  %v3872_v44 = vsel %vm301_vm3, %v3869_v52, %v3871_v48 }
 0x4ce   :  { %v3717_v39 = vrot.slane %v3632_v46, 2  ;;  %v3512_v58 = vpop.permute.xlu1 %3511  ;;  %v3510_v18 = vpop.permute.xlu0 %3509  ;;  %v6917_v27 = vpack.i.bf16 %v3872_v44, %v3870_v55 }
 0x4cf   :  { %v3569_v41 = vsel %vm3545_vm14, %v3510_v18, %v3512_v58  ;;  %v3873_v6 = vrot.slane %v10035_v22, 4 }
 0x4d0   :  { %v3718_v35 = vsel %vm169_vm2, %v3715_v42, %v3717_v39  ;;  %v3633_v20 = vadd.f32 %v3569_v41, %v11233_v57  ;;  %v6922_v42 = vpack.i.bf16 %v10035_v22, %v10025_v3 }
 0x4d1   :  { %v10048_v45 = vadd.f32 %v3718_v35, %v3631_v38  ;;  %6908 = vrot.lane.b32.xlu1 %v6907_v53, %s7253_s12  ;;  %6918 = vrot.lane.b32.xlu0 %v6917_v27, %s7263_s17  ;;  %v3874_v34 = vsel %vm301_vm3, %v3871_v48, %v3873_v6 }
 0x4d2   :  { %v3719_v52 = vrot.slane %v3633_v20, 2  ;;  %v3516_v33 = vpop.permute.xlu1 %3515  ;;  %v3514_v32 = vpop.permute.xlu0 %3513  ;;  %v6927_v9 = vpack.i.bf16 %v3874_v34, %v3872_v44 }
 0x4d3   :  { %v3570_v55 = vsel %vm3545_vm14, %v3514_v32, %v3516_v33  ;;  %v3875_v40 = vrot.slane %v10048_v45, 4 }
 0x4d4   :  { %v3720_v38 = vsel %vm169_vm2, %v3717_v39, %v3719_v52  ;;  %v3634_v47 = vadd.f32 %v3570_v55, %v11234_v43 }
 0x4d5   :  { %v10060_v54 = vadd.f32 %v3720_v38, %v3632_v46  ;;  %6923 = vrot.lane.b32.xlu0 %v6922_v42, %s7253_s12  ;;  %6928 = vrot.lane.b32.xlu1 %v6927_v9, %s7260_s3  ;;  %v3876_v19 = vsel %vm301_vm3, %v3873_v6, %v3875_v40 }
 0x4d6   :  { %v3721_v26 = vrot.slane %v3634_v47, 2  ;;  %v3518_v48 = vpop.permute.xlu1 %3517  ;;  %v3520_v0 = vpop.permute.xlu0 %3519  ;;  %v6932_v4 = vpack.i.bf16 %v3876_v19, %v3874_v34 }
 0x4d7   :  { %v3571_v44 = vsel %vm3545_vm14, %v3518_v48, %v3520_v0  ;;  %v3877_v58 = vrot.slane %v10060_v54, 4  ;;  %v6937_v34 = vpack.i.bf16 %v10060_v54, %v10048_v45 }
 0x4d8   :  { %v3722_v39 = vsel %vm169_vm2, %v3719_v52, %v3721_v26  ;;  %v3635_v46 = vadd.f32 %v3571_v44, %v11235_v13 }
 0x4d9   :  { %v10070_v18 = vadd.f32 %v3722_v39, %v3633_v20  ;;  %6933 = vrot.lane.b32.xlu1 %v6932_v4, %s7263_s17  ;;  %v3878_v27 = vsel %vm301_vm3, %v3875_v40, %v3877_v58  ;;  %v11236_v20 = vmax.f32 %v9711_v24, 0.0  ;;  %v11237_v24 = vmax.f32 %v9720_v59, 0.0 }
 0x4da   :  { %v3723_v41 = vrot.slane %v3635_v46, 2  ;;  %v3522_v53 = vpop.permute.xlu1 %3521  ;;  %v3524_v6 = vpop.permute.xlu0 %3523  ;;  %v6942_v35 = vpack.i.bf16 %v3878_v27, %v3876_v19 }
 0x4db   :  { %v3572_v57 = vsel %vm3545_vm14, %v3522_v53, %v3524_v6  ;;  %v3879_v52 = vrot.slane %v10070_v18, 4 }
 0x4dc   :  { %v3724_v14 = vsel %vm169_vm2, %v3721_v26, %v3723_v41  ;;  %v3636_v33 = vadd.f32 %v3572_v57, %v11236_v20  ;;  %6943 = vrot.lane.b32.xlu0 %v6942_v35, %s7260_s3 }
 0x4dd   :  { %v10082_v32 = vadd.f32 %v3724_v14, %v3634_v47  ;;  %6938 = vrot.lane.b32.xlu1 %v6937_v34, %s7253_s12  ;;  %v3880_v9 = vsel %vm301_vm3, %v3877_v58, %v3879_v52 }
 0x4de   :  { %v3725_v55 = vrot.slane %v3636_v33, 2  ;;  %v3528_v42 = vpop.permute.xlu1 %3527  ;;  %v3526_v40 = vpop.permute.xlu0 %3525  ;;  %v6947_v38 = vpack.i.bf16 %v3880_v9, %v3878_v27 }
 0x4df   :  { %v3573_v43 = vsel %vm3545_vm14, %v3526_v40, %v3528_v42  ;;  %v3881_v19 = vrot.slane %v10082_v32, 4  ;;  %v6952_v44 = vpack.i.bf16 %v10082_v32, %v10070_v18 }
 0x4e0   :  { %v3726_v26 = vsel %vm169_vm2, %v3723_v41, %v3725_v55  ;;  %v10091_v48 = vadd.f32 %v3573_v43, %v11237_v24  ;;  %6948 = vrot.lane.b32.xlu0 %v6947_v38, %s7263_s17 }
 0x4e1   :  { %v10094_v47 = vadd.f32 %v3726_v26, %v3635_v46  ;;  %v3882_v0 = vsel %vm301_vm3, %v3879_v52, %v3881_v19 }
 0x4e2   :  { %v3727_v4 = vrot.slane %v10091_v48, 2  ;;  %v6957_v58 = vpack.i.bf16 %v3882_v0, %v3880_v9 }
 0x4e3   :  { %v3883_v39 = vrot.slane %v10094_v47, 4 }
 0x4e4   :  { %v3728_v59 = vsel %vm169_vm2, %v3725_v55, %v3727_v4  ;;  %6953 = vrot.lane.b32.xlu0 %v6952_v44, %s7253_s12  ;;  %6958 = vrot.lane.b32.xlu1 %v6957_v58, %s7260_s3 }
 0x4e5   :  { %v10106_v13 = vadd.f32 %v3728_v59, %v3636_v33  ;;  %v3884_v46 = vsel %vm301_vm3, %v3881_v19, %v3883_v39 }
 0x4e6   :  { %v6962_v27 = vpack.i.bf16 %v3884_v46, %v3882_v0 }
 0x4e7   :  { %v3885_v41 = vrot.slane %v10106_v13, 4  ;;  %v6967_v6 = vpack.i.bf16 %v10106_v13, %v10094_v47 }
 0x4e8   :  { %6963 = vrot.lane.b32.xlu1 %v6962_v27, %s7263_s17 }
 0x4e9   :  { %v10114_v53 = vsel %vm301_vm3, %v3883_v39, %v3885_v41 }
 0x4ea   :  { %v6972_v35 = vpack.i.bf16 %v10114_v53, %v3884_v46 }
 0x4ec   :  { %6968 = vrot.lane.b32.xlu1 %v6967_v6, %s7253_s12  ;;  %6973 = vrot.lane.b32.xlu0 %v6972_v35, %s7260_s3 }
 0x4fb   :  { %v6789_v34 = vpop.permute.xlu1 %6788 }
 0x4fc   :  { %v6791_v9 = vunpack.i.h.bf16 %v6789_v34  ;;  %v6790_v55 = vunpack.i.l.bf16 %v6789_v34 }
 0x4fe   :  { %v6794_v57 = vpop.permute.xlu0 %6793 }
 0x4ff   :  { %v6796_v14 = vunpack.i.h.bf16 %v6794_v57  ;;  %v6795_v20 = vunpack.i.l.bf16 %v6794_v57 }
 0x501   :  { %v4282_v43 = vsel %vm2421_vm13, %v9777_v28, %v6796_v14  ;;  %v4314_v19 = vsel %vm689_vm4, %v6796_v14, %v6791_v9  ;;  %v4281_v26 = vsel %vm2421_vm13, %v9785_v17, %v6795_v20  ;;  %v4313_v24 = vsel %vm689_vm4, %v6795_v20, %v6790_v55  ;;  %v7228_v28 = vld [vmem:[%s11105_s5 + $0x80] sm:$0xff]   ;;  %v7229_v14 = vld [vmem:[%s11105_s5 + $0x88] sm:$0xff]  }
 0x502   :  { %v4410_v46 = vpack.c.bf16 %v4282_v43, %v4281_v26 }
 0x503   :  { %v6799_v52 = vpop.permute.xlu0 %6798 }
 0x504   :  { %v6801_v6 = vunpack.i.h.bf16 %v6799_v52  ;;  %v6800_v35 = vunpack.i.l.bf16 %v6799_v52 }
 0x506   :  { %v6809_v33 = vpop.permute.xlu1 %6808 }
 0x507   :  { %v10121_v42 = vpop.permute.xlu0 %6803  ;;  %v6811_v27 = vunpack.i.h.bf16 %v6809_v33  ;;  %v6810_v17 = vunpack.i.l.bf16 %v6809_v33 }
 0x508   :  { %v6806_v40 = vunpack.i.h.bf16 %v10121_v42  ;;  %v6805_v38 = vunpack.i.l.bf16 %v10121_v42 }
 0x509   :  { %v4315_v33 = vsel %vm689_vm4, %v6810_v17, %v6800_v35  ;;  %v4316_v55 = vsel %vm689_vm4, %v6811_v27, %v6801_v6  ;;  %v4283_v52 = vsel %vm2421_vm13, %v9794_v31, %v6810_v17  ;;  %v4284_v43 = vsel %vm2421_vm13, %v9808_v62, %v6811_v27 }
 0x50a   :  { %v4346_v0 = vsel %vm4345_vm15, %v4313_v24, %v6805_v38  ;;  %v4347_v44 = vsel %vm4345_vm15, %v4314_v19, %v6806_v40 }
 0x50b   :  { %v6814_v58 = vpop.permute.xlu1 %6813  ;;  %v3530_v39 = vpop.permute.xlu0 %3529  ;;  %v4411_v59 = vpack.c.bf16 %v4347_v44, %v4346_v0 }
 0x50c   :  { %v6816_v35 = vunpack.i.h.bf16 %v6814_v58 }
 0x50d   :  { %4762 = vmatprep.mubr.bf16.mxu0 %v4411_v59  ;;  %v7230_v59 = vld [vmem:[%s11105_s5 + $0x90] sm:$0xff]  }
 0x50e   :  { %4763 = vmatmul.mubr.bf16.vlgmr.msra.gmra.mrb[64].mxu0 %v4410_v46  ;;  %v4414_v46 = vpack.c.bf16 %v4284_v43, %v4283_v52 }
 0x50f   :  { %v10140_v57 = vpop.permute.xlu1 %6818  ;;  %v6824_v34 = vpop.permute.xlu0 %6823  ;;  %4892 = vmatpush1.bf16.msra.mxu0 %v7228_v28 }
 0x510   :  { %v11172_v20 = vunpack.i.h.bf16 %v10140_v57  ;;  %v11173_v9 = vunpack.i.l.bf16 %v10140_v57  ;;  %4893 = vmatprep.subr.bf16.mxu0 %v7264_v11  ;;  %v6826_v27 = vunpack.i.h.bf16 %v6824_v34  ;;  %v6825_v17 = vunpack.i.l.bf16 %v6824_v34 }
 0x512   :  { %v4348_v19 = vsel %vm4345_vm15, %v4315_v33, %v11173_v9  ;;  %v4349_v26 = vsel %vm4345_vm15, %v4316_v55, %v11172_v20  ;;  %v6815_v33 = vunpack.i.l.bf16 %v6814_v58 }
 0x513   :  { %v3532_v24 = vpop.permute.xlu1 %3531  ;;  %v6829_v0 = vpop.permute.xlu0 %6828  ;;  %v4415_v44 = vpack.c.bf16 %v4349_v26, %v4348_v19  ;;  %4894 = vmatpush1.bf16.msra.mxu0 %v7229_v14 }
 0x514   :  { %v3574_v28 = vsel %vm3545_vm14, %v3530_v39, %v3532_v24  ;;  %4895 = vmatprep.subr.bf16.mxu0 %v7264_v11  ;;  %v7231_v39 = vld [vmem:[%s11105_s5 + $0x98] sm:$0xff]   ;;  %v4317_v58 = vsel %vm689_vm4, %v6825_v17, %v6815_v33  ;;  %v4285_v24 = vsel %vm2421_vm13, %v9828_v23, %v6825_v17 }
 0x515   :  { %v10167_v6 = vadd.f32 %v3574_v28, %v3345_v7  ;;  %4770 = vmatprep.mubr.bf16.mxu0 %v4415_v44  ;;  %v4318_v7 = vsel %vm689_vm4, %v6826_v27, %v6816_v35  ;;  %v4286_v44 = vsel %vm2421_vm13, %v9838_v29, %v6826_v27  ;;  %v7232_v35 = vld [vmem:[%s11105_s5 + $0xa0] sm:$0xff]  }
 0x516   :  { %4771 = vmatmul.mubr.bf16.gmra.mrb[68].mxu0 %v4414_v46 }
 0x517   :  { %v3729_v14 = vrot.slane %v10167_v6, 2  ;;  %v6839_v55 = vpop.permute.xlu1 %6838  ;;  %v10170_v19 = vpop.permute.xlu0 %6833  ;;  %4896 = vmatpush1.bf16.msra.mxu0 %v7230_v59 }
 0x518   :  { %v11170_v34 = vunpack.i.h.bf16 %v10170_v19  ;;  %v11171_v10 = vunpack.i.l.bf16 %v10170_v19  ;;  %4897 = vmatprep.subr.bf16.mxu0 %v7264_v11  ;;  %v6841_v17 = vunpack.i.h.bf16 %v6839_v55  ;;  %v6840_v33 = vunpack.i.l.bf16 %v6839_v55 }
 0x519   :  { %v3730_v52 = vsel %vm169_vm2, %v3727_v4, %v3729_v14 }
 0x51a   :  { %v10186_v43 = vadd.f32 %v3730_v52, %v10091_v48  ;;  %v4350_v26 = vsel %vm4345_vm15, %v4317_v58, %v11171_v10  ;;  %v4351_v46 = vsel %vm4345_vm15, %v4318_v7, %v11170_v34  ;;  %v4418_v58 = vpack.c.bf16 %v4286_v44, %v4285_v24  ;;  %v7233_v44 = vld [vmem:[%s11105_s5 + $0xa8] sm:$0xff]  }
 0x51b   :  { %v6844_v59 = vpop.permute.xlu1 %6843  ;;  %v3536_v28 = vpop.permute.xlu0 %3535  ;;  %4898 = vmatpush1.bf16.msra.mxu0 %v7231_v39  ;;  %v4419_v4 = vpack.c.bf16 %v4351_v46, %v4350_v26  ;;  %v6831_v39 = vunpack.i.h.bf16 %v6829_v0  ;;  %v6830_v7 = vunpack.i.l.bf16 %v6829_v0 }
 0x51c   :  { %v3887_v48 = vrot.slane %v10186_v43, 4  ;;  %4899 = vmatprep.subr.bf16.mxu0 %v7264_v11  ;;  %v6846_v9 = vunpack.i.h.bf16 %v6844_v59 }
 0x51d   :  { %4778 = vmatprep.mubr.bf16.mxu0 %v4419_v4  ;;  %v4320_v0 = vsel %vm689_vm4, %v6841_v17, %v6831_v39 }
 0x51e   :  { %v10208_v27 = vsel %vm301_vm3, %v3885_v41, %v3887_v48  ;;  %4779 = vmatmul.mubr.bf16.gmra.mrb[72].mxu0 %v4418_v58  ;;  %v4319_v41 = vsel %vm689_vm4, %v6840_v33, %v6830_v7  ;;  %v4288_v58 = vsel %vm2421_vm13, %v9864_v61, %v6841_v17 }
 0x51f   :  { %v10210_v52 = vpop.permute.xlu1 %6848  ;;  %v3540_v26 = vpop.permute.xlu0 %3539  ;;  %v6977_v46 = vpack.i.bf16 %v10208_v27, %v10114_v53  ;;  %4900 = vmatpush1.bf16.msra.mxu0 %v7232_v35  ;;  %v4287_v35 = vsel %vm2421_vm13, %v9852_v25, %v6840_v33  ;;  %v6845_v33 = vunpack.i.l.bf16 %v6844_v59 }
 0x520   :  { %v11174_v55 = vunpack.i.h.bf16 %v10210_v52  ;;  %v11175_v24 = vunpack.i.l.bf16 %v10210_v52  ;;  %4901 = vmatprep.subr.bf16.mxu0 %v7264_v11 }
 0x521   :  { %6978 = vrot.lane.b32.xlu0 %v6977_v46, %s7263_s17 }
 0x522   :  { %v4352_v53 = vsel %vm4345_vm15, %v4319_v41, %v11175_v24  ;;  %v4353_v4 = vsel %vm4345_vm15, %v4320_v0, %v11174_v55  ;;  %v4422_v0 = vpack.c.bf16 %v4288_v58, %v4287_v35 }
 0x523   :  { %v3534_v7 = vpop.permute.xlu1 %3533  ;;  %v6854_v39 = vpop.permute.xlu0 %6853  ;;  %v4423_v34 = vpack.c.bf16 %v4353_v4, %v4352_v53  ;;  %4902 = vmatpush1.bf16.msra.mxu0 %v7233_v44 }
 0x524   :  { %v3575_v46 = vsel %vm3545_vm14, %v3534_v7, %v3536_v28  ;;  %v6856_v10 = vunpack.i.h.bf16 %v6854_v39  ;;  %v6855_v20 = vunpack.i.l.bf16 %v6854_v39  ;;  %4903 = vmatprep.subr.bf16.mxu0 %v7264_v11  ;;  %v7234_v28 = vld [vmem:[%s11105_s5 + $0xb0] sm:$0xff]  }
 0x525   :  { %v3639_v41 = vadd.f32 %v3575_v46, %v3347_v60  ;;  %4786 = vmatprep.mubr.bf16.mxu0 %v4423_v34 }
 0x526   :  { %v4322_v17 = vsel %vm689_vm4, %v6856_v10, %v6846_v9  ;;  %4787 = vmatmul.mubr.bf16.gmra.mrb[76].mxu0 %v4422_v0  ;;  %v4321_v44 = vsel %vm689_vm4, %v6855_v20, %v6845_v33  ;;  %v4289_v4 = vsel %vm2421_vm13, %v9878_v12, %v6855_v20  ;;  %v4290_v35 = vsel %vm2421_vm13, %v9890_v56, %v6856_v10 }
 0x527   :  { %v3731_v55 = vrot.slane %v3639_v41, 2  ;;  %v3538_v24 = vpop.permute.xlu1 %3537  ;;  %v10238_v53 = vpop.permute.xlu0 %6858  ;;  %4904 = vmatpush1.bf16.msra.mxu0 %v7234_v28 }
 0x528   :  { %v3576_v36 = vsel %vm3545_vm14, %v3538_v24, %v3540_v26  ;;  %v6861_v60 = vunpack.i.h.bf16 %v10238_v53  ;;  %v6860_v34 = vunpack.i.l.bf16 %v10238_v53  ;;  %4905 = vmatprep.subr.bf16.mxu0 %v7264_v11 }
 0x529   :  { %v3732_v9 = vsel %vm169_vm2, %v3729_v14, %v3731_v55  ;;  %v10252_v59 = vadd.f32 %v3576_v36, %v3349_v37 }
 0x52a   :  { %v10259_v26 = vadd.f32 %v3732_v9, %v10167_v6  ;;  %v4354_v24 = vsel %vm4345_vm15, %v4321_v44, %v6860_v34  ;;  %v4355_v21 = vsel %vm4345_vm15, %v4322_v17, %v6861_v60  ;;  %v4426_v6 = vpack.c.bf16 %v4290_v35, %v4289_v4 }
 0x52b   :  { %v3733_v37 = vrot.slane %v10252_v59, 2  ;;  %v6869_v20 = vpop.permute.xlu1 %6868  ;;  %v6864_v14 = vpop.permute.xlu0 %6863  ;;  %v4427_v58 = vpack.c.bf16 %v4355_v21, %v4354_v24 }
 0x52c   :  { %v6871_v10 = vunpack.i.h.bf16 %v6869_v20  ;;  %v6870_v7 = vunpack.i.l.bf16 %v6869_v20  ;;  %v6866_v39 = vunpack.i.h.bf16 %v6864_v14  ;;  %v6865_v0 = vunpack.i.l.bf16 %v6864_v14 }
 0x52d   :  { %v3734_v46 = vsel %vm169_vm2, %v3731_v55, %v3733_v37  ;;  %4794 = vmatprep.mubr.bf16.mxu0 %v4427_v58  ;;  %v6982_v33 = vpack.i.bf16 %v10259_v26, %v10186_v43  ;;  %v3889_v17 = vrot.slane %v10259_v26, 4 }
 0x52e   :  { %v10273_v28 = vadd.f32 %v3734_v46, %v3639_v41  ;;  %4795 = vmatmul.mubr.bf16.gmra.mrb[80].mxu0 %v4426_v6  ;;  %v4324_v41 = vsel %vm689_vm4, %v6871_v10, %v6866_v39  ;;  %v4323_v21 = vsel %vm689_vm4, %v6870_v7, %v6865_v0  ;;  %v4291_v20 = vsel %vm2421_vm13, %v9902_v50, %v6870_v7  ;;  %v7235_v7 = vld [vmem:[%s11105_s5 + $0xb8] sm:$0xff]  }
 0x52f   :  { %6983 = vrot.lane.b32.xlu0 %v6982_v33, %s7253_s12  ;;  %v10276_v44 = vpop.permute.xlu1 %6873  ;;  %v3542_v36 = vpop.permute.xlu0 %3541  ;;  %v3890_v9 = vsel %vm301_vm3, %v3887_v48, %v3889_v17  ;;  %v4292_v58 = vsel %vm2421_vm13, %v9916_v1, %v6871_v10  ;;  %4906 = vmatpush1.bf16.msra.mxu0 %v7235_v7 }
 0x530   :  { %v11176_v55 = vunpack.i.h.bf16 %v10276_v44  ;;  %v11177_v4 = vunpack.i.l.bf16 %v10276_v44  ;;  %v6987_v35 = vpack.i.bf16 %v3890_v9, %v10208_v27  ;;  %v3891_v24 = vrot.slane %v10273_v28, 4  ;;  %4907 = vmatprep.subr.bf16.mxu0 %v7264_v11 }
 0x532   :  { %6988 = vrot.lane.b32.xlu1 %v6987_v35, %s7260_s3  ;;  %v10291_v14 = vsel %vm301_vm3, %v3889_v17, %v3891_v24  ;;  %v4356_v48 = vsel %vm4345_vm15, %v4323_v21, %v11177_v4  ;;  %v4357_v27 = vsel %vm4345_vm15, %v4324_v41, %v11176_v55  ;;  %v4430_v35 = vpack.c.bf16 %v4292_v58, %v4291_v20 }
 0x533   :  { %v3544_v39 = vpop.permute.xlu1 %3543  ;;  %v6884_v6 = vpop.permute.xlu0 %6883  ;;  %v6992_v46 = vpack.i.bf16 %v10291_v14, %v3890_v9  ;;  %v4431_v0 = vpack.c.bf16 %v4357_v27, %v4356_v48 }
 0x534   :  { %v3577_v33 = vsel %vm3545_vm14, %v3542_v36, %v3544_v39  ;;  %v6886_v41 = vunpack.i.h.bf16 %v6884_v6  ;;  %v6885_v21 = vunpack.i.l.bf16 %v6884_v6 }
 0x535   :  { %v3641_v17 = vadd.f32 %v3577_v33, %v3351_v51  ;;  %4802 = vmatprep.mubr.bf16.mxu0 %v4431_v0 }
 0x536   :  { %6993 = vrot.lane.b32.xlu1 %v6992_v46, %s7263_s17  ;;  %4803 = vmatmul.mubr.bf16.gmra.mrb[84].mxu0 %v4430_v35  ;;  %v4294_v46 = vsel %vm2421_vm13, %v9945_v5, %v6886_v41 }
 0x537   :  { %v3735_v10 = vrot.slane %v3641_v17, 2  ;;  %v6879_v55 = vpop.permute.xlu1 %6878  ;;  %v10310_v4 = vpop.permute.xlu0 %6888 }
 0x538   :  { %v6881_v9 = vunpack.i.h.bf16 %v6879_v55  ;;  %v6880_v48 = vunpack.i.l.bf16 %v6879_v55  ;;  %v11179_v36 = vunpack.i.h.bf16 %v10310_v4  ;;  %v11181_v15 = vunpack.i.l.bf16 %v10310_v4 }
 0x539   :  { %v3736_v51 = vsel %vm169_vm2, %v3733_v37, %v3735_v10  ;;  %v3769_v20 = vsel %vm169_vm2, %v3735_v10, 0.0 }
 0x53a   :  { %v10317_v11 = vadd.f32 %v3736_v51, %v10252_v59  ;;  %v10319_v27 = vadd.f32 %v3769_v20, %v3641_v17  ;;  %v4325_v58 = vsel %vm689_vm4, %v6885_v21, %v6880_v48  ;;  %v4326_v7 = vsel %vm689_vm4, %v6886_v41, %v6881_v9 }
 0x53b   :  { %v6899_v39 = vpop.permute.xlu1 %6898  ;;  %v6894_v6 = vpop.permute.xlu0 %6893  ;;  %v4358_v55 = vsel %vm4345_vm15, %v4325_v58, %v11181_v15  ;;  %v4359_v37 = vsel %vm4345_vm15, %v4326_v7, %v11179_v36  ;;  %v4293_v59 = vsel %vm2421_vm13, %v9930_v49, %v6885_v21 }
 0x53c   :  { %v6901_v0 = vunpack.i.h.bf16 %v6899_v39  ;;  %v6900_v33 = vunpack.i.l.bf16 %v6899_v39  ;;  %v6896_v17 = vunpack.i.h.bf16 %v6894_v6  ;;  %v6895_v35 = vunpack.i.l.bf16 %v6894_v6 }
 0x53d   :  { %v6997_v10 = vpack.i.bf16 %v10317_v11, %v10273_v28  ;;  %v4435_v9 = vpack.c.bf16 %v4359_v37, %v4358_v55  ;;  %v3893_v48 = vrot.slane %v10317_v11, 4  ;;  %v3895_v51 = vrot.slane %v10319_v27, 4 }
 0x53e   :  { %v4434_v20 = vpack.c.bf16 %v4294_v46, %v4293_v59  ;;  %v4328_v37 = vsel %vm689_vm4, %v6901_v0, %v6896_v17  ;;  %v4327_v59 = vsel %vm689_vm4, %v6900_v33, %v6895_v35 }
 0x53f   :  { %6998 = vrot.lane.b32.xlu1 %v6997_v10, %s7253_s12  ;;  %4810 = vmatprep.mubr.bf16.mxu0 %v4435_v9  ;;  %v10338_v21 = vpop.permute.xlu1 %6903  ;;  %v6914_v58 = vpop.permute.xlu0 %6913  ;;  %v3894_v41 = vsel %vm301_vm3, %v3891_v24, %v3893_v48  ;;  %v3896_v7 = vsel %vm301_vm3, %v3893_v48, %v3895_v51  ;;  %v3898_v39 = vsel %vm301_vm3, %v3895_v51, 0.0  ;;  %v4295_v48 = vsel %vm2421_vm13, %v9958_v8, %v6900_v33 }
 0x540   :  { %v11180_v6 = vunpack.i.h.bf16 %v10338_v21  ;;  %v11178_v55 = vunpack.i.l.bf16 %v10338_v21  ;;  %4811 = vmatmul.mubr.bf16.gmra.mrb[88].mxu0 %v4434_v20  ;;  %v7002_v46 = vpack.i.bf16 %v3894_v41, %v10291_v14  ;;  %v7017_v10 = vpack.i.bf16 %v3898_v39, %v3896_v7 }
 0x541   :  { %v6916_v51 = vunpack.i.h.bf16 %v6914_v58  ;;  %v6915_v20 = vunpack.i.l.bf16 %v6914_v58  ;;  %v7007_v33 = vpack.i.bf16 %v3896_v7, %v3894_v41  ;;  %v11238_v58 = vmov 0.0  }
 0x542   :  { %v4360_v24 = vsel %vm4345_vm15, %v4327_v59, %v11178_v55  ;;  %v4361_v9 = vsel %vm4345_vm15, %v4328_v37, %v11180_v6  ;;  %7003 = vrot.lane.b32.xlu0 %v7002_v46, %s7260_s3  ;;  %v4296_v59 = vsel %vm2421_vm13, %v9976_v2, %v6901_v0  ;;  %v7022_v15 = vpack.i.bf16 %v11238_v58, %v3898_v39  ;;  %v7236_v46 = vld [vmem:[%s11105_s5 + $0xc0] sm:$0xff]  }
 0x543   :  { %7018 = vrot.lane.b32.xlu1 %v7017_v10, %s7260_s3  ;;  %v6909_v17 = vpop.permute.xlu1 %6908  ;;  %v10358_v14 = vpop.permute.xlu0 %6918  ;;  %v4439_v35 = vpack.c.bf16 %v4361_v9, %v4360_v24  ;;  %v4438_v9 = vpack.c.bf16 %v4296_v59, %v4295_v48  ;;  %4908 = vmatpush1.bf16.msra.mxu0 %v7236_v46 }
 0x544   :  { %v6911_v55 = vunpack.i.h.bf16 %v6909_v17  ;;  %v6910_v36 = vunpack.i.l.bf16 %v6909_v17  ;;  %v6921_v37 = vunpack.i.h.bf16 %v10358_v14  ;;  %v6920_v6 = vunpack.i.l.bf16 %v10358_v14 }
 0x545   :  { %4818 = vmatprep.mubr.bf16.mxu0 %v4439_v35 }
 0x546   :  { %v4329_v10 = vsel %vm689_vm4, %v6915_v20, %v6910_v36  ;;  %v4330_v24 = vsel %vm689_vm4, %v6916_v51, %v6911_v55  ;;  %7008 = vrot.lane.b32.xlu0 %v7007_v33, %s7263_s17  ;;  %v7012_v36 = vpack.i.bf16 %v11238_v58, %v10319_v27  ;;  %v7032_v55 = vpack.i.bf16 %v9838_v29, %v9828_v23 }
 0x547   :  { %7023 = vrot.lane.b32.xlu1 %v7022_v15, %s7263_s17  ;;  %v6929_v0 = vpop.permute.xlu1 %6928  ;;  %v6924_v17 = vpop.permute.xlu0 %6923  ;;  %v4362_v41 = vsel %vm4345_vm15, %v4329_v10, %v6920_v6  ;;  %v4363_v7 = vsel %vm4345_vm15, %v4330_v24, %v6921_v37  ;;  %v4297_v10 = vsel %vm2421_vm13, %v9989_v30, %v6915_v20  ;;  %v4298_v24 = vsel %vm2421_vm13, %v10001_v16, %v6916_v51 }
 0x548   :  { %v6931_v39 = vunpack.i.h.bf16 %v6929_v0  ;;  %4819 = vmatmul.mubr.bf16.gmra.mrb[92].mxu0 %v4438_v9  ;;  %v6930_v48 = vunpack.i.l.bf16 %v6929_v0  ;;  %v6926_v15 = vunpack.i.h.bf16 %v6924_v17  ;;  %v6925_v35 = vunpack.i.l.bf16 %v6924_v17 }
 0x549   :  { %v4443_v59 = vpack.c.bf16 %v4363_v7, %v4362_v41  ;;  %v7027_v0 = vpack.i.bf16 %v9808_v62, %v9794_v31  ;;  %v7042_v17 = vpack.i.bf16 %v9890_v56, %v9878_v12  ;;  %v4442_v20 = vpack.c.bf16 %v4298_v24, %v4297_v10 }
 0x54a   :  { %7013 = vrot.lane.b32.xlu0 %v7012_v36, %s7253_s12  ;;  %v4332_v9 = vsel %vm689_vm4, %v6931_v39, %v6926_v15  ;;  %v4331_v46 = vsel %vm689_vm4, %v6930_v48, %v6925_v35  ;;  %v7037_v56 = vpack.i.bf16 %v9864_v61, %v9852_v25  ;;  %v7052_v35 = vpack.i.bf16 %v9945_v5, %v9930_v49 }
 0x54b   :  { %7033 = vrot.lane.b32.xlu1 %v7032_v55, %s7255_s22  ;;  %v10384_v33 = vpop.permute.xlu1 %6933  ;;  %4826 = vmatprep.mubr.bf16.mxu0 %v4443_v59  ;;  %v4300_v25 = vsel %vm2421_vm13, %v10025_v3, %v6931_v39  ;;  %v7047_v5 = vpack.i.bf16 %v9916_v1, %v9902_v50 }
 0x54c   :  { %v6936_v23 = vunpack.i.h.bf16 %v10384_v33  ;;  %v6935_v29 = vunpack.i.l.bf16 %v10384_v33 }
 0x54e   :  { %v6944_v41 = vpop.permute.xlu0 %6943  ;;  %v4364_v51 = vsel %vm4345_vm15, %v4331_v46, %v6935_v29  ;;  %v4365_v7 = vsel %vm4345_vm15, %v4332_v9, %v6936_v23  ;;  %7028 = vrot.lane.b32.xlu0 %v7027_v0, %s7255_s22  ;;  %v4299_v9 = vsel %vm2421_vm13, %v10013_v63, %v6930_v48  ;;  %v7062_v46 = vpack.i.bf16 %v10001_v16, %v9989_v30 }
 0x54f   :  { %7043 = vrot.lane.b32.xlu1 %v7042_v17, %s7255_s22  ;;  %v6939_v36 = vpop.permute.xlu1 %6938  ;;  %v4447_v55 = vpack.c.bf16 %v4365_v7, %v4364_v51  ;;  %v6946_v31 = vunpack.i.h.bf16 %v6944_v41  ;;  %v6945_v62 = vunpack.i.l.bf16 %v6944_v41  ;;  %v4446_v41 = vpack.c.bf16 %v4300_v25, %v4299_v9 }
 0x550   :  { %v6941_v15 = vunpack.i.h.bf16 %v6939_v36  ;;  %v6940_v12 = vunpack.i.l.bf16 %v6939_v36  ;;  %4827 = vmatmul.mubr.bf16.gmra.mrb[96].mxu0 %v4442_v20  ;;  %v7057_v16 = vpack.i.bf16 %v9976_v2, %v9958_v8  ;;  %v7072_v7 = vpack.i.bf16 %v10048_v45, %v10035_v22 }
 0x551   :  { %4834 = vmatprep.mubr.bf16.mxu0 %v4447_v55  ;;  %v7082_v9 = vpack.i.bf16 %v10094_v47, %v10082_v32 }
 0x552   :  { %v10410_v59 = vpop.permute.xlu0 %6948  ;;  %7038 = vrot.lane.b32.xlu0 %v7037_v56, %s7255_s22  ;;  %v4333_v61 = vsel %vm689_vm4, %v6945_v62, %v6940_v12  ;;  %v4334_v49 = vsel %vm689_vm4, %v6946_v31, %v6941_v15  ;;  %v4301_v12 = vsel %vm2421_vm13, %v10035_v22, %v6945_v62  ;;  %v4302_v56 = vsel %vm2421_vm13, %v10048_v45, %v6946_v31 }
 0x553   :  { %7053 = vrot.lane.b32.xlu1 %v7052_v35, %s7255_s22  ;;  %v6951_v10 = vunpack.i.h.bf16 %v10410_v59  ;;  %v6950_v24 = vunpack.i.l.bf16 %v10410_v59  ;;  %v7067_v35 = vpack.i.bf16 %v10025_v3, %v10013_v63  ;;  %v4450_v62 = vpack.c.bf16 %v4302_v56, %v4301_v12 }
 0x554   :  { %v7077_v63 = vpack.i.bf16 %v10070_v18, %v10060_v54  ;;  %v7092_v3 = vpack.i.bf16 %v10273_v28, %v10259_v26 }
 0x555   :  { %v4366_v0 = vsel %vm4345_vm15, %v4333_v61, %v6950_v24  ;;  %v4367_v48 = vsel %vm4345_vm15, %v4334_v49, %v6951_v10  ;;  %v7087_v49 = vpack.i.bf16 %v10186_v43, %v10106_v13 }
 0x556   :  { %v6959_v17 = vpop.permute.xlu1 %6958  ;;  %v6954_v39 = vpop.permute.xlu0 %6953  ;;  %v4451_v20 = vpack.c.bf16 %v4367_v48, %v4366_v0  ;;  %7048 = vrot.lane.b32.xlu0 %v7047_v5, %s7255_s22 }
 0x557   :  { %7063 = vrot.lane.b32.xlu1 %v7062_v46, %s7255_s22  ;;  %v6961_v50 = vunpack.i.h.bf16 %v6959_v17  ;;  %v6960_v1 = vunpack.i.l.bf16 %v6959_v17  ;;  %v6956_v51 = vunpack.i.h.bf16 %v6954_v39  ;;  %v6955_v30 = vunpack.i.l.bf16 %v6954_v39 }
 0x558   :  { %4835 = vmatmul.mubr.bf16.gmra.mrb[100].mxu0 %v4446_v41  ;;  %v7097_v46 = vpack.i.bf16 %v10319_v27, %v10317_v11 }
 0x559   :  { %4842 = vmatprep.mubr.bf16.mxu0 %v4451_v20  ;;  %v4336_v8 = vsel %vm689_vm4, %v6961_v50, %v6956_v51  ;;  %v4335_v2 = vsel %vm689_vm4, %v6960_v1, %v6955_v30  ;;  %v4303_v31 = vsel %vm2421_vm13, %v10060_v54, %v6960_v1  ;;  %v4304_v61 = vsel %vm2421_vm13, %v10070_v18, %v6961_v50 }
 0x55a   :  { %v10438_v36 = vpop.permute.xlu1 %6963  ;;  %7058 = vrot.lane.b32.xlu0 %v7057_v16, %s7255_s22  ;;  %v4454_v5 = vpack.c.bf16 %v4304_v61, %v4303_v31 }
 0x55b   :  { %v6966_v55 = vunpack.i.h.bf16 %v10438_v36  ;;  %v6965_v15 = vunpack.i.l.bf16 %v10438_v36  ;;  %7073 = vrot.lane.b32.xlu1 %v7072_v7, %s7255_s22  ;;  %v7242_v36 = vld [vmem:[%s11106_s7 + $0x28] sm:$0xff]  }
 0x55d   :  { %v4368_v25 = vsel %vm4345_vm15, %v4335_v2, %v6965_v15  ;;  %v4369_v22 = vsel %vm4345_vm15, %v4336_v8, %v6966_v55 }
 0x55e   :  { %v4455_v45 = vpack.c.bf16 %v4369_v22, %v4368_v25  ;;  %7068 = vrot.lane.b32.xlu0 %v7067_v35, %s7255_s22  ;;  %v6969_v0 = vpop.permute.xlu1 %6968  ;;  %v6974_v54 = vpop.permute.xlu0 %6973 }
 0x55f   :  { %7083 = vrot.lane.b32.xlu1 %v7082_v9, %s7255_s22  ;;  %v6971_v48 = vunpack.i.h.bf16 %v6969_v0  ;;  %v6970_v17 = vunpack.i.l.bf16 %v6969_v0  ;;  %v6976_v18 = vunpack.i.h.bf16 %v6974_v54  ;;  %v6975_v39 = vunpack.i.l.bf16 %v6974_v54 }
 0x560   :  { %4843 = vmatmul.mubr.bf16.gmra.mrb[104].mxu0 %v4450_v62 }
 0x561   :  { %4850 = vmatprep.mubr.bf16.mxu0 %v4455_v45  ;;  %v4337_v1 = vsel %vm689_vm4, %v6975_v39, %v6970_v17  ;;  %v4305_v51 = vsel %vm2421_vm13, %v10082_v32, %v6975_v39  ;;  %v4306_v30 = vsel %vm2421_vm13, %v10094_v47, %v6976_v18 }
 0x562   :  { %7078 = vrot.lane.b32.xlu0 %v7077_v63, %s7255_s22  ;;  %v4458_v56 = vpack.c.bf16 %v4306_v30, %v4305_v51 }
 0x563   :  { %7093 = vrot.lane.b32.xlu1 %v7092_v3, %s7255_s22 }
 0x566   :  { %7088 = vrot.lane.b32.xlu0 %v7087_v49, %s7255_s22 }
 0x567   :  { %4248 = vrot.lane.b32.xlu1 %v11238_v58, %s7255_s22  ;;  %v4338_v58 = vsel %vm689_vm4, %v6976_v18, %v6971_v48 }
 0x568   :  { %4851 = vmatmul.mubr.bf16.gmra.mrb[108].mxu0 %v4454_v5 }
 0x56a   :  { %7098 = vrot.lane.b32.xlu0 %v7097_v46, %s7255_s22 }
 0x593   :  { %v10480_v41 = vpop.permute.xlu0 %6978 }
 0x594   :  { %v6981_v20 = vunpack.i.h.bf16 %v10480_v41  ;;  %v6980_v50 = vunpack.i.l.bf16 %v10480_v41 }
 0x596   :  { %v4370_v16 = vsel %vm4345_vm15, %v4337_v1, %v6980_v50  ;;  %v4371_v7 = vsel %vm4345_vm15, %v4338_v58, %v6981_v20 }
 0x597   :  { %v4459_v12 = vpack.c.bf16 %v4371_v7, %v4370_v16 }
 0x599   :  { %4858 = vmatprep.mubr.bf16.mxu0 %v4459_v12 }
 0x59a   :  { %4859 = vmatmul.mubr.bf16.gmra.mrb[112].mxu0 %v4458_v56 }
 0x5a1   :  { %v6984_v2 = vpop.permute.xlu0 %6983 }
 0x5a2   :  { %v6986_v32 = vunpack.i.h.bf16 %v6984_v2  ;;  %v6985_v25 = vunpack.i.l.bf16 %v6984_v2 }
 0x5a4   :  { %v6989_v8 = vpop.permute.xlu1 %6988 }
 0x5a5   :  { %v6991_v35 = vunpack.i.h.bf16 %v6989_v8  ;;  %v6990_v9 = vunpack.i.l.bf16 %v6989_v8 }
 0x5a7   :  { %v4339_v45 = vsel %vm689_vm4, %v6990_v9, %v6985_v25  ;;  %v4340_v63 = vsel %vm689_vm4, %v6991_v35, %v6986_v32  ;;  %v4307_v3 = vsel %vm2421_vm13, %v10106_v13, %v6990_v9  ;;  %v4308_v31 = vsel %vm2421_vm13, %v10186_v43, %v6991_v35 }
 0x5a8   :  { %v10496_v22 = vpop.permute.xlu1 %6993  ;;  %v4462_v46 = vpack.c.bf16 %v4308_v31, %v4307_v3 }
 0x5a9   :  { %v6996_v47 = vunpack.i.h.bf16 %v10496_v22  ;;  %v6995_v62 = vunpack.i.l.bf16 %v10496_v22 }
 0x5ab   :  { %v4372_v61 = vsel %vm4345_vm15, %v4339_v45, %v6995_v62  ;;  %v4373_v49 = vsel %vm4345_vm15, %v4340_v63, %v6996_v47 }
 0x5ac   :  { %v4463_v5 = vpack.c.bf16 %v4373_v49, %v4372_v61 }
 0x5ae   :  { %4866 = vmatprep.mubr.bf16.mxu0 %v4463_v5 }
 0x5af   :  { %4867 = vmatmul.mubr.bf16.gmra.mrb[116].mxu0 %v4462_v46 }
 0x5b1   :  { %v6999_v0 = vpop.permute.xlu1 %6998 }
 0x5b2   :  { %v7001_v18 = vunpack.i.h.bf16 %v6999_v0  ;;  %v7000_v39 = vunpack.i.l.bf16 %v6999_v0 }
 0x5b4   :  { %v7004_v54 = vpop.permute.xlu0 %7003 }
 0x5b5   :  { %v7019_v48 = vpop.permute.xlu1 %7018  ;;  %v7006_v17 = vunpack.i.h.bf16 %v7004_v54  ;;  %v7005_v13 = vunpack.i.l.bf16 %v7004_v54 }
 0x5b6   :  { %v7021_v2 = vunpack.i.h.bf16 %v7019_v48  ;;  %v7020_v25 = vunpack.i.l.bf16 %v7019_v48 }
 0x5b7   :  { %v4342_v30 = vsel %vm689_vm4, %v7006_v17, %v7001_v18  ;;  %v4341_v16 = vsel %vm689_vm4, %v7005_v13, %v7000_v39  ;;  %v4309_v7 = vsel %vm2421_vm13, %v10259_v26, %v7005_v13  ;;  %v4310_v12 = vsel %vm2421_vm13, %v10273_v28, %v7006_v17 }
 0x5b8   :  { %v10512_v43 = vpop.permute.xlu0 %7008  ;;  %v4466_v3 = vpack.c.bf16 %v4310_v12, %v4309_v7  ;;  %v4311_v54 = vsel %vm2421_vm13, %v10317_v11, %v7020_v25  ;;  %v4312_v18 = vsel %vm2421_vm13, %v10319_v27, %v7021_v2  ;;  %v7237_v11 = vld [vmem:[%s11106_s7] sm:$0xff]  }
 0x5b9   :  { %v10514_v58 = vpop.permute.xlu1 %7023  ;;  %v7011_v1 = vunpack.i.h.bf16 %v10512_v43  ;;  %v7010_v51 = vunpack.i.l.bf16 %v10512_v43  ;;  %5975 = vmatprep.subr.bf16.mxu0 %v7237_v11  ;;  %6071 = vmatprep.subr.bf16.mxu1 %v7237_v11 }
 0x5ba   :  { %v7026_v26 = vunpack.i.h.bf16 %v10514_v58  ;;  %v7025_v28 = vunpack.i.l.bf16 %v10514_v58  ;;  %6079 = vmatpush3.bf16.msra.mxu1 %v7237_v11 }
 0x5bb   :  { %v4374_v56 = vsel %vm4345_vm15, %v4341_v16, %v7010_v51  ;;  %v4375_v8 = vsel %vm4345_vm15, %v4342_v30, %v7011_v1  ;;  %v4470_v16 = vpack.c.bf16 %v4312_v18, %v4311_v54 }
 0x5bc   :  { %v7014_v35 = vpop.permute.xlu0 %7013  ;;  %v4467_v32 = vpack.c.bf16 %v4375_v8, %v4374_v56 }
 0x5bd   :  { %v7034_v9 = vpop.permute.xlu1 %7033  ;;  %v7016_v45 = vunpack.i.h.bf16 %v7014_v35  ;;  %v7015_v63 = vunpack.i.l.bf16 %v7014_v35 }
 0x5be   :  { %4874 = vmatprep.mubr.bf16.mxu0 %v4467_v32  ;;  %v7036_v8 = vunpack.i.h.bf16 %v7034_v9  ;;  %v7035_v27 = vunpack.i.l.bf16 %v7034_v9 }
 0x5bf   :  { %v4344_v31 = vsel %vm689_vm4, %v7021_v2, %v7016_v45  ;;  %v4343_v61 = vsel %vm689_vm4, %v7020_v25, %v7015_v63  ;;  %4875 = vmatmul.mubr.bf16.gmra.mrb[120].mxu0 %v4466_v3 }
 0x5c0   :  { %v7029_v49 = vpop.permute.xlu0 %7028  ;;  %v4376_v46 = vsel %vm4345_vm15, %v4343_v61, %v7025_v28  ;;  %v4377_v0 = vsel %vm4345_vm15, %v4344_v31, %v7026_v26  ;;  %v4417_v63 = vpack.c.bf16 %v7036_v8, %v7035_v27  ;;  %v11240_v61 = vunpack.i.h.bf16 %v10140_v57 }
 0x5c1   :  { %v10534_v5 = vpop.permute.xlu1 %7043  ;;  %v7031_v48 = vunpack.i.h.bf16 %v7029_v49  ;;  %v7030_v17 = vunpack.i.l.bf16 %v7029_v49  ;;  %v4471_v13 = vpack.c.bf16 %v4377_v0, %v4376_v46 }
 0x5c2   :  { %v4381_v49 = vsel %vm722_vm5, %v11240_v61, %v7036_v8  ;;  %v11243_v61 = vunpack.i.l.bf16 %v10210_v52 }
 0x5c3   :  { %4882 = vmatprep.mubr.bf16.mxu0 %v4471_v13  ;;  %v4413_v7 = vpack.c.bf16 %v7031_v48, %v7030_v17  ;;  %v4378_v2 = vsel %vm722_vm5, %v6805_v38, %v7030_v17  ;;  %v4379_v35 = vsel %vm722_vm5, %v6806_v40, %v7031_v48  ;;  %v11239_v40 = vunpack.i.l.bf16 %v10140_v57 }
 0x5c4   :  { %v7039_v39 = vpop.permute.xlu0 %7038  ;;  %v4412_v45 = vpack.c.bf16 %v4379_v35, %v4378_v2  ;;  %v11242_v2 = vunpack.i.h.bf16 %v10170_v19 }
 0x5c5   :  { %v10544_v30 = vpop.permute.xlu1 %7053  ;;  %v7041_v42 = vunpack.i.h.bf16 %v7039_v39  ;;  %v7040_v38 = vunpack.i.l.bf16 %v7039_v39  ;;  %v4380_v31 = vsel %vm722_vm5, %v11239_v40, %v7035_v27 }
 0x5c6   :  { %v4416_v17 = vpack.c.bf16 %v4381_v49, %v4380_v31 }
 0x5c7   :  { %4883 = vmatmul.mubr.bf16.gmra.mrb[124].mxu0 %v4470_v16  ;;  %v4421_v13 = vpack.c.bf16 %v7041_v42, %v7040_v38 }
 0x5c8   :  { %v10546_v12 = vpop.permute.xlu0 %7048  ;;  %5781 = vmatprep.mubr.msk.bf16.mxu0 %vm4681_vm0, %v4413_v7  ;;  %v7046_v7 = vunpack.i.h.bf16 %v10534_v5 }
 0x5c9   :  { %v10549_v56 = vpop.permute.xlu1 %7063 }
 0x5cc   :  { %v10560_v32 = vpop.permute.xlu0 %7058 }
 0x5cd   :  { %v10562_v25 = vpop.permute.xlu1 %7073 }
 0x5cf   :  { %4924 = vmatmul.mubr.bf16.vlgmr.msra.gmra.mrb[128].mxu0 %v4412_v45 }
 0x5d0   :  { %v10564_v3 = vpop.permute.xlu0 %7068  ;;  %5782 = vmatprep.mubr.msk.bf16.mxu0 %vm4681_vm0, %v4417_v63  ;;  %5976 = vmatpush3.bf16.msra.mxu0 %v7237_v11  ;;  %v7045_v11 = vunpack.i.l.bf16 %v10534_v5  ;;  %v4383_v5 = vsel %vm722_vm5, %v11242_v2, %v7041_v42 }
 0x5d1   :  { %v10567_v9 = vpop.permute.xlu1 %7083 }
 0x5d2   :  { %v4425_v63 = vpack.c.bf16 %v7046_v7, %v7045_v11  ;;  %v4384_v49 = vsel %vm722_vm5, %v11243_v61, %v7045_v11 }
 0x5d4   :  { %v10575_v46 = vpop.permute.xlu0 %7078 }
 0x5d5   :  { %v10577_v0 = vpop.permute.xlu1 %7093 }
 0x5d6   :  { %v7096_v54 = vunpack.i.h.bf16 %v10577_v0  ;;  %v7095_v48 = vunpack.i.l.bf16 %v10577_v0 }
 0x5d7   :  { %4932 = vmatmul.mubr.bf16.gmra.mrb[132].mxu0 %v4416_v17  ;;  %v7050_v17 = vunpack.i.l.bf16 %v10546_v12 }
 0x5d8   :  { %v10581_v18 = vpop.permute.xlu0 %7088  ;;  %5783 = vmatprep.mubr.msk.bf16.mxu0 %vm4681_vm0, %v4421_v13  ;;  %v10591_v57 = vsel %vm722_vm5, %v6995_v62, %v7095_v48  ;;  %v10598_v16 = vsel %vm722_vm5, %v6996_v47, %v7096_v54  ;;  %v11241_v47 = vunpack.i.l.bf16 %v10170_v19  ;;  %v4465_v41 = vpack.c.bf16 %v7096_v54, %v7095_v48 }
 0x5d9   :  { %v10584_v39 = vpop.permute.xlu1 %4248  ;;  %v7091_v59 = vunpack.i.h.bf16 %v10581_v18 }
 0x5da   :  { %v10604_v8 = vsel %vm722_vm5, %v7025_v28, %v10584_v39  ;;  %v10610_v62 = vsel %vm722_vm5, %v7026_v26, %v10584_v39  ;;  %v4382_v27 = vsel %vm722_vm5, %v11241_v47, %v7040_v38  ;;  %v4464_v28 = vpack.c.bf16 %v10598_v16, %v10591_v57 }
 0x5db   :  { %v4472_v22 = vpack.c.bf16 %v10610_v62, %v10604_v8  ;;  %v4420_v45 = vpack.c.bf16 %v4383_v5, %v4382_v27 }
 0x5dc   :  { %v10622_v35 = vpop.permute.xlu0 %7098 }
 0x5dd   :  { %v7101_v58 = vunpack.i.h.bf16 %v10622_v35  ;;  %v7100_v26 = vunpack.i.l.bf16 %v10622_v35 }
 0x5df   :  { %4940 = vmatmul.mubr.bf16.gmra.mrb[136].mxu0 %v4420_v45  ;;  %v10631_v19 = vsel %vm722_vm5, %v7010_v51, %v7100_v26  ;;  %v10638_v42 = vsel %vm722_vm5, %v7011_v1, %v7101_v58  ;;  %v7051_v51 = vunpack.i.h.bf16 %v10546_v12  ;;  %v11244_v1 = vunpack.i.h.bf16 %v10210_v52 }
 0x5e0   :  { %5784 = vmatprep.mubr.msk.bf16.mxu0 %vm4681_vm0, %v4425_v63  ;;  %v4468_v40 = vpack.c.bf16 %v10638_v42, %v10631_v19  ;;  %v7056_v63 = vunpack.i.h.bf16 %v10544_v30  ;;  %v7055_v12 = vunpack.i.l.bf16 %v10544_v30  ;;  %v4386_v52 = vsel %vm722_vm5, %v6860_v34, %v7050_v17  ;;  %v7238_v30 = vld [vmem:[%s11106_s7 + $0x8] sm:$0xff]  }
 0x5e1   :  { %v5831_v38 = vpop.f32.mrb[64].mxu0  ;;  %v4385_v47 = vsel %vm722_vm5, %v11244_v1, %v7046_v7  ;;  %v4429_v45 = vpack.c.bf16 %v7051_v51, %v7050_v17  ;;  %v4387_v7 = vsel %vm722_vm5, %v6861_v60, %v7051_v51  ;;  %v7060_v34 = vunpack.i.l.bf16 %v10560_v32  ;;  %5977 = vmatprep.subr.bf16.mxu0 %v7238_v30  ;;  %6072 = vmatprep.subr.bf16.mxu1 %v7238_v30 }
 0x5e2   :  { %v5832_v31 = vpop.f32.mrb[65].mxu0  ;;  %v4424_v5 = vpack.c.bf16 %v4385_v47, %v4384_v49  ;;  %v4428_v1 = vpack.c.bf16 %v4387_v7, %v4386_v52  ;;  %v4433_v47 = vpack.c.bf16 %v7056_v63, %v7055_v12  ;;  %v11245_v60 = vunpack.i.l.bf16 %v10276_v44  ;;  %5978 = vmatpush3.bf16.msra.mxu0 %v7238_v30  ;;  %6080 = vmatpush3.bf16.msra.mxu1 %v7238_v30 }
 0x5e3   :  { %v10648_v13 = vadd.f32 %v5832_v31, %v5831_v38  ;;  %v5834_v43 = vpop.f32.mrb[66].mxu0  ;;  %v11246_v17 = vunpack.i.h.bf16 %v10276_v44  ;;  %v7066_v44 = vunpack.i.h.bf16 %v10549_v56  ;;  %v11248_v30 = vunpack.i.h.bf16 %v10310_v4 }
 0x5e4   :  { %v5835_v27 = vpop.f32.mrb[67].mxu0  ;;  %v4388_v51 = vsel %vm722_vm5, %v11245_v60, %v7055_v12 }
 0x5e5   :  { %v10653_v2 = vadd.f32 %v5835_v27, %v5834_v43 }
 0x5e7   :  { %4948 = vmatmul.mubr.bf16.gmra.mrb[140].mxu0 %v4424_v5  ;;  %v7061_v5 = vunpack.i.h.bf16 %v10560_v32 }
 0x5e8   :  { %5785 = vmatprep.mubr.msk.bf16.mxu0 %vm4681_vm0, %v4429_v45  ;;  %v4389_v45 = vsel %vm722_vm5, %v11246_v17, %v7056_v63  ;;  %v7065_v63 = vunpack.i.l.bf16 %v10549_v56 }
 0x5e9   :  { %v5837_v11 = vpop.f32.mrb[68].mxu0  ;;  %v4432_v32 = vpack.c.bf16 %v4389_v45, %v4388_v51  ;;  %v4437_v7 = vpack.c.bf16 %v7061_v5, %v7060_v34 }
 0x5ea   :  { %v5838_v61 = vpop.f32.mrb[69].mxu0 }
 0x5eb   :  { %v10658_v38 = vadd.f32 %v5838_v61, %v5837_v11  ;;  %v5840_v31 = vpop.f32.mrb[70].mxu0 }
 0x5ec   :  { %v5841_v49 = vpop.f32.mrb[71].mxu0 }
 0x5ed   :  { %v10666_v43 = vadd.f32 %v5841_v49, %v5840_v31 }
 0x5ef   :  { %4956 = vmatmul.mubr.bf16.gmra.mrb[144].mxu0 %v4428_v1  ;;  %v11247_v1 = vunpack.i.l.bf16 %v10310_v4  ;;  %v11249_v4 = vunpack.i.l.bf16 %v10338_v21 }
 0x5f0   :  { %5786 = vmatprep.mubr.msk.bf16.mxu0 %vm4681_vm0, %v4433_v47 }
 0x5f1   :  { %v5843_v27 = vpop.f32.mrb[72].mxu0  ;;  %v4390_v47 = vsel %vm722_vm5, %v11247_v1, %v7060_v34  ;;  %v7070_v34 = vunpack.i.l.bf16 %v10564_v3 }
 0x5f2   :  { %v5844_v53 = vpop.f32.mrb[73].mxu0 }
 0x5f3   :  { %v10680_v11 = vadd.f32 %v5844_v53, %v5843_v27  ;;  %v5846_v61 = vpop.f32.mrb[74].mxu0  ;;  %v4391_v27 = vsel %vm722_vm5, %v11248_v30, %v7061_v5  ;;  %v4392_v5 = vsel %vm722_vm5, %v11249_v4, %v7065_v63 }
 0x5f4   :  { %v5847_v31 = vpop.f32.mrb[75].mxu0  ;;  %v4436_v45 = vpack.c.bf16 %v4391_v27, %v4390_v47 }
 0x5f5   :  { %v10682_v52 = vadd.f32 %v5847_v31, %v5846_v61  ;;  %v4441_v61 = vpack.c.bf16 %v7066_v44, %v7065_v63  ;;  %v7071_v31 = vunpack.i.h.bf16 %v10564_v3  ;;  %v7239_v3 = vld [vmem:[%s11106_s7 + $0x10] sm:$0xff]   ;;  %v7075_v63 = vunpack.i.l.bf16 %v10562_v25 }
 0x5f6   :  { %5979 = vmatprep.subr.bf16.mxu0 %v7239_v3  ;;  %6073 = vmatprep.subr.bf16.mxu1 %v7239_v3 }
 0x5f7   :  { %4964 = vmatmul.mubr.bf16.gmra.mrb[148].mxu0 %v4432_v32  ;;  %6081 = vmatpush3.bf16.msra.mxu1 %v7239_v3  ;;  %v4396_v14 = vsel %vm722_vm5, %v6935_v29, %v7075_v63  ;;  %v7085_v29 = vunpack.i.l.bf16 %v10567_v9 }
 0x5f8   :  { %5787 = vmatprep.mubr.msk.bf16.mxu0 %vm4681_vm0, %v4437_v7  ;;  %v11250_v7 = vunpack.i.h.bf16 %v10338_v21  ;;  %5980 = vmatpush3.bf16.msra.mxu0 %v7239_v3 }
 0x5f9   :  { %v5849_v12 = vpop.f32.mrb[76].mxu0 }
 0x5fa   :  { %v5850_v49 = vpop.f32.mrb[77].mxu0 }
 0x5fb   :  { %v10693_v53 = vadd.f32 %v5850_v49, %v5849_v12  ;;  %v5852_v60 = vpop.f32.mrb[78].mxu0  ;;  %v4393_v12 = vsel %vm722_vm5, %v11250_v7, %v7066_v44  ;;  %v7076_v44 = vunpack.i.h.bf16 %v10562_v25  ;;  %v7081_v25 = vunpack.i.h.bf16 %v10575_v46 }
 0x5fc   :  { %v5853_v51 = vpop.f32.mrb[79].mxu0  ;;  %v4440_v27 = vpack.c.bf16 %v4393_v12, %v4392_v5 }
 0x5fd   :  { %v10695_v17 = vadd.f32 %v5853_v51, %v5852_v60  ;;  %v4445_v60 = vpack.c.bf16 %v7071_v31, %v7070_v34  ;;  %v4449_v12 = vpack.c.bf16 %v7076_v44, %v7075_v63 }
 0x5ff   :  { %4972 = vmatmul.mubr.bf16.gmra.mrb[152].mxu0 %v4436_v45  ;;  %v4394_v45 = vsel %vm722_vm5, %v6920_v6, %v7070_v34  ;;  %v7080_v6 = vunpack.i.l.bf16 %v10575_v46  ;;  %v7086_v46 = vunpack.i.h.bf16 %v10567_v9 }
 0x600   :  { %5788 = vmatprep.mubr.msk.bf16.mxu0 %vm4681_vm0, %v4441_v61  ;;  %v4395_v61 = vsel %vm722_vm5, %v6921_v37, %v7071_v31  ;;  %v4397_v37 = vsel %vm722_vm5, %v6936_v23, %v7076_v44  ;;  %v4399_v23 = vsel %vm722_vm5, %v6951_v10, %v7081_v25  ;;  %v7240_v44 = vld [vmem:[%s11106_s7 + $0x18] sm:$0xff]   ;;  %v7090_v10 = vunpack.i.l.bf16 %v10581_v18 }
 0x601   :  { %v5855_v56 = vpop.f32.mrb[80].mxu0  ;;  %v4444_v7 = vpack.c.bf16 %v4395_v61, %v4394_v45  ;;  %v4448_v3 = vpack.c.bf16 %v4397_v37, %v4396_v14  ;;  %v4398_v33 = vsel %vm722_vm5, %v6950_v24, %v7080_v6  ;;  %5981 = vmatprep.subr.bf16.mxu0 %v7240_v44  ;;  %6074 = vmatprep.subr.bf16.mxu1 %v7240_v44 }
 0x602   :  { %v5856_v32 = vpop.f32.mrb[81].mxu0  ;;  %5982 = vmatpush3.bf16.msra.mxu0 %v7240_v44  ;;  %6082 = vmatpush3.bf16.msra.mxu1 %v7240_v44  ;;  %v4461_v18 = vpack.c.bf16 %v7091_v59, %v7090_v10 }
 0x603   :  { %v10706_v49 = vadd.f32 %v5856_v32, %v5855_v56  ;;  %v5858_v1 = vpop.f32.mrb[82].mxu0 }
 0x604   :  { %v5859_v47 = vpop.f32.mrb[83].mxu0 }
 0x605   :  { %v10708_v30 = vadd.f32 %v5859_v47, %v5858_v1 }
 0x607   :  { %4980 = vmatmul.mubr.bf16.gmra.mrb[156].mxu0 %v4440_v27 }
 0x608   :  { %5789 = vmatprep.mubr.msk.bf16.mxu0 %vm4681_vm0, %v4445_v60  ;;  %v4453_v60 = vpack.c.bf16 %v7081_v25, %v7080_v6  ;;  %v4401_v25 = vsel %vm722_vm5, %v6966_v55, %v7086_v46 }
 0x609   :  { %v5861_v21 = vpop.f32.mrb[84].mxu0 }
 0x60a   :  { %v5862_v51 = vpop.f32.mrb[85].mxu0 }
 0x60b   :  { %v10722_v56 = vadd.f32 %v5862_v51, %v5861_v21  ;;  %v5864_v32 = vpop.f32.mrb[86].mxu0 }
 0x60c   :  { %v5865_v4 = vpop.f32.mrb[87].mxu0 }
 0x60d   :  { %v10724_v5 = vadd.f32 %v5865_v4, %v5864_v32  ;;  %v4452_v32 = vpack.c.bf16 %v4399_v23, %v4398_v33  ;;  %v4457_v4 = vpack.c.bf16 %v7086_v46, %v7085_v29  ;;  %v7243_v23 = vld [vmem:[%s11106_s7 + $0x30] sm:$0xff]  }
 0x60f   :  { %4988 = vmatmul.mubr.bf16.gmra.mrb[160].mxu0 %v4444_v7 }
 0x610   :  { %5790 = vmatprep.mubr.msk.bf16.mxu0 %vm4681_vm0, %v4449_v12  ;;  %v4400_v12 = vsel %vm722_vm5, %v6965_v15, %v7085_v29  ;;  %v4402_v15 = vsel %vm722_vm5, %v6980_v50, %v7090_v10  ;;  %v7244_v50 = vld [vmem:[%s11106_s7 + $0x38] sm:$0xff]  }
 0x613   :  { %v5867_v34 = vpop.f32.mrb[88].mxu0 }
 0x614   :  { %v5868_v31 = vpop.f32.mrb[89].mxu0 }
 0x615   :  { %v10735_v1 = vadd.f32 %v5868_v31, %v5867_v34  ;;  %v5870_v47 = vpop.f32.mrb[90].mxu0  ;;  %v4456_v31 = vpack.c.bf16 %v4401_v25, %v4400_v12 }
 0x616   :  { %v5871_v27 = vpop.f32.mrb[91].mxu0 }
 0x617   :  { %v10737_v21 = vadd.f32 %v5871_v27, %v5870_v47  ;;  %4996 = vmatmul.mubr.bf16.gmra.mrb[164].mxu0 %v4448_v3  ;;  %v7241_v47 = vld [vmem:[%s11106_s7 + $0x20] sm:$0xff]   ;;  %v4403_v3 = vsel %vm722_vm5, %v6981_v20, %v7091_v59  ;;  %v4473_v59 = vpack.c.bf16 %v10584_v39, %v10584_v39 }
 0x618   :  { %5791 = vmatprep.mubr.msk.bf16.mxu0 %vm4681_vm0, %v4453_v60  ;;  %5983 = vmatprep.subr.bf16.mxu0 %v7241_v47  ;;  %v4460_v33 = vpack.c.bf16 %v4403_v3, %v4402_v15 }
 0x619   :  { %5984 = vmatpush3.bf16.msra.mxu0 %v7241_v47  ;;  %6075 = vmatprep.subr.bf16.mxu1 %v7241_v47 }
 0x61a   :  { %6083 = vmatpush3.bf16.msra.mxu1 %v7241_v47  ;;  %5985 = vmatprep.subr.bf16.mxu0 %v7242_v36 }
 0x61b   :  { %v5873_v63 = vpop.f32.mrb[92].mxu0  ;;  %6076 = vmatprep.subr.bf16.mxu1 %v7242_v36 }
 0x61c   :  { %v5874_v51 = vpop.f32.mrb[93].mxu0 }
 0x61d   :  { %v10751_v45 = vadd.f32 %v5874_v51, %v5873_v63  ;;  %v5876_v61 = vpop.f32.mrb[94].mxu0  ;;  %5986 = vmatpush3.bf16.msra.mxu0 %v7242_v36 }
 0x61e   :  { %v5877_v9 = vpop.f32.mrb[95].mxu0  ;;  %6084 = vmatpush3.bf16.msra.mxu1 %v7242_v36  ;;  %5987 = vmatprep.subr.bf16.mxu0 %v7243_v23 }
 0x61f   :  { %v10753_v24 = vadd.f32 %v5877_v9, %v5876_v61  ;;  %5004 = vmatmul.mubr.bf16.gmra.mrb[168].mxu0 %v4452_v32  ;;  %6077 = vmatprep.subr.bf16.mxu1 %v7243_v23  ;;  %v4469_v61 = vpack.c.bf16 %v7101_v58, %v7100_v26 }
 0x620   :  { %5792 = vmatprep.mubr.msk.bf16.mxu0 %vm4681_vm0, %v4457_v4 }
 0x621   :  { %5988 = vmatpush3.bf16.msra.mxu0 %v7243_v23 }
 0x622   :  { %6085 = vmatpush3.bf16.msra.mxu1 %v7243_v23  ;;  %5989 = vmatprep.subr.bf16.mxu0 %v7244_v50 }
 0x623   :  { %v5879_v7 = vpop.f32.mrb[96].mxu0  ;;  %6078 = vmatprep.subr.bf16.mxu1 %v7244_v50 }
 0x624   :  { %v5880_v6 = vpop.f32.mrb[97].mxu0 }
 0x625   :  { %v10764_v34 = vadd.f32 %v5880_v6, %v5879_v7  ;;  %v5882_v14 = vpop.f32.mrb[98].mxu0  ;;  %5990 = vmatpush3.bf16.msra.mxu0 %v7244_v50 }
 0x626   :  { %v5883_v37 = vpop.f32.mrb[99].mxu0  ;;  %6086 = vmatpush3.bf16.msra.mxu1 %v7244_v50 }
 0x627   :  { %v10769_v27 = vadd.f32 %v5883_v37, %v5882_v14  ;;  %5012 = vmatmul.mubr.bf16.gmra.mrb[172].mxu0 %v4456_v31 }
 0x628   :  { %5793 = vmatprep.mubr.msk.bf16.mxu0 %vm4681_vm0, %v4461_v18 }
 0x62b   :  { %v5885_v55 = vpop.f32.mrb[100].mxu0 }
 0x62c   :  { %v5886_v60 = vpop.f32.mrb[101].mxu0 }
 0x62d   :  { %v10781_v46 = vadd.f32 %v5886_v60, %v5885_v55  ;;  %v5888_v29 = vpop.f32.mrb[102].mxu0 }
 0x62e   :  { %v5889_v63 = vpop.f32.mrb[103].mxu0 }
 0x62f   :  { %v10790_v20 = vadd.f32 %v5889_v63, %v5888_v29  ;;  %5020 = vmatmul.mubr.bf16.gmra.mrb[176].mxu0 %v4460_v33  ;;  %v10840_v29 = vld [vmem:[%s11107_s6] ss:$0 sm:$0xff] }
 0x630   :  { %5794 = vmatprep.mubr.msk.bf16.mxu0 %vm4681_vm0, %v4465_v41  ;;  %v4765_v63 = vadd.f32 %v10648_v13, %v10840_v29  ;;  %v4768_v50 = vadd.f32 %v10653_v2, %v10840_v29  ;;  %v4773_v13 = vadd.f32 %v10658_v38, %v10840_v29  ;;  %v4776_v2 = vadd.f32 %v10666_v43, %v10840_v29 }
 0x631   :  { %v4784_v38 = vadd.f32 %v10682_v52, %v10840_v29 }
 0x633   :  { %v5891_v44 = vpop.f32.mrb[104].mxu0 }
 0x634   :  { %v5892_v51 = vpop.f32.mrb[105].mxu0 }
 0x635   :  { %v10796_v0 = vadd.f32 %v5892_v51, %v5891_v44  ;;  %v5894_v54 = vpop.f32.mrb[106].mxu0  ;;  %v7245_v51 = vld [vmem:[%s11108_s9] sm:$0xff]  }
 0x636   :  { %v5895_v48 = vpop.f32.mrb[107].mxu0  ;;  %6023 = vmatprep.subr.bf16.mxu1 %v7245_v51 }
 0x637   :  { %v10802_v9 = vadd.f32 %v5895_v48, %v5894_v54  ;;  %5028 = vmatmul.mubr.bf16.gmra.mrb[180].mxu0 %v4464_v28 }
 0x638   :  { %5795 = vmatprep.mubr.msk.bf16.mxu0 %vm4681_vm0, %v4469_v61 }
 0x63b   :  { %v5897_v32 = vpop.f32.mrb[108].mxu0 }
 0x63c   :  { %v5898_v4 = vpop.f32.mrb[109].mxu0 }
 0x63d   :  { %v10810_v10 = vadd.f32 %v5898_v4, %v5897_v32  ;;  %v5900_v7 = vpop.f32.mrb[110].mxu0 }
 0x63e   :  { %v5901_v12 = vpop.f32.mrb[111].mxu0 }
 0x63f   :  { %v10812_v35 = vadd.f32 %v5901_v12, %v5900_v7  ;;  %5036 = vmatmul.mubr.bf16.gmra.mrb[184].mxu0 %v4468_v40 }
 0x640   :  { %5796 = vmatprep.mubr.msk.bf16.mxu0 %vm4681_vm0, %v4473_v59 }
 0x647   :  { %5044 = vmatmul.mubr.bf16.gmra.mrb[188].mxu0 %v4472_v22 }
 0x66d   :  { %v5903_v57 = vpop.f32.mrb[112].mxu0 }
 0x66e   :  { %v5904_v16 = vpop.f32.mrb[113].mxu0 }
 0x66f   :  { %v10821_v28 = vadd.f32 %v5904_v16, %v5903_v57  ;;  %v5906_v39 = vpop.f32.mrb[114].mxu0 }
 0x670   :  { %v5907_v58 = vpop.f32.mrb[115].mxu0 }
 0x671   :  { %v10823_v26 = vadd.f32 %v5907_v58, %v5906_v39 }
 0x682   :  { %v5909_v25 = vpop.f32.mrb[116].mxu0 }
 0x683   :  { %v5910_v6 = vpop.f32.mrb[117].mxu0 }
 0x684   :  { %v10825_v14 = vadd.f32 %v5910_v6, %v5909_v25  ;;  %v5912_v19 = vpop.f32.mrb[118].mxu0 }
 0x685   :  { %v5913_v42 = vpop.f32.mrb[119].mxu0 }
 0x686   :  { %v10827_v40 = vadd.f32 %v5913_v42, %v5912_v19  ;;  %v4781_v19 = vadd.f32 %v10680_v11, %v10840_v29  ;;  %v4792_v11 = vadd.f32 %v10695_v17, %v10840_v29  ;;  %v4800_v17 = vadd.f32 %v10708_v30, %v10840_v29  ;;  %v7248_v30 = vld [vmem:[%s11108_s9 + $0x18] sm:$0xff]  }
 0x692   :  { %v5915_v37 = vpop.f32.mrb[120].mxu0 }
 0x693   :  { %v5916_v31 = vpop.f32.mrb[121].mxu0 }
 0x694   :  { %v10829_v8 = vadd.f32 %v5916_v31, %v5915_v37  ;;  %v5918_v62 = vpop.f32.mrb[122].mxu0 }
 0x695   :  { %v5919_v22 = vpop.f32.mrb[123].mxu0 }
 0x696   :  { %v10831_v47 = vadd.f32 %v5919_v22, %v5918_v62 }
 0x69a   :  { %v5921_v18 = vpop.f32.mrb[124].mxu0 }
 0x69b   :  { %v5922_v36 = vpop.f32.mrb[125].mxu0 }
 0x69c   :  { %v10833_v55 = vadd.f32 %v5922_v36, %v5921_v18  ;;  %v5924_v15 = vpop.f32.mrb[126].mxu0 }
 0x69d   :  { %v5925_v3 = vpop.f32.mrb[127].mxu0 }
 0x69e   :  { %v10835_v60 = vadd.f32 %v5925_v3, %v5924_v15  ;;  %v4789_v3 = vadd.f32 %v10693_v53, %v10840_v29  ;;  %v7246_v53 = vld [vmem:[%s11108_s9 + $0x8] sm:$0xff]  }
 0x6a2   :  { %v4925_v33 = vpop.f32.mrb[128].mxu0 }
 0x6a3   :  { %v4926_v23 = vadd.f32 %v4925_v33, %v4765_v63  ;;  %v4927_v41 = vpop.f32.mrb[129].mxu0 }
 0x6a4   :  { %v4928_v44 = vpop.f32.mrb[130].mxu0 }
 0x6a5   :  { %v4929_v54 = vadd.f32 %v4928_v44, %v4768_v50  ;;  %v4930_v48 = vpop.f32.mrb[131].mxu0  ;;  %v5052_v61 = vmax.f32 %v4926_v23, 0.0 }
 0x6a7   :  { %v5053_v32 = vmax.f32 %v4929_v54, 0.0 }
 0x6a9   :  { %v5084_v4 = vpack.c.bf16 %v5053_v32, %v5052_v61  ;;  %v4797_v61 = vadd.f32 %v10706_v49, %v10840_v29  ;;  %v7247_v49 = vld [vmem:[%s11108_s9 + $0x10] sm:$0xff]  }
 0x6aa   :  { %v4933_v59 = vpop.f32.mrb[132].mxu0 }
 0x6ab   :  { %v4934_v7 = vadd.f32 %v4933_v59, %v4773_v13  ;;  %v4935_v12 = vpop.f32.mrb[133].mxu0  ;;  %5991 = vmatprep.mubr.bf16.mxu0 %v5084_v4 }
 0x6ac   :  { %v4936_v57 = vpop.f32.mrb[134].mxu0 }
 0x6ad   :  { %v4937_v16 = vadd.f32 %v4936_v57, %v4776_v2  ;;  %v4938_v39 = vpop.f32.mrb[135].mxu0  ;;  %v5054_v58 = vmax.f32 %v4934_v7, 0.0 }
 0x6ae   :  { %v4805_v39 = vadd.f32 %v10722_v56, %v10840_v29  ;;  %v7249_v56 = vld [vmem:[%s11108_s9 + $0x20] sm:$0xff]  }
 0x6af   :  { %v5055_v25 = vmax.f32 %v4937_v16, 0.0 }
 0x6b1   :  { %v5085_v6 = vpack.c.bf16 %v5055_v25, %v5054_v58 }
 0x6b2   :  { %v4941_v42 = vpop.f32.mrb[136].mxu0 }
 0x6b3   :  { %v4942_v37 = vadd.f32 %v4941_v42, %v4781_v19  ;;  %v4943_v31 = vpop.f32.mrb[137].mxu0  ;;  %5992 = vmatmul.mubr.bf16.vlgmr.msra.gmra.mrb[192].mxu0 %v5085_v6  ;;  %v4808_v6 = vadd.f32 %v10724_v5, %v10840_v29  ;;  %v7250_v5 = vld [vmem:[%s11108_s9 + $0x28] sm:$0xff]  }
 0x6b4   :  { %v4944_v62 = vpop.f32.mrb[138].mxu0 }
 0x6b5   :  { %v4945_v22 = vadd.f32 %v4944_v62, %v4784_v38  ;;  %v4946_v18 = vpop.f32.mrb[139].mxu0  ;;  %v5056_v43 = vmax.f32 %v4942_v37, 0.0 }
 0x6b7   :  { %v5057_v36 = vmax.f32 %v4945_v22, 0.0  ;;  %v4813_v22 = vadd.f32 %v10735_v1, %v10840_v29 }
 0x6b9   :  { %v5086_v15 = vpack.c.bf16 %v5057_v36, %v5056_v43 }
 0x6ba   :  { %v4949_v63 = vpop.f32.mrb[140].mxu0 }
 0x6bb   :  { %v4950_v33 = vadd.f32 %v4949_v63, %v4789_v3  ;;  %v4951_v23 = vpop.f32.mrb[141].mxu0  ;;  %5995 = vmatprep.mubr.bf16.mxu1 %v5086_v15  ;;  %v4816_v15 = vadd.f32 %v10737_v21, %v10840_v29 }
 0x6bc   :  { %v4952_v41 = vpop.f32.mrb[142].mxu0 }
 0x6bd   :  { %v4953_v50 = vadd.f32 %v4952_v41, %v4792_v11  ;;  %v4954_v44 = vpop.f32.mrb[143].mxu0  ;;  %v5058_v52 = vmax.f32 %v4950_v33, 0.0  ;;  %v4821_v41 = vadd.f32 %v10751_v45, %v10840_v29  ;;  %v4832_v45 = vadd.f32 %v10769_v27, %v10840_v29 }
 0x6bf   :  { %v5059_v54 = vmax.f32 %v4953_v50, 0.0 }
 0x6c1   :  { %v5087_v48 = vpack.c.bf16 %v5059_v54, %v5058_v52  ;;  %v4824_v54 = vadd.f32 %v10753_v24, %v10840_v29 }
 0x6c2   :  { %v4957_v32 = vpop.f32.mrb[144].mxu0 }
 0x6c3   :  { %v4958_v4 = vadd.f32 %v4957_v32, %v4797_v61  ;;  %v4959_v13 = vpop.f32.mrb[145].mxu0  ;;  %5996 = vmatmul.mubr.bf16.vlgmr.msra.gmra.mrb[64].mxu1 %v5087_v48 }
 0x6c4   :  { %v4960_v59 = vpop.f32.mrb[146].mxu0  ;;  %6024 = vmatpush3.bf16.msra.mxu1 %v7245_v51  ;;  %v4829_v13 = vadd.f32 %v10764_v34, %v10840_v29  ;;  %v4840_v34 = vadd.f32 %v10790_v20, %v10840_v29 }
 0x6c5   :  { %v4961_v7 = vadd.f32 %v4960_v59, %v4800_v17  ;;  %v4962_v12 = vpop.f32.mrb[147].mxu0  ;;  %6025 = vmatprep.subr.bf16.mxu1 %v7246_v53  ;;  %v5060_v2 = vmax.f32 %v4958_v4, 0.0 }
 0x6c7   :  { %v5061_v57 = vmax.f32 %v4961_v7, 0.0 }
 0x6c8   :  { %6026 = vmatpush3.bf16.msra.mxu1 %v7246_v53 }
 0x6c9   :  { %v5088_v16 = vpack.c.bf16 %v5061_v57, %v5060_v2  ;;  %6027 = vmatprep.subr.bf16.mxu1 %v7247_v49 }
 0x6ca   :  { %v4965_v51 = vpop.f32.mrb[148].mxu0 }
 0x6cb   :  { %v4966_v58 = vadd.f32 %v4965_v51, %v4805_v39  ;;  %v4967_v25 = vpop.f32.mrb[149].mxu0  ;;  %5999 = vmatprep.mubr.bf16.mxu1 %v5088_v16  ;;  %v4837_v39 = vadd.f32 %v10781_v46, %v10840_v29  ;;  %v4848_v46 = vadd.f32 %v10802_v9, %v10840_v29 }
 0x6cc   :  { %v4968_v19 = vpop.f32.mrb[150].mxu0  ;;  %6028 = vmatpush3.bf16.msra.mxu1 %v7247_v49 }
 0x6cd   :  { %v4969_v42 = vadd.f32 %v4968_v19, %v4808_v6  ;;  %v4970_v37 = vpop.f32.mrb[151].mxu0  ;;  %6029 = vmatprep.subr.bf16.mxu1 %v7248_v30  ;;  %v5062_v31 = vmax.f32 %v4966_v58, 0.0 }
 0x6cf   :  { %v5063_v38 = vmax.f32 %v4969_v42, 0.0 }
 0x6d0   :  { %6030 = vmatpush3.bf16.msra.mxu1 %v7248_v30 }
 0x6d1   :  { %v5089_v62 = vpack.c.bf16 %v5063_v38, %v5062_v31  ;;  %6031 = vmatprep.subr.bf16.mxu1 %v7249_v56 }
 0x6d2   :  { %v4973_v18 = vpop.f32.mrb[152].mxu0 }
 0x6d3   :  { %v4974_v43 = vadd.f32 %v4973_v18, %v4813_v22  ;;  %v4975_v36 = vpop.f32.mrb[153].mxu0  ;;  %6000 = vmatmul.mubr.bf16.gmra.mrb[68].mxu1 %v5089_v62 }
 0x6d4   :  { %v4976_v3 = vpop.f32.mrb[154].mxu0  ;;  %6032 = vmatpush3.bf16.msra.mxu1 %v7249_v56  ;;  %v4845_v56 = vadd.f32 %v10796_v0, %v10840_v29  ;;  %v4856_v0 = vadd.f32 %v10812_v35, %v10840_v29 }
 0x6d5   :  { %v4977_v63 = vadd.f32 %v4976_v3, %v4816_v15  ;;  %v4978_v33 = vpop.f32.mrb[155].mxu0  ;;  %6033 = vmatprep.subr.bf16.mxu1 %v7250_v5  ;;  %v5064_v23 = vmax.f32 %v4974_v43, 0.0  ;;  %v4853_v15 = vadd.f32 %v10810_v10, %v10840_v29  ;;  %v4864_v10 = vadd.f32 %v10823_v26, %v10840_v29  ;;  %v7251_v26 = vld [vmem:[%s11108_s9 + $0x30] sm:$0xff]  }
 0x6d7   :  { %v5065_v11 = vmax.f32 %v4977_v63, 0.0 }
 0x6d8   :  { %6034 = vmatpush3.bf16.msra.mxu1 %v7250_v5 }
 0x6d9   :  { %v5090_v1 = vpack.c.bf16 %v5065_v11, %v5064_v23  ;;  %6035 = vmatprep.subr.bf16.mxu1 %v7251_v26 }
 0x6da   :  { %v4981_v50 = vpop.f32.mrb[156].mxu0 }
 0x6db   :  { %v4982_v44 = vadd.f32 %v4981_v50, %v4821_v41  ;;  %v4983_v52 = vpop.f32.mrb[157].mxu0  ;;  %6003 = vmatprep.mubr.bf16.mxu1 %v5090_v1 }
 0x6dc   :  { %v4984_v21 = vpop.f32.mrb[158].mxu0  ;;  %6036 = vmatpush3.bf16.msra.mxu1 %v7251_v26 }
 0x6dd   :  { %v4985_v48 = vadd.f32 %v4984_v21, %v4824_v54  ;;  %v4986_v61 = vpop.f32.mrb[159].mxu0  ;;  %v5066_v53 = vmax.f32 %v4982_v44, 0.0  ;;  %v4861_v44 = vadd.f32 %v10821_v28, %v10840_v29  ;;  %v4872_v28 = vadd.f32 %v10827_v40, %v10840_v29 }
 0x6df   :  { %v5067_v32 = vmax.f32 %v4985_v48, 0.0 }
 0x6e1   :  { %v5091_v4 = vpack.c.bf16 %v5067_v32, %v5066_v53 }
 0x6e2   :  { %v4989_v17 = vpop.f32.mrb[160].mxu0 }
 0x6e3   :  { %v4990_v59 = vadd.f32 %v4989_v17, %v4829_v13  ;;  %v4991_v7 = vpop.f32.mrb[161].mxu0  ;;  %6004 = vmatmul.mubr.bf16.gmra.mrb[72].mxu1 %v5091_v4  ;;  %v4869_v13 = vadd.f32 %v10825_v14, %v10840_v29 }
 0x6e4   :  { %v4992_v12 = vpop.f32.mrb[162].mxu0 }
 0x6e5   :  { %v4993_v49 = vadd.f32 %v4992_v12, %v4832_v45  ;;  %v4994_v2 = vpop.f32.mrb[163].mxu0  ;;  %v5068_v24 = vmax.f32 %v4990_v59, 0.0 }
 0x6e6   :  { %v7252_v2 = vld [vmem:[%s11108_s9 + $0x38] sm:$0xff]  }
 0x6e7   :  { %v5069_v57 = vmax.f32 %v4993_v49, 0.0  ;;  %6037 = vmatprep.subr.bf16.mxu1 %v7252_v2 }
 0x6e8   :  { %6038 = vmatpush3.bf16.msra.mxu1 %v7252_v2 }
 0x6e9   :  { %v5092_v16 = vpack.c.bf16 %v5069_v57, %v5068_v24 }
 0x6ea   :  { %v4997_v30 = vpop.f32.mrb[164].mxu0 }
 0x6eb   :  { %v4998_v51 = vadd.f32 %v4997_v30, %v4837_v39  ;;  %v4999_v58 = vpop.f32.mrb[165].mxu0  ;;  %6007 = vmatprep.mubr.bf16.mxu1 %v5092_v16  ;;  %v4877_v16 = vadd.f32 %v10829_v8, %v10840_v29 }
 0x6ec   :  { %v5000_v25 = vpop.f32.mrb[166].mxu0 }
 0x6ed   :  { %v5001_v6 = vadd.f32 %v5000_v25, %v4840_v34  ;;  %v5002_v19 = vpop.f32.mrb[167].mxu0  ;;  %v5070_v27 = vmax.f32 %v4998_v51, 0.0  ;;  %v4880_v51 = vadd.f32 %v10831_v47, %v10840_v29 }
 0x6ef   :  { %v5071_v42 = vmax.f32 %v5001_v6, 0.0 }
 0x6f1   :  { %v5093_v37 = vpack.c.bf16 %v5071_v42, %v5070_v27  ;;  %v4885_v42 = vadd.f32 %v10833_v55, %v10840_v29 }
 0x6f2   :  { %v5005_v31 = vpop.f32.mrb[168].mxu0 }
 0x6f3   :  { %v5006_v38 = vadd.f32 %v5005_v31, %v4845_v56  ;;  %v5007_v62 = vpop.f32.mrb[169].mxu0  ;;  %6008 = vmatmul.mubr.bf16.gmra.mrb[76].mxu1 %v5093_v37  ;;  %v4888_v31 = vadd.f32 %v10835_v60, %v10840_v29 }
 0x6f4   :  { %v5008_v22 = vpop.f32.mrb[170].mxu0 }
 0x6f5   :  { %v5009_v5 = vadd.f32 %v5008_v22, %v4848_v46  ;;  %v5010_v18 = vpop.f32.mrb[171].mxu0  ;;  %v5072_v20 = vmax.f32 %v5006_v38, 0.0 }
 0x6f6   :  { %v10933_v18 = vld [vmem:[%s11109_s8] ss:$0 sm:$0xff] }
 0x6f7   :  { %v5073_v43 = vmax.f32 %v5009_v5, 0.0 }
 0x6f9   :  { %v5094_v36 = vpack.c.bf16 %v5073_v43, %v5072_v20 }
 0x6fa   :  { %v5013_v3 = vpop.f32.mrb[172].mxu0 }
 0x6fb   :  { %v5014_v63 = vadd.f32 %v5013_v3, %v4853_v15  ;;  %v5015_v33 = vpop.f32.mrb[173].mxu0  ;;  %6011 = vmatprep.mubr.bf16.mxu1 %v5094_v36 }
 0x6fc   :  { %v5016_v23 = vpop.f32.mrb[174].mxu0 }
 0x6fd   :  { %v5017_v11 = vadd.f32 %v5016_v23, %v4856_v0  ;;  %v5018_v1 = vpop.f32.mrb[175].mxu0  ;;  %v5074_v9 = vmax.f32 %v5014_v63, 0.0 }
 0x6ff   :  { %v5075_v41 = vmax.f32 %v5017_v11, 0.0 }
 0x701   :  { %v5095_v50 = vpack.c.bf16 %v5075_v41, %v5074_v9 }
 0x702   :  { %v5021_v52 = vpop.f32.mrb[176].mxu0 }
 0x703   :  { %v5022_v54 = vadd.f32 %v5021_v52, %v4861_v44  ;;  %v5023_v21 = vpop.f32.mrb[177].mxu0  ;;  %6012 = vmatmul.mubr.bf16.gmra.mrb[80].mxu1 %v5095_v50 }
 0x704   :  { %v5024_v48 = vpop.f32.mrb[178].mxu0 }
 0x705   :  { %v5025_v61 = vadd.f32 %v5024_v48, %v4864_v10  ;;  %v5026_v53 = vpop.f32.mrb[179].mxu0  ;;  %v5076_v35 = vmax.f32 %v5022_v54, 0.0 }
 0x707   :  { %v5077_v32 = vmax.f32 %v5025_v61, 0.0 }
 0x709   :  { %v5096_v4 = vpack.c.bf16 %v5077_v32, %v5076_v35 }
 0x70a   :  { %v5029_v17 = vpop.f32.mrb[180].mxu0 }
 0x70b   :  { %v5030_v59 = vadd.f32 %v5029_v17, %v4869_v13  ;;  %v5031_v7 = vpop.f32.mrb[181].mxu0  ;;  %6015 = vmatprep.mubr.bf16.mxu1 %v5096_v4 }
 0x70c   :  { %v5032_v45 = vpop.f32.mrb[182].mxu0 }
 0x70d   :  { %v5033_v12 = vadd.f32 %v5032_v45, %v4872_v28  ;;  %v5034_v49 = vpop.f32.mrb[183].mxu0  ;;  %v5078_v24 = vmax.f32 %v5030_v59, 0.0 }
 0x70f   :  { %v5079_v14 = vmax.f32 %v5033_v12, 0.0 }
 0x711   :  { %v5097_v57 = vpack.c.bf16 %v5079_v14, %v5078_v24 }
 0x712   :  { %v5037_v40 = vpop.f32.mrb[184].mxu0 }
 0x713   :  { %v5038_v39 = vadd.f32 %v5037_v40, %v4877_v16  ;;  %v5039_v30 = vpop.f32.mrb[185].mxu0  ;;  %6016 = vmatmul.mubr.bf16.gmra.mrb[84].mxu1 %v5097_v57 }
 0x714   :  { %v5040_v58 = vpop.f32.mrb[186].mxu0 }
 0x715   :  { %v5041_v34 = vadd.f32 %v5040_v58, %v4880_v51  ;;  %v5042_v25 = vpop.f32.mrb[187].mxu0  ;;  %v5080_v6 = vmax.f32 %v5038_v39, 0.0 }
 0x717   :  { %v5081_v19 = vmax.f32 %v5041_v34, 0.0 }
 0x719   :  { %v5098_v27 = vpack.c.bf16 %v5081_v19, %v5080_v6 }
 0x71a   :  { %v5045_v8 = vpop.f32.mrb[188].mxu0 }
 0x71b   :  { %v5046_v37 = vadd.f32 %v5045_v8, %v4885_v42  ;;  %v5047_v56 = vpop.f32.mrb[189].mxu0  ;;  %6019 = vmatprep.mubr.bf16.mxu1 %v5098_v27 }
 0x71c   :  { %v5048_v38 = vpop.f32.mrb[190].mxu0 }
 0x71d   :  { %v5049_v62 = vadd.f32 %v5048_v38, %v4888_v31  ;;  %v5050_v47 = vpop.f32.mrb[191].mxu0  ;;  %v5082_v46 = vmax.f32 %v5046_v37, 0.0 }
 0x71f   :  { %v5083_v22 = vmax.f32 %v5049_v62, 0.0 }
 0x721   :  { %v5099_v5 = vpack.c.bf16 %v5083_v22, %v5082_v46 }
 0x723   :  { %6020 = vmatmul.mubr.bf16.gmra.mrb[88].mxu1 %v5099_v5 }
 0x786   :  { %v5993_v55 = vpop.f32.mrb[192].mxu0 }
 0x787   :  { %v5214_v20 = vadd.f32 %v5993_v55, %v10933_v18  ;;  %v5205_v43 = vpop.f32.mrb[193].mxu0 }
 0x788   :  { %v5206_v36 = vadd.f32 %v10933_v18, %v5205_v43  ;;  %v5994_v15 = vpop.f32.mrb[194].mxu0 }
 0x789   :  { %v5217_v60 = vadd.f32 %v5994_v15, %v10933_v18  ;;  %v5208_v29 = vpop.f32.mrb[195].mxu0  ;;  %v5334_v63 = vmax.f32 %v5214_v20, 0.0 }
 0x78a   :  { %v5209_v3 = vadd.f32 %v10933_v18, %v5208_v29  ;;  %v5332_v0 = vmax.f32 %v5206_v36, 0.0 }
 0x78b   :  { %v5335_v33 = vmax.f32 %v5217_v60, 0.0 }
 0x78c   :  { %v5333_v23 = vmax.f32 %v5209_v3, 0.0 }
 0x78d   :  { %v5365_v11 = vpack.c.bf16 %v5335_v33, %v5334_v63 }
 0x78e   :  { %v5364_v1 = vpack.c.bf16 %v5333_v23, %v5332_v0 }
 0x790   :  { %6039 = vmatprep.mubr.bf16.mxu1 %v5364_v1 }
 0x791   :  { %6040 = vmatmul.mubr.bf16.vlgmr.msra.gmra.mrb[92].mxu1 %v5365_v11 }
 0x796   :  { %v5997_v9 = vpop.f32.mrb[64].mxu1 }
 0x797   :  { %v5230_v41 = vadd.f32 %v5997_v9, %v10933_v18  ;;  %v5221_v50 = vpop.f32.mrb[65].mxu1 }
 0x798   :  { %v5222_v44 = vadd.f32 %v10933_v18, %v5221_v50  ;;  %v5998_v52 = vpop.f32.mrb[66].mxu1 }
 0x799   :  { %v5233_v54 = vadd.f32 %v5998_v52, %v10933_v18  ;;  %v5224_v21 = vpop.f32.mrb[67].mxu1  ;;  %v5338_v48 = vmax.f32 %v5230_v41, 0.0 }
 0x79a   :  { %v5225_v10 = vadd.f32 %v10933_v18, %v5224_v21  ;;  %v5336_v53 = vmax.f32 %v5222_v44, 0.0 }
 0x79b   :  { %v5339_v61 = vmax.f32 %v5233_v54, 0.0 }
 0x79c   :  { %v5337_v35 = vmax.f32 %v5225_v10, 0.0 }
 0x79d   :  { %v5367_v32 = vpack.c.bf16 %v5339_v61, %v5338_v48 }
 0x79e   :  { %v5366_v4 = vpack.c.bf16 %v5337_v35, %v5336_v53 }
 0x7a0   :  { %6043 = vmatprep.mubr.bf16.mxu1 %v5366_v4 }
 0x7a1   :  { %6044 = vmatmul.mubr.bf16.gmra.mrb[96].mxu1 %v5367_v32 }
 0x7a6   :  { %v6001_v13 = vpop.f32.mrb[68].mxu1 }
 0x7a7   :  { %v5246_v17 = vadd.f32 %v6001_v13, %v10933_v18  ;;  %v5237_v59 = vpop.f32.mrb[69].mxu1 }
 0x7a8   :  { %v5238_v7 = vadd.f32 %v10933_v18, %v5237_v59  ;;  %v6002_v28 = vpop.f32.mrb[70].mxu1 }
 0x7a9   :  { %v5249_v45 = vadd.f32 %v6002_v28, %v10933_v18  ;;  %v5240_v12 = vpop.f32.mrb[71].mxu1  ;;  %v5342_v26 = vmax.f32 %v5246_v17, 0.0 }
 0x7aa   :  { %v5241_v49 = vadd.f32 %v10933_v18, %v5240_v12  ;;  %v5340_v24 = vmax.f32 %v5238_v7, 0.0 }
 0x7ab   :  { %v5343_v2 = vmax.f32 %v5249_v45, 0.0 }
 0x7ac   :  { %v5341_v14 = vmax.f32 %v5241_v49, 0.0 }
 0x7ad   :  { %v5369_v57 = vpack.c.bf16 %v5343_v2, %v5342_v26 }
 0x7ae   :  { %v5368_v16 = vpack.c.bf16 %v5341_v14, %v5340_v24 }
 0x7b0   :  { %6047 = vmatprep.mubr.bf16.mxu1 %v5368_v16 }
 0x7b1   :  { %6048 = vmatmul.mubr.bf16.gmra.mrb[100].mxu1 %v5369_v57 }
 0x7b6   :  { %v6005_v40 = vpop.f32.mrb[72].mxu1 }
 0x7b7   :  { %v5262_v39 = vadd.f32 %v6005_v40, %v10933_v18  ;;  %v5253_v30 = vpop.f32.mrb[73].mxu1 }
 0x7b8   :  { %v5254_v51 = vadd.f32 %v10933_v18, %v5253_v30  ;;  %v6006_v58 = vpop.f32.mrb[74].mxu1 }
 0x7b9   :  { %v5265_v34 = vadd.f32 %v6006_v58, %v10933_v18  ;;  %v5256_v25 = vpop.f32.mrb[75].mxu1  ;;  %v5346_v19 = vmax.f32 %v5262_v39, 0.0 }
 0x7ba   :  { %v5257_v6 = vadd.f32 %v10933_v18, %v5256_v25  ;;  %v5344_v42 = vmax.f32 %v5254_v51, 0.0 }
 0x7bb   :  { %v5347_v27 = vmax.f32 %v5265_v34, 0.0 }
 0x7bc   :  { %v5345_v8 = vmax.f32 %v5257_v6, 0.0  ;;  %v10970_v6 = vld [vmem:[%s11110_s10] ss:$0 sm:$0xff] }
 0x7bd   :  { %v5371_v37 = vpack.c.bf16 %v5347_v27, %v5346_v19 }
 0x7be   :  { %v5370_v56 = vpack.c.bf16 %v5345_v8, %v5344_v42 }
 0x7c0   :  { %6051 = vmatprep.mubr.bf16.mxu1 %v5370_v56 }
 0x7c1   :  { %6052 = vmatmul.mubr.bf16.gmra.mrb[104].mxu1 %v5371_v37 }
 0x7c6   :  { %v6009_v31 = vpop.f32.mrb[76].mxu1 }
 0x7c7   :  { %v5278_v38 = vadd.f32 %v6009_v31, %v10933_v18  ;;  %v5269_v62 = vpop.f32.mrb[77].mxu1 }
 0x7c8   :  { %v5270_v47 = vadd.f32 %v10933_v18, %v5269_v62  ;;  %v6010_v46 = vpop.f32.mrb[78].mxu1 }
 0x7c9   :  { %v5281_v22 = vadd.f32 %v6010_v46, %v10933_v18  ;;  %v5272_v5 = vpop.f32.mrb[79].mxu1  ;;  %v5350_v20 = vmax.f32 %v5278_v38, 0.0 }
 0x7ca   :  { %v5273_v55 = vadd.f32 %v10933_v18, %v5272_v5  ;;  %v5348_v36 = vmax.f32 %v5270_v47, 0.0 }
 0x7cb   :  { %v5351_v43 = vmax.f32 %v5281_v22, 0.0 }
 0x7cc   :  { %v5349_v15 = vmax.f32 %v5273_v55, 0.0 }
 0x7cd   :  { %v5373_v60 = vpack.c.bf16 %v5351_v43, %v5350_v20 }
 0x7ce   :  { %v5372_v29 = vpack.c.bf16 %v5349_v15, %v5348_v36 }
 0x7d0   :  { %6055 = vmatprep.mubr.bf16.mxu1 %v5372_v29 }
 0x7d1   :  { %6056 = vmatmul.mubr.bf16.gmra.mrb[108].mxu1 %v5373_v60 }
 0x7d6   :  { %v6013_v3 = vpop.f32.mrb[80].mxu1 }
 0x7d7   :  { %v5294_v63 = vadd.f32 %v6013_v3, %v10933_v18  ;;  %v5285_v33 = vpop.f32.mrb[81].mxu1 }
 0x7d8   :  { %v5286_v0 = vadd.f32 %v10933_v18, %v5285_v33  ;;  %v6014_v23 = vpop.f32.mrb[82].mxu1 }
 0x7d9   :  { %v5297_v11 = vadd.f32 %v6014_v23, %v10933_v18  ;;  %v5288_v1 = vpop.f32.mrb[83].mxu1  ;;  %v5354_v41 = vmax.f32 %v5294_v63, 0.0 }
 0x7da   :  { %v5289_v9 = vadd.f32 %v10933_v18, %v5288_v1  ;;  %v5352_v44 = vmax.f32 %v5286_v0, 0.0 }
 0x7db   :  { %v5355_v50 = vmax.f32 %v5297_v11, 0.0 }
 0x7dc   :  { %v5353_v52 = vmax.f32 %v5289_v9, 0.0 }
 0x7dd   :  { %v5375_v54 = vpack.c.bf16 %v5355_v50, %v5354_v41 }
 0x7de   :  { %v5374_v21 = vpack.c.bf16 %v5353_v52, %v5352_v44 }
 0x7e0   :  { %6059 = vmatprep.mubr.bf16.mxu1 %v5374_v21 }
 0x7e1   :  { %6060 = vmatmul.mubr.bf16.gmra.mrb[112].mxu1 %v5375_v54 }
 0x7e6   :  { %v6017_v10 = vpop.f32.mrb[84].mxu1 }
 0x7e7   :  { %v5310_v48 = vadd.f32 %v6017_v10, %v10933_v18  ;;  %v5301_v61 = vpop.f32.mrb[85].mxu1 }
 0x7e8   :  { %v5302_v53 = vadd.f32 %v10933_v18, %v5301_v61  ;;  %v6018_v35 = vpop.f32.mrb[86].mxu1 }
 0x7e9   :  { %v5313_v32 = vadd.f32 %v6018_v35, %v10933_v18  ;;  %v5304_v4 = vpop.f32.mrb[87].mxu1  ;;  %v5358_v17 = vmax.f32 %v5310_v48, 0.0 }
 0x7ea   :  { %v5305_v13 = vadd.f32 %v10933_v18, %v5304_v4  ;;  %v5356_v7 = vmax.f32 %v5302_v53, 0.0 }
 0x7eb   :  { %v5359_v59 = vmax.f32 %v5313_v32, 0.0 }
 0x7ec   :  { %v5357_v28 = vmax.f32 %v5305_v13, 0.0 }
 0x7ed   :  { %v5377_v45 = vpack.c.bf16 %v5359_v59, %v5358_v17 }
 0x7ee   :  { %v5376_v12 = vpack.c.bf16 %v5357_v28, %v5356_v7 }
 0x7f0   :  { %6063 = vmatprep.mubr.bf16.mxu1 %v5376_v12 }
 0x7f1   :  { %6064 = vmatmul.mubr.bf16.gmra.mrb[116].mxu1 %v5377_v45 }
 0x7f6   :  { %v6021_v49 = vpop.f32.mrb[88].mxu1 }
 0x7f7   :  { %v5326_v26 = vadd.f32 %v6021_v49, %v10933_v18  ;;  %v5317_v2 = vpop.f32.mrb[89].mxu1 }
 0x7f8   :  { %v5318_v24 = vadd.f32 %v10933_v18, %v5317_v2  ;;  %v6022_v14 = vpop.f32.mrb[90].mxu1 }
 0x7f9   :  { %v5329_v57 = vadd.f32 %v6022_v14, %v10933_v18  ;;  %v5320_v16 = vpop.f32.mrb[91].mxu1  ;;  %v5362_v39 = vmax.f32 %v5326_v26, 0.0 }
 0x7fa   :  { %v5321_v40 = vadd.f32 %v10933_v18, %v5320_v16  ;;  %v5360_v51 = vmax.f32 %v5318_v24, 0.0 }
 0x7fb   :  { %v5363_v30 = vmax.f32 %v5329_v57, 0.0 }
 0x7fc   :  { %v5361_v58 = vmax.f32 %v5321_v40, 0.0 }
 0x7fd   :  { %v5379_v34 = vpack.c.bf16 %v5363_v30, %v5362_v39 }
 0x7fe   :  { %v5378_v25 = vpack.c.bf16 %v5361_v58, %v5360_v51 }
 0x800   :  { %6067 = vmatprep.mubr.bf16.mxu1 %v5378_v25 }
 0x801   :  { %6068 = vmatmul.mubr.bf16.gmra.mrb[120].mxu1 %v5379_v34 }
 0x864   :  { %v6041_v19 = vpop.f32.mrb[92].mxu1 }
 0x865   :  { %v5494_v27 = vadd.f32 %v6041_v19, %v10970_v6  ;;  %v5485_v42 = vpop.f32.mrb[93].mxu1 }
 0x866   :  { %v5486_v8 = vadd.f32 %v10970_v6, %v5485_v42  ;;  %v6042_v18 = vpop.f32.mrb[94].mxu1 }
 0x867   :  { %5614 = vst [vmem:[%s11111_s11 + $0x10] sm:$0xff] %v5494_v27  ;;  %v5497_v37 = vadd.f32 %v6042_v18, %v10970_v6  ;;  %v5488_v56 = vpop.f32.mrb[95].mxu1 }
 0x868   :  { %5612 = vst [vmem:[%s11111_s11] sm:$0xff] %v5486_v8  ;;  %v5489_v31 = vadd.f32 %v10970_v6, %v5488_v56 }
 0x869   :  { %5615 = vst [vmem:[%s11111_s11 + $0x18] sm:$0xff] %v5497_v37 }
 0x86a   :  { %5613 = vst [vmem:[%s11111_s11 + $0x8] sm:$0xff] %v5489_v31 }
 0x874   :  { %v6045_v38 = vpop.f32.mrb[96].mxu1 }
 0x875   :  { %v5510_v62 = vadd.f32 %v6045_v38, %v10970_v6  ;;  %v5501_v47 = vpop.f32.mrb[97].mxu1 }
 0x876   :  { %v5502_v46 = vadd.f32 %v10970_v6, %v5501_v47  ;;  %v6046_v22 = vpop.f32.mrb[98].mxu1 }
 0x877   :  { %5618 = vst [vmem:[%s11111_s11 + $0x30] sm:$0xff] %v5510_v62  ;;  %v5513_v5 = vadd.f32 %v6046_v22, %v10970_v6  ;;  %v5504_v55 = vpop.f32.mrb[99].mxu1 }
 0x878   :  { %5616 = vst [vmem:[%s11111_s11 + $0x20] sm:$0xff] %v5502_v46  ;;  %v5505_v20 = vadd.f32 %v10970_v6, %v5504_v55 }
 0x879   :  { %5619 = vst [vmem:[%s11111_s11 + $0x38] sm:$0xff] %v5513_v5 }
 0x87a   :  { %5617 = vst [vmem:[%s11111_s11 + $0x28] sm:$0xff] %v5505_v20 }
 0x884   :  { %v6049_v43 = vpop.f32.mrb[100].mxu1 }
 0x885   :  { %v5526_v36 = vadd.f32 %v6049_v43, %v10970_v6  ;;  %v5517_v15 = vpop.f32.mrb[101].mxu1 }
 0x886   :  { %v5518_v60 = vadd.f32 %v10970_v6, %v5517_v15  ;;  %v6050_v29 = vpop.f32.mrb[102].mxu1 }
 0x887   :  { %5622 = vst [vmem:[%s11111_s11 + $0x50] sm:$0xff] %v5526_v36  ;;  %v5529_v3 = vadd.f32 %v6050_v29, %v10970_v6  ;;  %v5520_v63 = vpop.f32.mrb[103].mxu1 }
 0x888   :  { %5620 = vst [vmem:[%s11111_s11 + $0x40] sm:$0xff] %v5518_v60  ;;  %v5521_v33 = vadd.f32 %v10970_v6, %v5520_v63 }
 0x889   :  { %5623 = vst [vmem:[%s11111_s11 + $0x58] sm:$0xff] %v5529_v3 }
 0x88a   :  { %5621 = vst [vmem:[%s11111_s11 + $0x48] sm:$0xff] %v5521_v33 }
 0x894   :  { %v6053_v0 = vpop.f32.mrb[104].mxu1 }
 0x895   :  { %v5542_v23 = vadd.f32 %v6053_v0, %v10970_v6  ;;  %v5533_v11 = vpop.f32.mrb[105].mxu1 }
 0x896   :  { %v5534_v1 = vadd.f32 %v10970_v6, %v5533_v11  ;;  %v6054_v9 = vpop.f32.mrb[106].mxu1 }
 0x897   :  { %5626 = vst [vmem:[%s11111_s11 + $0x70] sm:$0xff] %v5542_v23  ;;  %v5545_v41 = vadd.f32 %v6054_v9, %v10970_v6  ;;  %v5536_v50 = vpop.f32.mrb[107].mxu1 }
 0x898   :  { %5624 = vst [vmem:[%s11111_s11 + $0x60] sm:$0xff] %v5534_v1  ;;  %v5537_v44 = vadd.f32 %v10970_v6, %v5536_v50 }
 0x899   :  { %5627 = vst [vmem:[%s11111_s11 + $0x78] sm:$0xff] %v5545_v41 }
 0x89a   :  { %5625 = vst [vmem:[%s11111_s11 + $0x68] sm:$0xff] %v5537_v44 }
 0x8a4   :  { %v6057_v52 = vpop.f32.mrb[108].mxu1 }
 0x8a5   :  { %v5558_v54 = vadd.f32 %v6057_v52, %v10970_v6  ;;  %v5549_v21 = vpop.f32.mrb[109].mxu1 }
 0x8a6   :  { %v5550_v10 = vadd.f32 %v10970_v6, %v5549_v21  ;;  %v6058_v48 = vpop.f32.mrb[110].mxu1 }
 0x8a7   :  { %5630 = vst [vmem:[%s11111_s11 + $0x90] sm:$0xff] %v5558_v54  ;;  %v5561_v61 = vadd.f32 %v6058_v48, %v10970_v6  ;;  %v5552_v53 = vpop.f32.mrb[111].mxu1 }
 0x8a8   :  { %5628 = vst [vmem:[%s11111_s11 + $0x80] sm:$0xff] %v5550_v10  ;;  %v5553_v35 = vadd.f32 %v10970_v6, %v5552_v53 }
 0x8a9   :  { %5631 = vst [vmem:[%s11111_s11 + $0x98] sm:$0xff] %v5561_v61 }
 0x8aa   :  { %5629 = vst [vmem:[%s11111_s11 + $0x88] sm:$0xff] %v5553_v35 }
 0x8b4   :  { %v6061_v32 = vpop.f32.mrb[112].mxu1 }
 0x8b5   :  { %v5574_v4 = vadd.f32 %v6061_v32, %v10970_v6  ;;  %v5565_v13 = vpop.f32.mrb[113].mxu1 }
 0x8b6   :  { %v5566_v17 = vadd.f32 %v10970_v6, %v5565_v13  ;;  %v6062_v59 = vpop.f32.mrb[114].mxu1 }
 0x8b7   :  { %5634 = vst [vmem:[%s11111_s11 + $0xb0] sm:$0xff] %v5574_v4  ;;  %v5577_v7 = vadd.f32 %v6062_v59, %v10970_v6  ;;  %v5568_v28 = vpop.f32.mrb[115].mxu1 }
 0x8b8   :  { %5632 = vst [vmem:[%s11111_s11 + $0xa0] sm:$0xff] %v5566_v17  ;;  %v5569_v45 = vadd.f32 %v10970_v6, %v5568_v28 }
 0x8b9   :  { %5635 = vst [vmem:[%s11111_s11 + $0xb8] sm:$0xff] %v5577_v7 }
 0x8ba   :  { %5633 = vst [vmem:[%s11111_s11 + $0xa8] sm:$0xff] %v5569_v45 }
 0x8c4   :  { %v6065_v12 = vpop.f32.mrb[116].mxu1 }
 0x8c5   :  { %v5590_v49 = vadd.f32 %v6065_v12, %v10970_v6  ;;  %v5581_v26 = vpop.f32.mrb[117].mxu1 }
 0x8c6   :  { %v5582_v2 = vadd.f32 %v10970_v6, %v5581_v26  ;;  %v6066_v24 = vpop.f32.mrb[118].mxu1 }
 0x8c7   :  { %5638 = vst [vmem:[%s11111_s11 + $0xd0] sm:$0xff] %v5590_v49  ;;  %v5593_v14 = vadd.f32 %v6066_v24, %v10970_v6  ;;  %v5584_v57 = vpop.f32.mrb[119].mxu1 }
 0x8c8   :  { %5636 = vst [vmem:[%s11111_s11 + $0xc0] sm:$0xff] %v5582_v2  ;;  %v5585_v16 = vadd.f32 %v10970_v6, %v5584_v57 }
 0x8c9   :  { %5639 = vst [vmem:[%s11111_s11 + $0xd8] sm:$0xff] %v5593_v14 }
 0x8ca   :  { %5637 = vst [vmem:[%s11111_s11 + $0xc8] sm:$0xff] %v5585_v16 }
 0x8d4   :  { %v6069_v40 = vpop.f32.mrb[120].mxu1 }
 0x8d5   :  { %v5606_v39 = vadd.f32 %v6069_v40, %v10970_v6  ;;  %v5597_v30 = vpop.f32.mrb[121].mxu1 }
 0x8d6   :  { %v5598_v51 = vadd.f32 %v10970_v6, %v5597_v30  ;;  %v6070_v58 = vpop.f32.mrb[122].mxu1 }
 0x8d7   :  { %5642 = vst [vmem:[%s11111_s11 + $0xf0] sm:$0xff] %v5606_v39  ;;  %v5609_v34 = vadd.f32 %v6070_v58, %v10970_v6  ;;  %v5600_v25 = vpop.f32.mrb[123].mxu1 }
 0x8d8   :  { %5640 = vst [vmem:[%s11111_s11 + $0xe0] sm:$0xff] %v5598_v51  ;;  %v5601_v19 = vadd.f32 %v10970_v6, %v5600_v25 }
 0x8d9   :  { %5643 = vst [vmem:[%s11111_s11 + $0xf8] sm:$0xff] %v5609_v34 }
 0x8da   :  { %5641 = vst [vmem:[%s11111_s11 + $0xe8] sm:$0xff] %v5601_v19 }

</bundles_post_ra>
